<compile_context>
chip_gen: v7x
topology: tpu7x:2x2x1
jax: 0.10.0
libtpu: 0.0.40
codegen_flags: <defaults>
</compile_context>

<pallas_src>
import numpy as np
import jax
import jax.numpy as jnp
from jax import lax
from jax.experimental import pallas as pl
from jax.experimental.pallas import tpu as pltpu

# Config mirroring PositionNet.__init__
JOINT_NUM = 21              # mano.sh_joint_num
DEPTH_DIM = 8               # cfg.output_hand_hm_shape[0]
IN_CH = 2048                # backbone feature channels (hard-coded in module)
OUT_CH = JOINT_NUM * DEPTH_DIM


# ---------------------------------------------------------------------------
# Fused kernel: per grid step handles bt samples packed along the lane axis.
#   hm   = W(O,C) @ X(C, bt*HW) + b       (1x1 conv, MXU, bf16 in / f32 acc)
#   view (O, L) -> (J, D, L)              (free sublane-group reshape, D == 8)
#   e    = exp(hm - max per (joint, sample))
#   red  = [sum_D e ; sum_D d*e] @ R      (per-sample lane sums on the MXU)
#   out  = [xnum, ynum, znum] / denom     -> (bt, J, 3)
# ---------------------------------------------------------------------------
def _position_net_kernel(x_ref, w_ref, b_ref, r_ref, out_ref):
    _, L = x_ref.shape
    bt = out_ref.shape[0]
    HW = L // bt
    J, D = JOINT_NUM, DEPTH_DIM

    # 1x1 conv over ALL bt samples: one lane-dense MXU matmul, f32 accumulation.
    hm = jnp.dot(w_ref[...], x_ref[...], preferred_element_type=jnp.float32)
    hm = hm + b_ref[...]                               # (O, L) + (O, 1) bias
    hm3 = hm.reshape(J, D, L)                          # free: O = J*D, D == 8 (f32 sublane tile)

    # ---- exact per-(joint, sample) stabilizing max --------------------------
    md = jnp.max(hm3, axis=1)                          # (J, L): max over depth
    parts = []
    for b in range(bt):                                # static unroll: per-iter live state is a
        g = md[:, b * HW:(b + 1) * HW]                 # (J, HW) sliver -> no spill pressure
        m_b = jnp.max(g, axis=1, keepdims=True)        # (J, 1)  per-sample max
        parts.append(jnp.broadcast_to(m_b, (J, HW)))
    m_bcast = jnp.concatenate(parts, axis=1)           # (J, L)

    # ---- un-normalized softmax + depth (sublane) reductions, fully batched --
    e = jnp.exp(hm3 - m_bcast[:, None, :])             # (J, D, L), values <= 1
    dc = lax.broadcasted_iota(jnp.int32, (1, D, L), 1).astype(jnp.float32)
    e_d = jnp.sum(e, axis=1)                           # (J, L)  sum over depth
    e_zd = jnp.sum(e * dc, axis=1)                     # (J, L)  depth-weighted sum

    # ---- per-sample lane reductions as ONE small MXU matmul -----------------
    # R columns: [0:bt) ones (denominator / z-numerator), [bt:2bt) x-coord,
    #            [2bt:3bt) y-coord, block-diagonal per sample.
    em = jnp.concatenate([e_d, e_zd], axis=0)          # (2J, L)
    red = jnp.dot(em, r_ref[...], preferred_element_type=jnp.float32)   # (2J, 3*bt)

    denom = red[0:J, 0:bt]                             # (J, bt)
    xn = red[0:J, bt:2 * bt]
    yn = red[0:J, 2 * bt:3 * bt]
    zn = red[J:2 * J, 0:bt]
    inv = pl.reciprocal(denom, approx=False)
    xo = xn * inv
    yo = yn * inv
    zo = zn * inv                                      # (J, bt) each

    # ---- tiny output assembly: (bt, J, 3) ------------------------------------
    for b in range(bt):                                # static unroll, (J,1)-sized slivers only
        out_ref[b] = jnp.concatenate(
            [xo[:, b:b + 1], yo[:, b:b + 1], zo[:, b:b + 1]], axis=1)   # (J, 3)


# ---------------------------------------------------------------------------
# bt (samples per grid step) selection:
#   * bt must divide N (no ragged tail),
#   * bt*HW must be a multiple of 128 lanes (or the whole array) for clean tiling,
#   * prefer grid length >= 2 so v7x's two TensorCores both get work,
#   * cap at 16 (per-step overhead already < ~10%, VMEM stays small everywhere).
# Odd N with HW % 128 != 0 falls back to a single full-batch block.
# ---------------------------------------------------------------------------
def _pick_bt(N, HW, max_bt=16):
    def ok(t):
        return N % t == 0 and ((t * HW) % 128 == 0 or t == N)

    cands = [t for t in range(1, min(N, max_bt) + 1) if ok(t)]
    if not cands:
        cands = [N]                                    # single full block fallback
    pref = [t for t in cands if N // t >= 2]           # keep >= 2 grid steps (v7x megacore)
    return max(pref) if pref else max(cands)


def _reduction_matrix(bt, HW, W):
    """Block-diagonal per-sample coordinate/ones matrix R of shape (bt*HW, 3*bt)."""
    L = bt * HW
    hw = np.arange(HW, dtype=np.int32)
    xc = (hw % W).astype(np.float32)                   # x = w index
    yc = (hw // W).astype(np.float32)                  # y = h index
    samp = np.arange(L, dtype=np.int32) // HW
    onehot = (samp[:, None] == np.arange(bt, dtype=np.int32)[None, :]).astype(np.float32)
    xcol = onehot * np.tile(xc, bt)[:, None]
    ycol = onehot * np.tile(yc, bt)[:, None]
    return jnp.asarray(np.concatenate([onehot, xcol, ycol], axis=1))   # (L, 3*bt) f32


# ---------------------------------------------------------------------------
# Wrapper == PositionNet.forward
# ---------------------------------------------------------------------------
def position_net_forward(hand_feat, conv_w, conv_b):
    # hand_feat: (N, C, H, W) NCHW (PyTorch convention)
    N, C, H, W = hand_feat.shape
    HW = H * W
    J, O = JOINT_NUM, OUT_CH
    assert C == IN_CH and conv_w.shape[0] == O

    bt = _pick_bt(N, HW)
    L = bt * HW

    # Single fused transpose+convert pass: (N,C,H,W) f32 -> (C, N*HW) bf16.
    # (Best case: the backbone already emits bf16 channel-major and this op
    # disappears; never pay cast and transpose as two separate passes.)
    x_cm = jnp.transpose(hand_feat.reshape(N, C, HW), (1, 0, 2)) \
              .reshape(C, N * HW).astype(jnp.bfloat16)

    w = conv_w.reshape(O, C).astype(jnp.bfloat16)      # (O, C, 1, 1) -> (O, C)
    b = conv_b.astype(jnp.float32).reshape(O, 1)
    r = _reduction_matrix(bt, HW, W)                   # (L, 3*bt), compile-time constant

    cost = pl.CostEstimate(
        flops=2 * N * O * C * HW,
        transcendentals=N * O * HW,
        bytes_accessed=N * C * HW * 2 + O * C * 2 + N * J * 3 * 4,
    )

    return pl.pallas_call(
        _position_net_kernel,
        out_shape=jax.ShapeDtypeStruct((N, J, 3), jnp.float32),
        grid_spec=pltpu.PrefetchScalarGridSpec(
            num_scalar_prefetch=0,
            grid=(N // bt,),
            in_specs=[
                # feature slab: blocked along the (sample*HW) lane axis
                pl.BlockSpec((C, L), lambda i: (0, i)),
                # resident across the grid (constant index maps); on v7x these
                # could additionally use pipeline_mode=pl.Buffered(1).
                pl.BlockSpec((O, C), lambda i: (0, 0)),
                pl.BlockSpec((O, 1), lambda i: (0, 0)),
                pl.BlockSpec((L, 3 * bt), lambda i: (0, 0)),
            ],
            out_specs=pl.BlockSpec((bt, J, 3), lambda i: (i, 0, 0)),
        ),
        compiler_params=pltpu.CompilerParams(
            dimension_semantics=("parallel",),
            vmem_limit_bytes=48 * 1024 * 1024),
        cost_estimate=cost,
    )(x_cm, w, b, r)


# ---------------------------------------------------------------------------
# Pure-JAX references for correctness checks:
#   * cast_bf16=True  mirrors the kernel's bf16 conv inputs (tight check),
#   * cast_bf16=False is the original f32 module math (loose check, validates
#     that the bf16 choice is acceptable — review concern #1).
# ---------------------------------------------------------------------------
def _reference(hand_feat, conv_w, conv_b, cast_bf16=True):
    N, C, H, W = hand_feat.shape
    J, D = JOINT_NUM, DEPTH_DIM
    xb = hand_feat.astype(jnp.bfloat16) if cast_bf16 else hand_feat
    wb = conv_w.reshape(OUT_CH, C)
    wb = wb.astype(jnp.bfloat16) if cast_bf16 else wb
    hm = jnp.einsum("nchw,oc->nohw", xb, wb,
                    preferred_element_type=jnp.float32) \
         + conv_b[None, :, None, None]
    hm = hm.reshape(N, J, D, H, W)
    p = jax.nn.softmax(hm.reshape(N, J, -1), axis=-1).reshape(N, J, D, H, W)
    x = jnp.sum(p.sum(axis=(2, 3)) * jnp.arange(W, dtype=jnp.float32), axis=-1)
    y = jnp.sum(p.sum(axis=(2, 4)) * jnp.arange(H, dtype=jnp.float32), axis=-1)
    z = jnp.sum(p.sum(axis=(3, 4)) * jnp.arange(D, dtype=jnp.float32), axis=-1)
    return jnp.stack([x, y, z], axis=-1)


if __name__ == "__main__":
    key = jax.random.PRNGKey(0)
    k1, k2, k3 = jax.random.split(key, 3)

    H, W = 8, 8
    # Deterministic synthetic conv params (Conv2d-style uniform init).
    bound = 1.0 / (IN_CH ** 0.5)
    conv_w = jax.random.uniform(k2, (OUT_CH, IN_CH, 1, 1), jnp.float32, -bound, bound)
    conv_b = jax.random.uniform(k3, (OUT_CH,), jnp.float32, -bound, bound)

    fwd = jax.jit(position_net_forward)

    # N=2 exercises bt=2 / grid=1; N=4 exercises bt=2 / grid=2 (multi-step grid,
    # per-sample segmentation inside a step, and the megacore-friendly split).
    for N in (2, 4):
        feat = jax.random.normal(jax.random.fold_in(k1, N),
                                 (N, IN_CH, H, W), jnp.float32)
        coord = jax.block_until_ready(fwd(feat, conv_w, conv_b))
        assert coord.shape == (N, JOINT_NUM, 3), coord.shape

        ref_matched = _reference(feat, conv_w, conv_b, cast_bf16=True)
        ref_f32 = _reference(feat, conv_w, conv_b, cast_bf16=False)
        err_matched = float(jnp.max(jnp.abs(coord - ref_matched)))
        err_f32 = float(jnp.max(jnp.abs(coord - ref_f32)))
        assert err_matched < 1e-3, (N, err_matched)   # same-math check
        assert err_f32 < 5e-2, (N, err_f32)           # bf16-conv vs f32 module check

    print("KERNEL_OK")
</pallas_src>

<mosaic_0001>
module attributes {stable_mosaic.version = 11 : i64} {
  func.func @_position_net_kernel(%arg0: i32, %arg1: memref<2048x128xbf16, #tpu.memory_space<vmem>>, %arg2: memref<168x2048xbf16, #tpu.memory_space<vmem>>, %arg3: memref<168x1xf32, #tpu.memory_space<vmem>>, %arg4: memref<128x6xf32, #tpu.memory_space<vmem>>, %arg5: memref<2x21x3xf32, #tpu.memory_space<vmem>>) attributes {dimension_semantics = [#tpu.dimension_semantics<parallel>], iteration_bounds = array<i64: 1>, scalar_prefetch = 0 : i64, scratch_operands = 0 : i64, tpu.core_type = #tpu.core_type<tc>, window_params = [{transform_indices = @transform_0, window_bounds = array<i64: 2048, 128>}, {pipeline_mode = #tpu.pipeline_mode<synchronous>, transform_indices = @transform_1, window_bounds = array<i64: 168, 2048>}, {pipeline_mode = #tpu.pipeline_mode<synchronous>, transform_indices = @transform_2, window_bounds = array<i64: 168, 1>}, {pipeline_mode = #tpu.pipeline_mode<synchronous>, transform_indices = @transform_3, window_bounds = array<i64: 128, 6>}, {transform_indices = @transform_4, window_bounds = array<i64: 2, 21, 3>}]} {
    %c0 = arith.constant 0 : index
    %c0_0 = arith.constant 0 : index
    %0 = vector.load %arg2[%c0, %c0_0] : memref<168x2048xbf16, #tpu.memory_space<vmem>>, vector<168x2048xbf16>
    %c0_1 = arith.constant 0 : index
    %c0_2 = arith.constant 0 : index
    %1 = vector.load %arg1[%c0_1, %c0_2] : memref<2048x128xbf16, #tpu.memory_space<vmem>>, vector<2048x128xbf16>
    %cst = arith.constant dense<0.000000e+00> : vector<168x128xf32>
    %2 = tpu.matmul %0, %1, %cst {dimension_numbers = #tpu.dot_dimension_numbers<[1], [0], [0], [1], [0, 0, 1, 1], [], []>} : vector<168x2048xbf16>, vector<2048x128xbf16>, vector<168x128xf32> -> vector<168x128xf32>
    %c0_3 = arith.constant 0 : index
    %c0_4 = arith.constant 0 : index
    %3 = vector.load %arg3[%c0_3, %c0_4] : memref<168x1xf32, #tpu.memory_space<vmem>>, vector<168x1xf32>
    %4 = vector.broadcast %3 : vector<168x1xf32> to vector<168x128xf32>
    %5 = arith.addf %2, %4 : vector<168x128xf32>
    %6 = vector.shape_cast %5 : vector<168x128xf32> to vector<21x8x128xf32>
    %cst_5 = arith.constant dense<0xFF800000> : vector<21x128xf32>
    %7 = vector.multi_reduction <maximumf>, %6, %cst_5 [1] : vector<21x8x128xf32> to vector<21x128xf32>
    %8 = vector.extract_strided_slice %7 {offsets = [0, 0], sizes = [21, 64], strides = [1, 1]} : vector<21x128xf32> to vector<21x64xf32>
    %cst_6 = arith.constant dense<0xFF800000> : vector<21xf32>
    %9 = vector.multi_reduction <maximumf>, %8, %cst_6 [1] : vector<21x64xf32> to vector<21xf32>
    %10 = vector.shape_cast %9 : vector<21xf32> to vector<21x1xf32>
    %11 = vector.shape_cast %10 : vector<21x1xf32> to vector<21x1xf32>
    %12 = vector.broadcast %11 : vector<21x1xf32> to vector<21x64xf32>
    %13 = vector.extract_strided_slice %7 {offsets = [0, 64], sizes = [21, 64], strides = [1, 1]} : vector<21x128xf32> to vector<21x64xf32>
    %cst_7 = arith.constant dense<0xFF800000> : vector<21xf32>
    %14 = vector.multi_reduction <maximumf>, %13, %cst_7 [1] : vector<21x64xf32> to vector<21xf32>
    %15 = vector.shape_cast %14 : vector<21xf32> to vector<21x1xf32>
    %16 = vector.shape_cast %15 : vector<21x1xf32> to vector<21x1xf32>
    %17 = vector.broadcast %16 : vector<21x1xf32> to vector<21x64xf32>
    %18 = tpu.concatenate %12, %17 in 1 : vector<21x64xf32>, vector<21x64xf32> -> vector<21x128xf32>
    %19 = vector.shape_cast %18 : vector<21x128xf32> to vector<21x1x128xf32>
    %20 = vector.broadcast %19 : vector<21x1x128xf32> to vector<21x8x128xf32>
    %21 = arith.subf %6, %20 : vector<21x8x128xf32>
    %22 = math.exp %21 : vector<21x8x128xf32>
    %23 = tpu.iota {dimensions = array<i32: 1>} : vector<1x8x128xi32>
    %24 = arith.sitofp %23 : vector<1x8x128xi32> to vector<1x8x128xf32>
    %cst_8 = arith.constant dense<0.000000e+00> : vector<21x128xf32>
    %25 = vector.multi_reduction <add>, %22, %cst_8 [1] : vector<21x8x128xf32> to vector<21x128xf32>
    %26 = vector.broadcast %24 : vector<1x8x128xf32> to vector<21x8x128xf32>
    %27 = arith.mulf %22, %26 : vector<21x8x128xf32>
    %cst_9 = arith.constant dense<0.000000e+00> : vector<21x128xf32>
    %28 = vector.multi_reduction <add>, %27, %cst_9 [1] : vector<21x8x128xf32> to vector<21x128xf32>
    %29 = tpu.concatenate %25, %28 in 0 : vector<21x128xf32>, vector<21x128xf32> -> vector<42x128xf32>
    %c0_10 = arith.constant 0 : index
    %c0_11 = arith.constant 0 : index
    %30 = vector.load %arg4[%c0_10, %c0_11] : memref<128x6xf32, #tpu.memory_space<vmem>>, vector<128x6xf32>
    %cst_12 = arith.constant dense<0.000000e+00> : vector<42x6xf32>
    %31 = tpu.matmul %29, %30, %cst_12 {dimension_numbers = #tpu.dot_dimension_numbers<[1], [0], [0], [1], [0, 0, 1, 1], [], []>} : vector<42x128xf32>, vector<128x6xf32>, vector<42x6xf32> -> vector<42x6xf32>
    %32 = vector.extract_strided_slice %31 {offsets = [0, 0], sizes = [21, 2], strides = [1, 1]} : vector<42x6xf32> to vector<21x2xf32>
    %33 = vector.extract_strided_slice %31 {offsets = [0, 2], sizes = [21, 2], strides = [1, 1]} : vector<42x6xf32> to vector<21x2xf32>
    %34 = vector.extract_strided_slice %31 {offsets = [0, 4], sizes = [21, 2], strides = [1, 1]} : vector<42x6xf32> to vector<21x2xf32>
    %35 = vector.extract_strided_slice %31 {offsets = [21, 0], sizes = [21, 2], strides = [1, 1]} : vector<42x6xf32> to vector<21x2xf32>
    %36 = tpu.reciprocal %32 : vector<21x2xf32> -> vector<21x2xf32>
    %37 = arith.mulf %33, %36 : vector<21x2xf32>
    %38 = arith.mulf %34, %36 : vector<21x2xf32>
    %39 = arith.mulf %35, %36 : vector<21x2xf32>
    %40 = vector.extract_strided_slice %37 {offsets = [0, 0], sizes = [21, 1], strides = [1, 1]} : vector<21x2xf32> to vector<21x1xf32>
    %41 = vector.extract_strided_slice %38 {offsets = [0, 0], sizes = [21, 1], strides = [1, 1]} : vector<21x2xf32> to vector<21x1xf32>
    %42 = vector.extract_strided_slice %39 {offsets = [0, 0], sizes = [21, 1], strides = [1, 1]} : vector<21x2xf32> to vector<21x1xf32>
    %43 = tpu.concatenate %40, %41, %42 in 1 : vector<21x1xf32>, vector<21x1xf32>, vector<21x1xf32> -> vector<21x3xf32>
    %c0_13 = arith.constant 0 : index
    %c0_14 = arith.constant 0 : index
    %c0_15 = arith.constant 0 : index
    %44 = vector.load %arg5[%c0_13, %c0_14, %c0_15] : memref<2x21x3xf32, #tpu.memory_space<vmem>>, vector<1x21x3xf32>
    %45 = vector.shape_cast %44 : vector<1x21x3xf32> to vector<21x3xf32>
    %46 = vector.shape_cast %43 : vector<21x3xf32> to vector<1x21x3xf32>
    tpu.vector_store %arg5[%c0_13, %c0_14, %c0_15], %46 {strides = array<i32>} : memref<2x21x3xf32, #tpu.memory_space<vmem>>, vector<1x21x3xf32>,
    %47 = vector.extract_strided_slice %37 {offsets = [0, 1], sizes = [21, 1], strides = [1, 1]} : vector<21x2xf32> to vector<21x1xf32>
    %48 = vector.extract_strided_slice %38 {offsets = [0, 1], sizes = [21, 1], strides = [1, 1]} : vector<21x2xf32> to vector<21x1xf32>
    %49 = vector.extract_strided_slice %39 {offsets = [0, 1], sizes = [21, 1], strides = [1, 1]} : vector<21x2xf32> to vector<21x1xf32>
    %50 = tpu.concatenate %47, %48, %49 in 1 : vector<21x1xf32>, vector<21x1xf32>, vector<21x1xf32> -> vector<21x3xf32>
    %c1 = arith.constant 1 : index
    %c0_16 = arith.constant 0 : index
    %c0_17 = arith.constant 0 : index
    %51 = vector.load %arg5[%c1, %c0_16, %c0_17] : memref<2x21x3xf32, #tpu.memory_space<vmem>>, vector<1x21x3xf32>
    %52 = vector.shape_cast %51 : vector<1x21x3xf32> to vector<21x3xf32>
    %53 = vector.shape_cast %50 : vector<21x3xf32> to vector<1x21x3xf32>
    tpu.vector_store %arg5[%c1, %c0_16, %c0_17], %53 {strides = array<i32>} : memref<2x21x3xf32, #tpu.memory_space<vmem>>, vector<1x21x3xf32>,
    return
  }
  func.func @transform_0(%arg0: i32) -> (i32, i32) {
    %c0_i32 = arith.constant 0 : i32
    %c0_i32_0 = arith.constant 0 : i32
    return %c0_i32, %arg0 : i32, i32
  }
  func.func @transform_1(%arg0: i32) -> (i32, i32) {
    %c0_i32 = arith.constant 0 : i32
    %c0_i32_0 = arith.constant 0 : i32
    %c0_i32_1 = arith.constant 0 : i32
    return %c0_i32, %c0_i32_0 : i32, i32
  }
  func.func @transform_2(%arg0: i32) -> (i32, i32) {
    %c0_i32 = arith.constant 0 : i32
    %c0_i32_0 = arith.constant 0 : i32
    %c0_i32_1 = arith.constant 0 : i32
    return %c0_i32, %c0_i32_0 : i32, i32
  }
  func.func @transform_3(%arg0: i32) -> (i32, i32) {
    %c0_i32 = arith.constant 0 : i32
    %c0_i32_0 = arith.constant 0 : i32
    %c0_i32_1 = arith.constant 0 : i32
    return %c0_i32, %c0_i32_0 : i32, i32
  }
  func.func @transform_4(%arg0: i32) -> (i32, i32, i32) {
    %c0_i32 = arith.constant 0 : i32
    %c0_i32_0 = arith.constant 0 : i32
    %c0_i32_1 = arith.constant 0 : i32
    return %arg0, %c0_i32, %c0_i32_0 : i32, i32, i32
  }
}

</mosaic_0001>

<bundles_post_ra>
// kernel: position_net_forward.1
= control target key start
LH: loop header
LB: loop body
LE: loop exit
PB: predicated region body
PF: predicated region fallthrough
CT: control target
= control target key end

     0   :  { %v5551_v1 = vmov 0   ;;  %vm3299_vm0 = vcmask 1041409   ;;  %vm3301_vm1 = vcmask 1042434   ;;  %vm3303_vm2 = vcmask 1043459   ;;  %s5554_s9 = smov 4   ;;  %s5555_s10 = smov 1   ;;  %s7222_s0 = inlined_call_operand.vmem [shape: bf16[2048,128], index: 0, kind: input, shape index: {}]   ;;  %s7223_s1 = inlined_call_operand.vmem [shape: bf16[168,2048], index: 1, kind: input, shape index: {}]   ;;  %s7224_s2 = inlined_call_operand.vmem [shape: f32[168,1], index: 2, kind: input, shape index: {}]   ;;  %s7225_s3 = inlined_call_operand.vmem [shape: f32[128,6], index: 3, kind: input, shape index: {}]   ;;  %s7226_s4 = inlined_call_operand.vmem [shape: f32[2,21,3], index: 4, kind: output, shape index: {}]  }
   0x1   :  { %v5359_v0 = vld [vmem:[%s7222_s0 + $0x40] sm:$0xff]   ;;  %5357 = vset.pattern.permute.xlu0 %v5551_v1  ;;  %5358 = vset.pattern.permute.xlu1 %v5551_v1  ;;  %v5363_v5 = vld [vmem:[%s7222_s0 + $0x48] sm:$0xff]   ;;  %v5367_v9 = vld [vmem:[%s7222_s0 + $0x50] sm:$0xff]   ;;  %vm3305_vm3 = vcmask 1044484   ;;  %vm3307_vm4 = vcmask 1045509   ;;  %vm3309_vm5 = vcmask 1046534  }
   0x2   :  { %v5360_v2 = vld [vmem:[%s7222_s0 + $0xc0] sm:$0xff]   ;;  %4582 = vmatprep.subr.bf16.mxu0 %v5359_v0  ;;  %v5364_v6 = vld [vmem:[%s7222_s0 + $0xc8] sm:$0xff]   ;;  %v5368_v10 = vld [vmem:[%s7222_s0 + $0xd0] sm:$0xff]   ;;  %vm3311_vm6 = vcmask 1047559   ;;  %vm3338_vm7 = vcmask 1048064   ;;  %vm3327_vm8 = vcmask 523264  }
   0x3   :  { %v5361_v3 = vld [vmem:[%s7222_s0] sm:$0xff]   ;;  %4664 = vmatprep.subr.bf16.mxu1 %v5360_v2  ;;  %v5365_v7 = vld [vmem:[%s7222_s0 + $0x8] sm:$0xff]   ;;  %v5369_v11 = vld [vmem:[%s7222_s0 + $0x10] sm:$0xff]   ;;  %vm3334_vm9 = vcmask 520192   ;;  %vm3345_vm10 = vcmask 1044992   ;;  %vm4020_vm11 = vcmask 1044480  }
   0x4   :  { %v5362_v4 = vld [vmem:[%s7222_s0 + $0x80] sm:$0xff]   ;;  %4583 = vmatpush3.bf16.msra.mxu0 %v5361_v3  ;;  %v5366_v8 = vld [vmem:[%s7222_s0 + $0x88] sm:$0xff]   ;;  %v5370_v12 = vld [vmem:[%s7222_s0 + $0x90] sm:$0xff]   ;;  %vm4204_vm12 = vcmask 1042432   ;;  %s5556_s11 = smov 126   ;;  %s5557_s12 = smov 125  }
   0x5   :  { %4665 = vmatpush3.bf16.msra.mxu1 %v5362_v4  ;;  %4584 = vmatprep.subr.bf16.mxu0 %v5363_v5  ;;  %v5371_v13 = vld [vmem:[%s7222_s0 + $0x58] sm:$0xff]   ;;  %v5375_v17 = vld [vmem:[%s7222_s0 + $0x60] sm:$0xff]   ;;  %v5379_v21 = vld [vmem:[%s7222_s0 + $0x68] sm:$0xff]   ;;  %s5558_s13 = smov 124   ;;  %vm4221_vm13 = vcmask 7168   ;;  %vm4225_vm14 = vcmask 15360  }
   0x6   :  { %4666 = vmatprep.subr.bf16.mxu1 %v5364_v6  ;;  %v5372_v14 = vld [vmem:[%s7222_s0 + $0xd8] sm:$0xff]   ;;  %v5376_v18 = vld [vmem:[%s7222_s0 + $0xe0] sm:$0xff]   ;;  %v5380_v22 = vld [vmem:[%s7222_s0 + $0xe8] sm:$0xff]   ;;  %vm4229_vm15 = vcmask 23552  }
   0x7   :  { %v5373_v15 = vld [vmem:[%s7222_s0 + $0x18] sm:$0xff]   ;;  %v5377_v19 = vld [vmem:[%s7222_s0 + $0x20] sm:$0xff]   ;;  %v5381_v23 = vld [vmem:[%s7222_s0 + $0x28] sm:$0xff]  }
   0x8   :  { %4585 = vmatpush3.bf16.msra.mxu0 %v5365_v7  ;;  %v5374_v16 = vld [vmem:[%s7222_s0 + $0x98] sm:$0xff]   ;;  %v5378_v20 = vld [vmem:[%s7222_s0 + $0xa0] sm:$0xff]   ;;  %v5382_v24 = vld [vmem:[%s7222_s0 + $0xa8] sm:$0xff]  }
   0x9   :  { %4667 = vmatpush3.bf16.msra.mxu1 %v5366_v8  ;;  %4586 = vmatprep.subr.bf16.mxu0 %v5367_v9  ;;  %v5383_v25 = vld [vmem:[%s7222_s0 + $0x70] sm:$0xff]   ;;  %v5387_v29 = vld [vmem:[%s7222_s0 + $0x78] sm:$0xff]   ;;  %v18_v33 = vld [vmem:[%s7223_s1] sm:$0xff] }
   0xa   :  { %4668 = vmatprep.subr.bf16.mxu1 %v5368_v10  ;;  %v5384_v26 = vld [vmem:[%s7222_s0 + $0xf0] sm:$0xff]   ;;  %v5388_v30 = vld [vmem:[%s7222_s0 + $0xf8] sm:$0xff]   ;;  %v26_v34 = vld [vmem:[%s7223_s1 + $0x40] sm:$0xff] }
   0xb   :  { %v5385_v27 = vld [vmem:[%s7222_s0 + $0x30] sm:$0xff]   ;;  %v5389_v31 = vld [vmem:[%s7222_s0 + $0x38] sm:$0xff]   ;;  %v19_v35 = vld [vmem:[%s7223_s1 + $0x8] sm:$0xff]  ;;  %v4275_v36 = vcombine.low %v18_v33, %v26_v34  ;;  %v4276_v37 = vcombine.high %v18_v33, %v26_v34 }
   0xc   :  { %4587 = vmatpush3.bf16.msra.mxu0 %v5369_v11  ;;  %v5386_v28 = vld [vmem:[%s7222_s0 + $0xb0] sm:$0xff]   ;;  %v5390_v32 = vld [vmem:[%s7222_s0 + $0xb8] sm:$0xff]   ;;  %v27_v38 = vld [vmem:[%s7223_s1 + $0x48] sm:$0xff] }
   0xd   :  { %4669 = vmatpush3.bf16.msra.mxu1 %v5370_v12  ;;  %4588 = vmatprep.subr.bf16.mxu0 %v5371_v13  ;;  %v4277_v39 = vcombine.low %v19_v35, %v27_v38  ;;  %v4278_v40 = vcombine.high %v19_v35, %v27_v38  ;;  %v5391_v41 = vld [vmem:[%s7222_s0 + $0x140] sm:$0xff]   ;;  %v35_v48 = vld [vmem:[%s7223_s1 + $0x88] sm:$0xff]  ;;  %v5399_v63 = vld [vmem:[%s7222_s0 + $0x150] sm:$0xff]  }
   0xe   :  { %4670 = vmatprep.subr.bf16.mxu1 %v5372_v14  ;;  %2224 = vmatprep.mubr.bf16.mxu0 %v4276_v37  ;;  %v5392_v42 = vld [vmem:[%s7222_s0 + $0x100] sm:$0xff]   ;;  %v43_v49 = vld [vmem:[%s7223_s1 + $0xc8] sm:$0xff]  ;;  %v5400_v4 = vld [vmem:[%s7222_s0 + $0x110] sm:$0xff]  }
   0xf   :  { %2344 = vmatprep.mubr.bf16.mxu1 %v4278_v40  ;;  %v5393_v43 = vld [vmem:[%s7222_s0 + $0x1c0] sm:$0xff]   ;;  %v4294_v50 = vcombine.high %v35_v48, %v43_v49  ;;  %v5395_v51 = vld [vmem:[%s7222_s0 + $0x148] sm:$0xff]   ;;  %v4293_v54 = vcombine.low %v35_v48, %v43_v49  ;;  %v5401_v6 = vld [vmem:[%s7222_s0 + $0x1d0] sm:$0xff]  }
  0x10   :  { %4589 = vmatpush3.bf16.msra.mxu0 %v5373_v15  ;;  %v5394_v44 = vld [vmem:[%s7222_s0 + $0x180] sm:$0xff]   ;;  %v5396_v53 = vld [vmem:[%s7222_s0 + $0x108] sm:$0xff]   ;;  %v5402_v9 = vld [vmem:[%s7222_s0 + $0x190] sm:$0xff]  }
  0x11   :  { %4671 = vmatpush3.bf16.msra.mxu1 %v5374_v16  ;;  %4590 = vmatprep.subr.bf16.mxu0 %v5375_v17  ;;  %v34_v45 = vld [vmem:[%s7223_s1 + $0x80] sm:$0xff]  ;;  %v5397_v55 = vld [vmem:[%s7222_s0 + $0x1c8] sm:$0xff]   ;;  %v5403_v11 = vld [vmem:[%s7222_s0 + $0x158] sm:$0xff]  }
  0x12   :  { %4672 = vmatprep.subr.bf16.mxu1 %v5376_v18  ;;  %v42_v46 = vld [vmem:[%s7223_s1 + $0xc0] sm:$0xff]  ;;  %v5398_v56 = vld [vmem:[%s7222_s0 + $0x188] sm:$0xff]   ;;  %v5404_v13 = vld [vmem:[%s7222_s0 + $0x118] sm:$0xff]  }
  0x13   :  { %v4292_v47 = vcombine.high %v34_v45, %v42_v46  ;;  %v4291_v52 = vcombine.low %v34_v45, %v42_v46  ;;  %v50_v57 = vld [vmem:[%s7223_s1 + $0x100] sm:$0xff]  ;;  %v51_v59 = vld [vmem:[%s7223_s1 + $0x108] sm:$0xff]  ;;  %v5405_v14 = vld [vmem:[%s7222_s0 + $0x1d8] sm:$0xff]  }
  0x14   :  { %4591 = vmatpush3.bf16.msra.mxu0 %v5377_v19  ;;  %v58_v58 = vld [vmem:[%s7223_s1 + $0x140] sm:$0xff]  ;;  %v59_v60 = vld [vmem:[%s7223_s1 + $0x148] sm:$0xff]  ;;  %v5406_v16 = vld [vmem:[%s7222_s0 + $0x198] sm:$0xff]  }
  0x15   :  { %4673 = vmatpush3.bf16.msra.mxu1 %v5378_v20  ;;  %4592 = vmatprep.subr.bf16.mxu0 %v5379_v21  ;;  %v4308_v61 = vcombine.high %v50_v57, %v58_v58  ;;  %v4310_v62 = vcombine.high %v51_v59, %v59_v60  ;;  %v66_v0 = vld [vmem:[%s7223_s1 + $0x180] sm:$0xff]  ;;  %v67_v2 = vld [vmem:[%s7223_s1 + $0x188] sm:$0xff]  ;;  %v4307_v5 = vcombine.low %v50_v57, %v58_v58  ;;  %v5417_v45 = vld [vmem:[%s7222_s0 + $0x1f0] sm:$0xff]  }
  0x16   :  { %4674 = vmatprep.subr.bf16.mxu1 %v5380_v22  ;;  %v74_v1 = vld [vmem:[%s7223_s1 + $0x1c0] sm:$0xff]  ;;  %v75_v3 = vld [vmem:[%s7223_s1 + $0x1c8] sm:$0xff]  ;;  %v4309_v7 = vcombine.low %v51_v59, %v59_v60  ;;  %v5418_v46 = vld [vmem:[%s7222_s0 + $0x1b0] sm:$0xff]  }
  0x17   :  { %v4324_v8 = vcombine.high %v66_v0, %v74_v1  ;;  %v4326_v10 = vcombine.high %v67_v2, %v75_v3  ;;  %v82_v12 = vld [vmem:[%s7223_s1 + $0x200] sm:$0xff]  ;;  %v83_v17 = vld [vmem:[%s7223_s1 + $0x208] sm:$0xff]  ;;  %v4323_v19 = vcombine.low %v66_v0, %v74_v1  ;;  %v4325_v21 = vcombine.low %v67_v2, %v75_v3  ;;  %v444_v3 = vld [vmem:[%s7224_s2 + $0x10] sm:$0xff] }
  0x18   :  { %4593 = vmatpush3.bf16.msra.mxu0 %v5381_v23  ;;  %v90_v15 = vld [vmem:[%s7223_s1 + $0x240] sm:$0xff]  ;;  %v91_v18 = vld [vmem:[%s7223_s1 + $0x248] sm:$0xff]  ;;  %475 = vperm.xlu1 %5358, %v444_v3   ;;  %v61_v3 = vld [vmem:[%s7223_s1 + $0x158] sm:$0xff] }
  0x19   :  { %4675 = vmatpush3.bf16.msra.mxu1 %v5382_v24  ;;  %4594 = vmatprep.subr.bf16.mxu0 %v5383_v25  ;;  %v5407_v20 = vld [vmem:[%s7222_s0 + $0x160] sm:$0xff]   ;;  %v4340_v22 = vcombine.high %v82_v12, %v90_v15  ;;  %v4342_v24 = vcombine.high %v83_v17, %v91_v18  ;;  %v5412_v33 = vld [vmem:[%s7222_s0 + $0x128] sm:$0xff]   ;;  %v4341_v34 = vcombine.low %v83_v17, %v91_v18 }
  0x1a   :  { %4676 = vmatprep.subr.bf16.mxu1 %v5384_v26  ;;  %v5408_v23 = vld [vmem:[%s7222_s0 + $0x120] sm:$0xff]   ;;  %v5414_v38 = vld [vmem:[%s7222_s0 + $0x1a8] sm:$0xff]  }
  0x1b   :  { %v5409_v25 = vld [vmem:[%s7222_s0 + $0x1e0] sm:$0xff]   ;;  %v131_v58 = vld [vmem:[%s7223_s1 + $0x388] sm:$0xff] }
  0x1c   :  { %4595 = vmatpush3.bf16.msra.mxu0 %v5385_v27  ;;  %v98_v26 = vld [vmem:[%s7223_s1 + $0x280] sm:$0xff]  ;;  %v139_v59 = vld [vmem:[%s7223_s1 + $0x3c8] sm:$0xff] }
  0x1d   :  { %4677 = vmatpush3.bf16.msra.mxu1 %v5386_v28  ;;  %4596 = vmatprep.subr.bf16.mxu0 %v5387_v29  ;;  %v106_v27 = vld [vmem:[%s7223_s1 + $0x2c0] sm:$0xff]  ;;  %v99_v29 = vld [vmem:[%s7223_s1 + $0x288] sm:$0xff]  ;;  %v4390_v1 = vcombine.high %v131_v58, %v139_v59 }
  0x1e   :  { %4678 = vmatprep.subr.bf16.mxu1 %v5388_v30  ;;  %v5410_v28 = vld [vmem:[%s7222_s0 + $0x1a0] sm:$0xff]   ;;  %v107_v30 = vld [vmem:[%s7223_s1 + $0x2c8] sm:$0xff]  ;;  %v4356_v35 = vcombine.high %v98_v26, %v106_v27 }
  0x1f   :  { %v4358_v37 = vcombine.high %v99_v29, %v107_v30  ;;  %v122_v40 = vld [vmem:[%s7223_s1 + $0x340] sm:$0xff]  ;;  %v4357_v48 = vcombine.low %v99_v29, %v107_v30  ;;  %v163_v18 = vld [vmem:[%s7223_s1 + $0x488] sm:$0xff]  ;;  %v452_v30 = vld [vmem:[%s7224_s2 + $0x50] sm:$0xff] }
  0x20   :  { %4597 = vmatpush3.bf16.msra.mxu0 %v5389_v31  ;;  %v5411_v31 = vld [vmem:[%s7222_s0 + $0x168] sm:$0xff]   ;;  %v442_v57 = vld [vmem:[%s7224_s2] sm:$0xff] }
  0x21   :  { %4679 = vmatpush3.bf16.msra.mxu1 %v5390_v32  ;;  %4746 = vmatprep.subr.bf16.mxu0 %v5391_v41  ;;  %v4339_v32 = vcombine.low %v82_v12, %v90_v15  ;;  %v5415_v41 = vld [vmem:[%s7222_s0 + $0x170] sm:$0xff]   ;;  %v5429_v2 = vld [vmem:[%s7222_s0 + $0x2c0] sm:$0xff]  }
  0x22   :  { %4828 = vmatprep.subr.bf16.mxu1 %v5393_v43  ;;  %v123_v43 = vld [vmem:[%s7223_s1 + $0x348] sm:$0xff]  ;;  %465 = vperm.xlu0 %5357, %v442_v57   ;;  %v450_v15 = vld [vmem:[%s7224_s2 + $0x40] sm:$0xff] }
  0x23   :  { %2225 = vmatmul.mubr.bf16.vlgmr.msra.gmra.mrb[0].mxu0 %v4275_v36  ;;  %v5413_v36 = vld [vmem:[%s7222_s0 + $0x1e8] sm:$0xff]   ;;  %v170_v17 = vld [vmem:[%s7223_s1 + $0x4c0] sm:$0xff] }
  0x24   :  { %2345 = vmatmul.mubr.bf16.vlgmr.msra.gmra.mrb[0].mxu1 %v4277_v39  ;;  %4747 = vmatpush3.bf16.msra.mxu0 %v5392_v42  ;;  %v114_v39 = vld [vmem:[%s7223_s1 + $0x300] sm:$0xff]  ;;  %v115_v42 = vld [vmem:[%s7223_s1 + $0x308] sm:$0xff] }
  0x25   :  { %4829 = vmatpush3.bf16.msra.mxu1 %v5394_v44  ;;  %2232 = vmatprep.mubr.bf16.mxu0 %v4292_v47  ;;  %v5416_v44 = vld [vmem:[%s7222_s0 + $0x130] sm:$0xff]   ;;  %v4355_v47 = vcombine.low %v98_v26, %v106_v27  ;;  %v4372_v49 = vcombine.high %v114_v39, %v122_v40  ;;  %v4371_v60 = vcombine.low %v114_v39, %v122_v40  ;;  %v449_v26 = vld [vmem:[%s7224_s2 + $0x38] sm:$0xff]  ;;  %v178_v27 = vld [vmem:[%s7223_s1 + $0x500] sm:$0xff] }
  0x26   :  { %2352 = vmatprep.mubr.bf16.mxu1 %v4294_v50  ;;  %4748 = vmatprep.subr.bf16.mxu0 %v5395_v51  ;;  %v4374_v50 = vcombine.high %v115_v42, %v123_v43  ;;  %v5419_v51 = vld [vmem:[%s7222_s0 + $0x178] sm:$0xff]   ;;  %v455_v40 = vld [vmem:[%s7224_s2 + $0x68] sm:$0xff] }
  0x27   :  { %4830 = vmatprep.subr.bf16.mxu1 %v5397_v55  ;;  %v130_v55 = vld [vmem:[%s7223_s1 + $0x380] sm:$0xff]  ;;  %v29_v39 = vld [vmem:[%s7223_s1 + $0x58] sm:$0xff]  ;;  %v5431_v57 = vld [vmem:[%s7222_s0 + $0x248] sm:$0xff]  }
  0x28   :  { %4749 = vmatpush3.bf16.msra.mxu0 %v5396_v53  ;;  %v5423_v53 = vld [vmem:[%s7222_s0 + $0x1f8] sm:$0xff]  }
  0x29   :  { %4831 = vmatpush3.bf16.msra.mxu1 %v5398_v56  ;;  %4750 = vmatprep.subr.bf16.mxu0 %v5399_v63  ;;  %v138_v56 = vld [vmem:[%s7223_s1 + $0x3c0] sm:$0xff]  ;;  %v4373_v63 = vcombine.low %v115_v42, %v123_v43 }
  0x2a   :  { %4832 = vmatprep.subr.bf16.mxu1 %v5401_v6  ;;  %v4388_v0 = vcombine.high %v130_v55, %v138_v56  ;;  %v147_v6 = vld [vmem:[%s7223_s1 + $0x408] sm:$0xff]  ;;  %v458_v42 = vld [vmem:[%s7224_s2 + $0x80] sm:$0xff] }
  0x2b   :  { %2233 = vmatmul.mubr.bf16.gmra.mrb[4].mxu0 %v4291_v52  ;;  %v5420_v52 = vld [vmem:[%s7222_s0 + $0x138] sm:$0xff]  }
  0x2c   :  { %2353 = vmatmul.mubr.bf16.gmra.mrb[4].mxu1 %v4293_v54  ;;  %2240 = vmatprep.mubr.bf16.mxu0 %v4308_v61  ;;  %v5426_v54 = vld [vmem:[%s7222_s0 + $0x1b8] sm:$0xff]   ;;  %v5427_v61 = vld [vmem:[%s7222_s0 + $0x240] sm:$0xff]  }
  0x2d   :  { %2360 = vmatprep.mubr.bf16.mxu1 %v4310_v62  ;;  %4751 = vmatpush3.bf16.msra.mxu0 %v5400_v4  ;;  %v443_v62 = vld [vmem:[%s7224_s2 + $0x8] sm:$0xff]  ;;  %v146_v4 = vld [vmem:[%s7223_s1 + $0x400] sm:$0xff] }
  0x2e   :  { %4833 = vmatpush3.bf16.msra.mxu1 %v5402_v9  ;;  %4752 = vmatprep.subr.bf16.mxu0 %v5403_v11  ;;  %v4387_v9 = vcombine.low %v130_v55, %v138_v56  ;;  %v4389_v11 = vcombine.low %v131_v58, %v139_v59  ;;  %v45_v55 = vld [vmem:[%s7223_s1 + $0xd8] sm:$0xff]  ;;  %v5433_v59 = vld [vmem:[%s7222_s0 + $0x2c8] sm:$0xff]  }
  0x2f   :  { %4834 = vmatprep.subr.bf16.mxu1 %v5405_v14  ;;  %470 = vperm.xlu0 %5357, %v443_v62   ;;  %v447_v14 = vld [vmem:[%s7224_s2 + $0x28] sm:$0xff]  ;;  %v460_v62 = vld [vmem:[%s7224_s2 + $0x90] sm:$0xff] }
  0x31   :  { %4753 = vmatpush3.bf16.msra.mxu0 %v5404_v13 }
  0x32   :  { %4835 = vmatpush3.bf16.msra.mxu1 %v5406_v16  ;;  %4754 = vmatprep.subr.bf16.mxu0 %v5407_v20  ;;  %v162_v16 = vld [vmem:[%s7223_s1 + $0x480] sm:$0xff] }
  0x33   :  { %2241 = vmatmul.mubr.bf16.gmra.mrb[8].mxu0 %v4307_v5  ;;  %4836 = vmatprep.subr.bf16.mxu1 %v5409_v25  ;;  %v154_v5 = vld [vmem:[%s7223_s1 + $0x440] sm:$0xff]  ;;  %v451_v25 = vld [vmem:[%s7224_s2 + $0x48] sm:$0xff]  ;;  %v4419_v29 = vcombine.low %v162_v16, %v170_v17 }
  0x34   :  { %2361 = vmatmul.mubr.bf16.gmra.mrb[8].mxu1 %v4309_v7  ;;  %2248 = vmatprep.mubr.bf16.mxu0 %v4324_v8  ;;  %v155_v7 = vld [vmem:[%s7223_s1 + $0x448] sm:$0xff]  ;;  %v445_v8 = vld [vmem:[%s7224_s2 + $0x18] sm:$0xff]  ;;  %v4404_v12 = vcombine.high %v146_v4, %v154_v5  ;;  %v4403_v20 = vcombine.low %v146_v4, %v154_v5  ;;  %v5435_v5 = vld [vmem:[%s7222_s0 + $0x250] sm:$0xff]  }
  0x35   :  { %2368 = vmatprep.mubr.bf16.mxu1 %v4326_v10  ;;  %4755 = vmatpush3.bf16.msra.mxu0 %v5408_v23  ;;  %v446_v10 = vld [vmem:[%s7224_s2 + $0x20] sm:$0xff]  ;;  %v4406_v13 = vcombine.high %v147_v6, %v155_v7  ;;  %v4420_v23 = vcombine.high %v162_v16, %v170_v17  ;;  %v461_v4 = vld [vmem:[%s7224_s2 + $0x98] sm:$0xff]  ;;  %v76_v16 = vld [vmem:[%s7223_s1 + $0x1d0] sm:$0xff] }
  0x36   :  { %4837 = vmatpush3.bf16.msra.mxu1 %v5410_v28  ;;  %4756 = vmatprep.subr.bf16.mxu0 %v5411_v31  ;;  %v179_v28 = vld [vmem:[%s7223_s1 + $0x508] sm:$0xff]  ;;  %v5441_v17 = vld [vmem:[%s7222_s0 + $0x2d8] sm:$0xff]  }
  0x37   :  { %4838 = vmatprep.subr.bf16.mxu1 %v5413_v36  ;;  %485 = vperm.xlu0 %5357, %v446_v10   ;;  %v20_v36 = vld [vmem:[%s7223_s1 + $0x10] sm:$0xff]  ;;  %v4437_v43 = vcombine.low %v179_v28, %v179_v28 }
  0x38   :  { %480 = vperm.xlu1 %5358, %v445_v8   ;;  %v462_v8 = vld [vmem:[%s7224_s2 + $0xa0] sm:$0xff] }
  0x39   :  { %4757 = vmatpush3.bf16.msra.mxu0 %v5412_v33  ;;  %v4438_v33 = vcombine.high %v179_v28, %v179_v28 }
  0x3a   :  { %4839 = vmatpush3.bf16.msra.mxu1 %v5414_v38  ;;  %4758 = vmatprep.subr.bf16.mxu0 %v5415_v41  ;;  %v21_v38 = vld [vmem:[%s7223_s1 + $0x18] sm:$0xff]  ;;  %v4435_v41 = vcombine.low %v178_v27, %v178_v27 }
  0x3b   :  { %2249 = vmatmul.mubr.bf16.gmra.mrb[12].mxu0 %v4323_v19  ;;  %4840 = vmatprep.subr.bf16.mxu1 %v5417_v45  ;;  %v171_v19 = vld [vmem:[%s7223_s1 + $0x4c8] sm:$0xff]  ;;  %v4282_v45 = vcombine.high %v21_v38, %v29_v39  ;;  %v4281_v56 = vcombine.low %v21_v38, %v29_v39  ;;  %v5451_v38 = vld [vmem:[%s7222_s0 + $0x270] sm:$0xff]  }
  0x3c   :  { %2369 = vmatmul.mubr.bf16.gmra.mrb[12].mxu1 %v4325_v21  ;;  %2256 = vmatprep.mubr.bf16.mxu0 %v4340_v22  ;;  %v448_v21 = vld [vmem:[%s7224_s2 + $0x30] sm:$0xff]  ;;  %v4405_v22 = vcombine.low %v147_v6, %v155_v7  ;;  %v4421_v31 = vcombine.low %v163_v18, %v171_v19 }
  0x3d   :  { %2376 = vmatprep.mubr.bf16.mxu1 %v4342_v24  ;;  %4759 = vmatpush3.bf16.msra.mxu0 %v5416_v44  ;;  %v4422_v24 = vcombine.high %v163_v18, %v171_v19  ;;  %v5437_v6 = vld [vmem:[%s7222_s0 + $0x2d0] sm:$0xff]   ;;  %v69_v18 = vld [vmem:[%s7223_s1 + $0x198] sm:$0xff] }
  0x3e   :  { %4841 = vmatpush3.bf16.msra.mxu1 %v5418_v46  ;;  %4760 = vmatprep.subr.bf16.mxu0 %v5419_v51  ;;  %v456_v46 = vld [vmem:[%s7224_s2 + $0x70] sm:$0xff]  ;;  %v457_v51 = vld [vmem:[%s7224_s2 + $0x78] sm:$0xff] }
  0x3f   :  { %4842 = vmatprep.subr.bf16.mxu1 %v5423_v53  ;;  %490 = vperm.xlu1 %5358, %v447_v14   ;;  %v5439_v14 = vld [vmem:[%s7222_s0 + $0x258] sm:$0xff]  }
  0x40   :  { %505 = vperm.xlu0 %5357, %v450_v15   ;;  %v68_v15 = vld [vmem:[%s7223_s1 + $0x190] sm:$0xff]  ;;  %v77_v19 = vld [vmem:[%s7223_s1 + $0x1d8] sm:$0xff] }
  0x41   :  { %4761 = vmatpush3.bf16.msra.mxu0 %v5420_v52  ;;  %v459_v52 = vld [vmem:[%s7224_s2 + $0x88] sm:$0xff]  ;;  %v4330_v28 = vcombine.high %v69_v18, %v77_v19  ;;  %v4327_v39 = vcombine.low %v68_v15, %v76_v16 }
  0x42   :  { %4843 = vmatpush3.bf16.msra.mxu1 %v5426_v54  ;;  %4910 = vmatprep.subr.bf16.mxu0 %v5427_v61  ;;  %v5430_v54 = vld [vmem:[%s7222_s0 + $0x280] sm:$0xff]   ;;  %v5432_v61 = vld [vmem:[%s7222_s0 + $0x208] sm:$0xff]  }
  0x43   :  { %2257 = vmatmul.mubr.bf16.gmra.mrb[16].mxu0 %v4339_v32  ;;  %4992 = vmatprep.subr.bf16.mxu1 %v5429_v2  ;;  %v4436_v32 = vcombine.high %v178_v27, %v178_v27  ;;  %v53_v2 = vld [vmem:[%s7223_s1 + $0x118] sm:$0xff]  ;;  %v5444_v27 = vld [vmem:[%s7222_s0 + $0x220] sm:$0xff]  }
  0x44   :  { %2377 = vmatmul.mubr.bf16.gmra.mrb[16].mxu1 %v4341_v34  ;;  %2264 = vmatprep.mubr.bf16.mxu0 %v4356_v35  ;;  %v453_v34 = vld [vmem:[%s7224_s2 + $0x58] sm:$0xff]  ;;  %v454_v35 = vld [vmem:[%s7224_s2 + $0x60] sm:$0xff] }
  0x45   :  { %2384 = vmatprep.mubr.bf16.mxu1 %v4358_v37  ;;  %495 = vperm.xlu0 %5357, %v448_v21   ;;  %v28_v37 = vld [vmem:[%s7223_s1 + $0x50] sm:$0xff]  ;;  %v5442_v21 = vld [vmem:[%s7222_s0 + $0x298] sm:$0xff]  }
  0x46   :  { %510 = vperm.xlu1 %5358, %v451_v25   ;;  %v4280_v44 = vcombine.high %v20_v36, %v28_v37  ;;  %v4279_v53 = vcombine.low %v20_v36, %v28_v37  ;;  %v4313_v25 = vcombine.low %v53_v2, %v61_v3  ;;  %v5448_v36 = vld [vmem:[%s7222_s0 + $0x228] sm:$0xff]  }
  0x47   :  { %v5450_v37 = vld [vmem:[%s7222_s0 + $0x2a8] sm:$0xff]  }
  0x49   :  { %500 = vperm.xlu0 %5357, %v449_v26   ;;  %v4328_v26 = vcombine.high %v68_v15, %v76_v16  ;;  %v157_v15 = vld [vmem:[%s7223_s1 + $0x458] sm:$0xff] }
  0x4a   :  { %515 = vperm.xlu1 %5358, %v452_v30   ;;  %v5447_v30 = vld [vmem:[%s7222_s0 + $0x268] sm:$0xff]  }
  0x4b   :  { %2265 = vmatmul.mubr.bf16.gmra.mrb[20].mxu0 %v4355_v47  ;;  %v36_v47 = vld [vmem:[%s7223_s1 + $0x90] sm:$0xff] }
  0x4c   :  { %2385 = vmatmul.mubr.bf16.gmra.mrb[20].mxu1 %v4357_v48  ;;  %2272 = vmatprep.mubr.bf16.mxu0 %v4372_v49  ;;  %v44_v48 = vld [vmem:[%s7223_s1 + $0xd0] sm:$0xff]  ;;  %v5428_v49 = vld [vmem:[%s7222_s0 + $0x200] sm:$0xff]  }
  0x4d   :  { %2392 = vmatprep.mubr.bf16.mxu1 %v4374_v50  ;;  %525 = vperm.xlu0 %5357, %v454_v35   ;;  %v37_v50 = vld [vmem:[%s7223_s1 + $0x98] sm:$0xff]  ;;  %v4296_v58 = vcombine.high %v36_v47, %v44_v48  ;;  %v4295_v7 = vcombine.low %v36_v47, %v44_v48  ;;  %v100_v47 = vld [vmem:[%s7223_s1 + $0x290] sm:$0xff] }
  0x4e   :  { %520 = vperm.xlu1 %5358, %v453_v34   ;;  %v85_v34 = vld [vmem:[%s7223_s1 + $0x218] sm:$0xff]  ;;  %v108_v48 = vld [vmem:[%s7223_s1 + $0x2d0] sm:$0xff] }
  0x4f   :  { %v93_v35 = vld [vmem:[%s7223_s1 + $0x258] sm:$0xff] }
  0x51   :  { %545 = vperm.xlu0 %5357, %v458_v42  }
  0x52   :  { %530 = vperm.xlu1 %5358, %v455_v40   ;;  %v5453_v40 = vld [vmem:[%s7222_s0 + $0x2f0] sm:$0xff]  }
  0x53   :  { %2273 = vmatmul.mubr.bf16.gmra.mrb[24].mxu0 %v4371_v60  ;;  %v4298_v60 = vcombine.high %v37_v50, %v45_v55 }
  0x54   :  { %2393 = vmatmul.mubr.bf16.gmra.mrb[24].mxu1 %v4373_v63  ;;  %2280 = vmatprep.mubr.bf16.mxu0 %v4388_v0  ;;  %v5434_v63 = vld [vmem:[%s7222_s0 + $0x288] sm:$0xff]   ;;  %v52_v0 = vld [vmem:[%s7223_s1 + $0x110] sm:$0xff] }
  0x55   :  { %2400 = vmatprep.mubr.bf16.mxu1 %v4390_v1  ;;  %535 = vperm.xlu0 %5357, %v456_v46   ;;  %v60_v1 = vld [vmem:[%s7223_s1 + $0x150] sm:$0xff]  ;;  %v5455_v46 = vld [vmem:[%s7222_s0 + $0x278] sm:$0xff]  }
  0x56   :  { %550 = vperm.xlu1 %5358, %v459_v52   ;;  %v4312_v10 = vcombine.high %v52_v0, %v60_v1  ;;  %v5456_v52 = vld [vmem:[%s7222_s0 + $0x238] sm:$0xff]  }
  0x59   :  { %540 = vperm.xlu0 %5357, %v457_v51   ;;  %v109_v51 = vld [vmem:[%s7223_s1 + $0x2d8] sm:$0xff] }
  0x5a   :  { %555 = vperm.xlu1 %5358, %v460_v62   ;;  %v117_v62 = vld [vmem:[%s7223_s1 + $0x318] sm:$0xff] }
  0x5b   :  { %2281 = vmatmul.mubr.bf16.gmra.mrb[28].mxu0 %v4387_v9  ;;  %v4297_v9 = vcombine.low %v37_v50, %v45_v55  ;;  %v101_v50 = vld [vmem:[%s7223_s1 + $0x298] sm:$0xff] }
  0x5c   :  { %2401 = vmatmul.mubr.bf16.gmra.mrb[28].mxu1 %v4389_v11  ;;  %2288 = vmatprep.mubr.bf16.mxu0 %v4404_v12  ;;  %v4314_v11 = vcombine.high %v53_v2, %v61_v3  ;;  %v5436_v12 = vld [vmem:[%s7222_s0 + $0x210] sm:$0xff]  }
  0x5d   :  { %2408 = vmatprep.mubr.bf16.mxu1 %v4406_v13  ;;  %565 = vperm.xlu0 %5357, %v462_v8   ;;  %v5438_v13 = vld [vmem:[%s7222_s0 + $0x290] sm:$0xff]  }
  0x5e   :  { %560 = vperm.xlu1 %5358, %v461_v4   ;;  %v132_v4 = vld [vmem:[%s7223_s1 + $0x390] sm:$0xff] }
  0x63   :  { %2289 = vmatmul.mubr.bf16.gmra.mrb[32].mxu0 %v4403_v20  ;;  %v5440_v20 = vld [vmem:[%s7222_s0 + $0x218] sm:$0xff]  }
  0x64   :  { %2409 = vmatmul.mubr.bf16.gmra.mrb[32].mxu1 %v4405_v22  ;;  %2296 = vmatprep.mubr.bf16.mxu0 %v4420_v23  ;;  %v5443_v22 = vld [vmem:[%s7222_s0 + $0x260] sm:$0xff]   ;;  %v4311_v23 = vcombine.low %v52_v0, %v60_v1  ;;  %v4359_v0 = vcombine.low %v100_v47, %v108_v48  ;;  %v4361_v1 = vcombine.low %v101_v50, %v109_v51 }
  0x65   :  { %2416 = vmatprep.mubr.bf16.mxu1 %v4422_v24  ;;  %v5445_v24 = vld [vmem:[%s7222_s0 + $0x2e0] sm:$0xff]  }
  0x6b   :  { %2297 = vmatmul.mubr.bf16.gmra.mrb[36].mxu0 %v4419_v29  ;;  %v5446_v29 = vld [vmem:[%s7222_s0 + $0x2a0] sm:$0xff]  }
  0x6c   :  { %2417 = vmatmul.mubr.bf16.gmra.mrb[36].mxu1 %v4421_v31  ;;  %2304 = vmatprep.mubr.bf16.mxu0 %v4436_v32  ;;  %v84_v31 = vld [vmem:[%s7223_s1 + $0x210] sm:$0xff]  ;;  %v5449_v32 = vld [vmem:[%s7222_s0 + $0x2e8] sm:$0xff]  }
  0x6d   :  { %2424 = vmatprep.mubr.bf16.mxu1 %v4438_v33  ;;  %v92_v33 = vld [vmem:[%s7223_s1 + $0x250] sm:$0xff] }
  0x6e   :  { %v4344_v42 = vcombine.high %v84_v31, %v92_v33  ;;  %v4343_v55 = vcombine.low %v84_v31, %v92_v33 }
  0x73   :  { %2305 = vmatmul.mubr.bf16.gmra.mrb[40].mxu0 %v4435_v41  ;;  %v4329_v41 = vcombine.low %v69_v18, %v77_v19 }
  0x74   :  { %2425 = vmatmul.mubr.bf16.gmra.mrb[40].mxu1 %v4437_v43  ;;  %2464 = vmatprep.mubr.bf16.mxu0 %v4280_v44  ;;  %v5452_v43 = vld [vmem:[%s7222_s0 + $0x230] sm:$0xff]   ;;  %v4346_v44 = vcombine.high %v85_v34, %v93_v35 }
  0x75   :  { %2584 = vmatprep.mubr.bf16.mxu1 %v4282_v45  ;;  %v5454_v45 = vld [vmem:[%s7222_s0 + $0x2b0] sm:$0xff]  }
  0x7b   :  { %2465 = vmatmul.mubr.bf16.vlgmr.msra.gmra.mrb[44].mxu0 %v4279_v53  ;;  %v5462_v53 = vld [vmem:[%s7222_s0 + $0x2b8] sm:$0xff]  }
  0x7c   :  { %2585 = vmatmul.mubr.bf16.vlgmr.msra.gmra.mrb[44].mxu1 %v4281_v56  ;;  %4911 = vmatpush3.bf16.msra.mxu0 %v5428_v49  ;;  %v5459_v49 = vld [vmem:[%s7222_s0 + $0x2f8] sm:$0xff]   ;;  %v5465_v56 = vld [vmem:[%s7222_s0 + $0x3c0] sm:$0xff]  }
  0x7d   :  { %4993 = vmatpush3.bf16.msra.mxu1 %v5430_v54  ;;  %2472 = vmatprep.mubr.bf16.mxu0 %v4296_v58  ;;  %v5463_v54 = vld [vmem:[%s7222_s0 + $0x340] sm:$0xff]   ;;  %v4360_v58 = vcombine.high %v100_v47, %v108_v48 }
  0x7e   :  { %2592 = vmatprep.mubr.bf16.mxu1 %v4298_v60  ;;  %4912 = vmatprep.subr.bf16.mxu0 %v5431_v57  ;;  %v4345_v57 = vcombine.low %v85_v34, %v93_v35  ;;  %v116_v60 = vld [vmem:[%s7223_s1 + $0x310] sm:$0xff]  ;;  %v22_v34 = vld [vmem:[%s7223_s1 + $0x20] sm:$0xff] }
  0x7f   :  { %4994 = vmatprep.subr.bf16.mxu1 %v5433_v59  ;;  %v4362_v59 = vcombine.high %v101_v50, %v109_v51  ;;  %v30_v35 = vld [vmem:[%s7223_s1 + $0x60] sm:$0xff] }
  0x80   :  { %4913 = vmatpush3.bf16.msra.mxu0 %v5432_v61  ;;  %v124_v61 = vld [vmem:[%s7223_s1 + $0x350] sm:$0xff]  ;;  %v5464_v48 = vld [vmem:[%s7222_s0 + $0x300] sm:$0xff]  }
  0x81   :  { %4995 = vmatpush3.bf16.msra.mxu1 %v5434_v63  ;;  %4914 = vmatprep.subr.bf16.mxu0 %v5435_v5  ;;  %v125_v63 = vld [vmem:[%s7223_s1 + $0x358] sm:$0xff]  ;;  %v4376_v2 = vcombine.high %v116_v60, %v124_v61  ;;  %v140_v5 = vld [vmem:[%s7223_s1 + $0x3d0] sm:$0xff]  ;;  %v4375_v8 = vcombine.low %v116_v60, %v124_v61  ;;  %v63_v60 = vld [vmem:[%s7223_s1 + $0x168] sm:$0xff] }
  0x82   :  { %4996 = vmatprep.subr.bf16.mxu1 %v5437_v6  ;;  %v4378_v3 = vcombine.high %v117_v62, %v125_v63  ;;  %v133_v6 = vld [vmem:[%s7223_s1 + $0x398] sm:$0xff]  ;;  %v4391_v16 = vcombine.low %v132_v4, %v140_v5  ;;  %v5473_v61 = vld [vmem:[%s7222_s0 + $0x3d0] sm:$0xff]  }
  0x83   :  { %2473 = vmatmul.mubr.bf16.gmra.mrb[48].mxu0 %v4295_v7  ;;  %v141_v7 = vld [vmem:[%s7223_s1 + $0x3d8] sm:$0xff] }
  0x84   :  { %2593 = vmatmul.mubr.bf16.gmra.mrb[48].mxu1 %v4297_v9  ;;  %2480 = vmatprep.mubr.bf16.mxu0 %v4312_v10  ;;  %v4377_v9 = vcombine.low %v117_v62, %v125_v63  ;;  %v4392_v10 = vcombine.high %v132_v4, %v140_v5  ;;  %v5475_v4 = vld [vmem:[%s7222_s0 + $0x358] sm:$0xff]  }
  0x85   :  { %2600 = vmatprep.mubr.bf16.mxu1 %v4314_v11  ;;  %4915 = vmatpush3.bf16.msra.mxu0 %v5436_v12  ;;  %v4394_v11 = vcombine.high %v133_v6, %v141_v7  ;;  %v148_v12 = vld [vmem:[%s7223_s1 + $0x410] sm:$0xff]  ;;  %v5477_v5 = vld [vmem:[%s7222_s0 + $0x3d8] sm:$0xff]  }
  0x86   :  { %4997 = vmatpush3.bf16.msra.mxu1 %v5438_v13  ;;  %4916 = vmatprep.subr.bf16.mxu0 %v5439_v14  ;;  %v156_v13 = vld [vmem:[%s7223_s1 + $0x450] sm:$0xff]  ;;  %v149_v14 = vld [vmem:[%s7223_s1 + $0x418] sm:$0xff] }
  0x87   :  { %4998 = vmatprep.subr.bf16.mxu1 %v5441_v17  ;;  %v4393_v17 = vcombine.low %v133_v6, %v141_v7  ;;  %v4408_v18 = vcombine.high %v148_v12, %v156_v13  ;;  %v4410_v19 = vcombine.high %v149_v14, %v157_v15  ;;  %v70_v6 = vld [vmem:[%s7223_s1 + $0x1a0] sm:$0xff] }
  0x88   :  { %v78_v7 = vld [vmem:[%s7223_s1 + $0x1e0] sm:$0xff] }
  0x89   :  { %4917 = vmatpush3.bf16.msra.mxu0 %v5440_v20  ;;  %v164_v20 = vld [vmem:[%s7223_s1 + $0x490] sm:$0xff] }
  0x8a   :  { %4999 = vmatpush3.bf16.msra.mxu1 %v5442_v21  ;;  %4918 = vmatprep.subr.bf16.mxu0 %v5443_v22  ;;  %v172_v21 = vld [vmem:[%s7223_s1 + $0x4d0] sm:$0xff]  ;;  %v165_v22 = vld [vmem:[%s7223_s1 + $0x498] sm:$0xff] }
  0x8b   :  { %2481 = vmatmul.mubr.bf16.gmra.mrb[52].mxu0 %v4311_v23  ;;  %5000 = vmatprep.subr.bf16.mxu1 %v5445_v24  ;;  %v173_v23 = vld [vmem:[%s7223_s1 + $0x4d8] sm:$0xff]  ;;  %v4407_v24 = vcombine.low %v148_v12, %v156_v13  ;;  %v5479_v12 = vld [vmem:[%s7222_s0 + $0x360] sm:$0xff]  }
  0x8c   :  { %2601 = vmatmul.mubr.bf16.gmra.mrb[52].mxu1 %v4313_v25  ;;  %2488 = vmatprep.mubr.bf16.mxu0 %v4328_v26  ;;  %v4409_v25 = vcombine.low %v149_v14, %v157_v15  ;;  %v4424_v26 = vcombine.high %v164_v20, %v172_v21  ;;  %v4425_v31 = vcombine.low %v165_v22, %v173_v23  ;;  %v5481_v14 = vld [vmem:[%s7222_s0 + $0x3e0] sm:$0xff]  }
  0x8d   :  { %2608 = vmatprep.mubr.bf16.mxu1 %v4330_v28  ;;  %4919 = vmatpush3.bf16.msra.mxu0 %v5444_v27  ;;  %v4426_v27 = vcombine.high %v165_v22, %v173_v23  ;;  %v180_v28 = vld [vmem:[%s7223_s1 + $0x510] sm:$0xff]  ;;  %v86_v22 = vld [vmem:[%s7223_s1 + $0x220] sm:$0xff] }
  0x8e   :  { %5001 = vmatpush3.bf16.msra.mxu1 %v5446_v29  ;;  %4920 = vmatprep.subr.bf16.mxu0 %v5447_v30  ;;  %v181_v29 = vld [vmem:[%s7223_s1 + $0x518] sm:$0xff]  ;;  %v4423_v30 = vcombine.low %v164_v20, %v172_v21  ;;  %v5483_v20 = vld [vmem:[%s7222_s0 + $0x368] sm:$0xff]   ;;  %v94_v23 = vld [vmem:[%s7223_s1 + $0x260] sm:$0xff] }
  0x8f   :  { %5002 = vmatprep.subr.bf16.mxu1 %v5449_v32  ;;  %v4440_v32 = vcombine.high %v180_v28, %v180_v28  ;;  %v4442_v33 = vcombine.high %v181_v29, %v181_v29  ;;  %v5485_v21 = vld [vmem:[%s7222_s0 + $0x3e8] sm:$0xff]  }
  0x91   :  { %4921 = vmatpush3.bf16.msra.mxu0 %v5448_v36  ;;  %v23_v36 = vld [vmem:[%s7223_s1 + $0x28] sm:$0xff] }
  0x92   :  { %5003 = vmatpush3.bf16.msra.mxu1 %v5450_v37  ;;  %4922 = vmatprep.subr.bf16.mxu0 %v5451_v38  ;;  %v31_v37 = vld [vmem:[%s7223_s1 + $0x68] sm:$0xff]  ;;  %v4439_v38 = vcombine.low %v180_v28, %v180_v28  ;;  %v5487_v28 = vld [vmem:[%s7222_s0 + $0x370] sm:$0xff]  }
  0x93   :  { %2489 = vmatmul.mubr.bf16.gmra.mrb[56].mxu0 %v4327_v39  ;;  %5004 = vmatprep.subr.bf16.mxu1 %v5453_v40  ;;  %v4441_v39 = vcombine.low %v181_v29, %v181_v29  ;;  %v4284_v40 = vcombine.high %v22_v34, %v30_v35  ;;  %v4285_v47 = vcombine.low %v23_v36, %v31_v37 }
  0x94   :  { %2609 = vmatmul.mubr.bf16.gmra.mrb[56].mxu1 %v4329_v41  ;;  %2496 = vmatprep.mubr.bf16.mxu0 %v4344_v42  ;;  %v4286_v41 = vcombine.high %v23_v36, %v31_v37  ;;  %v38_v42 = vld [vmem:[%s7223_s1 + $0xa0] sm:$0xff]  ;;  %v4331_v29 = vcombine.low %v70_v6, %v78_v7  ;;  %v5491_v36 = vld [vmem:[%s7222_s0 + $0x378] sm:$0xff]  }
  0x95   :  { %2616 = vmatprep.mubr.bf16.mxu1 %v4346_v44  ;;  %4923 = vmatpush3.bf16.msra.mxu0 %v5452_v43  ;;  %v46_v43 = vld [vmem:[%s7223_s1 + $0xe0] sm:$0xff]  ;;  %v4283_v44 = vcombine.low %v22_v34, %v30_v35  ;;  %v5488_v34 = vld [vmem:[%s7222_s0 + $0x330] sm:$0xff]   ;;  %v5495_v37 = vld [vmem:[%s7222_s0 + $0x3f8] sm:$0xff]  }
  0x96   :  { %5005 = vmatpush3.bf16.msra.mxu1 %v5454_v45  ;;  %4924 = vmatprep.subr.bf16.mxu0 %v5455_v46  ;;  %v39_v45 = vld [vmem:[%s7223_s1 + $0xa8] sm:$0xff]  ;;  %v4300_v50 = vcombine.high %v38_v42, %v46_v43  ;;  %v4299_v62 = vcombine.low %v38_v42, %v46_v43  ;;  %v5490_v35 = vld [vmem:[%s7222_s0 + $0x3b0] sm:$0xff]  }
  0x97   :  { %5006 = vmatprep.subr.bf16.mxu1 %v5459_v49  ;;  %v47_v46 = vld [vmem:[%s7223_s1 + $0xe8] sm:$0xff]  ;;  %v5466_v49 = vld [vmem:[%s7222_s0 + $0x380] sm:$0xff]  }
  0x98   :  { %v4302_v51 = vcombine.high %v39_v45, %v47_v46  ;;  %v4301_v63 = vcombine.low %v39_v45, %v47_v46  ;;  %v103_v42 = vld [vmem:[%s7223_s1 + $0x2a8] sm:$0xff]  ;;  %v4347_v45 = vcombine.low %v86_v22, %v94_v23 }
  0x99   :  { %4925 = vmatpush3.bf16.msra.mxu0 %v5456_v52  ;;  %v5467_v52 = vld [vmem:[%s7222_s0 + $0x348] sm:$0xff]  }
  0x9a   :  { %5007 = vmatpush3.bf16.msra.mxu1 %v5462_v53  ;;  %5074 = vmatprep.subr.bf16.mxu0 %v5463_v54  ;;  %v5469_v53 = vld [vmem:[%s7222_s0 + $0x3c8] sm:$0xff]  }
  0x9b   :  { %2497 = vmatmul.mubr.bf16.gmra.mrb[60].mxu0 %v4343_v55  ;;  %5156 = vmatprep.subr.bf16.mxu1 %v5465_v56  ;;  %v5468_v54 = vld [vmem:[%s7222_s0 + $0x308] sm:$0xff]   ;;  %v54_v56 = vld [vmem:[%s7223_s1 + $0x120] sm:$0xff] }
  0x9c   :  { %2617 = vmatmul.mubr.bf16.gmra.mrb[60].mxu1 %v4345_v57  ;;  %2504 = vmatprep.mubr.bf16.mxu0 %v4360_v58  ;;  %v5470_v55 = vld [vmem:[%s7222_s0 + $0x388] sm:$0xff]   ;;  %v62_v57 = vld [vmem:[%s7223_s1 + $0x160] sm:$0xff]  ;;  %v5471_v58 = vld [vmem:[%s7222_s0 + $0x350] sm:$0xff]  }
  0x9d   :  { %2624 = vmatprep.mubr.bf16.mxu1 %v4362_v59  ;;  %v55_v59 = vld [vmem:[%s7223_s1 + $0x128] sm:$0xff]  ;;  %v4315_v13 = vcombine.low %v54_v56, %v62_v57 }
  0x9e   :  { %v4317_v15 = vcombine.low %v55_v59, %v63_v60  ;;  %v111_v43 = vld [vmem:[%s7223_s1 + $0x2e8] sm:$0xff] }
  0xa3   :  { %2505 = vmatmul.mubr.bf16.gmra.mrb[64].mxu0 %v4359_v0  ;;  %v4316_v0 = vcombine.high %v54_v56, %v62_v57 }
  0xa4   :  { %2625 = vmatmul.mubr.bf16.gmra.mrb[64].mxu1 %v4361_v1  ;;  %2512 = vmatprep.mubr.bf16.mxu0 %v4376_v2  ;;  %v4318_v1 = vcombine.high %v55_v59, %v63_v60  ;;  %v5472_v2 = vld [vmem:[%s7222_s0 + $0x310] sm:$0xff]  }
  0xa5   :  { %2632 = vmatprep.mubr.bf16.mxu1 %v4378_v3  ;;  %v5474_v3 = vld [vmem:[%s7222_s0 + $0x390] sm:$0xff]  }
  0xab   :  { %2513 = vmatmul.mubr.bf16.gmra.mrb[68].mxu0 %v4375_v8  ;;  %v71_v8 = vld [vmem:[%s7223_s1 + $0x1a8] sm:$0xff] }
  0xac   :  { %2633 = vmatmul.mubr.bf16.gmra.mrb[68].mxu1 %v4377_v9  ;;  %2520 = vmatprep.mubr.bf16.mxu0 %v4392_v10  ;;  %v5476_v9 = vld [vmem:[%s7222_s0 + $0x318] sm:$0xff]   ;;  %v79_v10 = vld [vmem:[%s7223_s1 + $0x1e8] sm:$0xff] }
  0xad   :  { %2640 = vmatprep.mubr.bf16.mxu1 %v4394_v11  ;;  %v5478_v11 = vld [vmem:[%s7222_s0 + $0x398] sm:$0xff]  }
  0xb3   :  { %2521 = vmatmul.mubr.bf16.gmra.mrb[72].mxu0 %v4391_v16  ;;  %v4332_v16 = vcombine.high %v70_v6, %v78_v7 }
  0xb4   :  { %2641 = vmatmul.mubr.bf16.gmra.mrb[72].mxu1 %v4393_v17  ;;  %2528 = vmatprep.mubr.bf16.mxu0 %v4408_v18  ;;  %v4334_v17 = vcombine.high %v71_v8, %v79_v10  ;;  %v5480_v18 = vld [vmem:[%s7222_s0 + $0x320] sm:$0xff]  }
  0xb5   :  { %2648 = vmatprep.mubr.bf16.mxu1 %v4410_v19  ;;  %v5482_v19 = vld [vmem:[%s7222_s0 + $0x3a0] sm:$0xff]  }
  0xbb   :  { %2529 = vmatmul.mubr.bf16.gmra.mrb[76].mxu0 %v4407_v24  ;;  %v87_v24 = vld [vmem:[%s7223_s1 + $0x228] sm:$0xff] }
  0xbc   :  { %2649 = vmatmul.mubr.bf16.gmra.mrb[76].mxu1 %v4409_v25  ;;  %2536 = vmatprep.mubr.bf16.mxu0 %v4424_v26  ;;  %v5484_v25 = vld [vmem:[%s7222_s0 + $0x328] sm:$0xff]  }
  0xbd   :  { %2656 = vmatprep.mubr.bf16.mxu1 %v4426_v27  ;;  %v95_v26 = vld [vmem:[%s7223_s1 + $0x268] sm:$0xff] }
  0xbe   :  { %v5486_v27 = vld [vmem:[%s7222_s0 + $0x3a8] sm:$0xff]   ;;  %v4349_v46 = vcombine.low %v87_v24, %v95_v26 }
  0xc3   :  { %2537 = vmatmul.mubr.bf16.gmra.mrb[80].mxu0 %v4423_v30  ;;  %v5489_v30 = vld [vmem:[%s7222_s0 + $0x3f0] sm:$0xff]  }
  0xc4   :  { %2657 = vmatmul.mubr.bf16.gmra.mrb[80].mxu1 %v4425_v31  ;;  %2544 = vmatprep.mubr.bf16.mxu0 %v4440_v32  ;;  %v4333_v31 = vcombine.low %v71_v8, %v79_v10  ;;  %v4348_v32 = vcombine.high %v86_v22, %v94_v23 }
  0xc5   :  { %2664 = vmatprep.mubr.bf16.mxu1 %v4442_v33  ;;  %v4350_v33 = vcombine.high %v87_v24, %v95_v26 }
  0xcb   :  { %2545 = vmatmul.mubr.bf16.gmra.mrb[84].mxu0 %v4439_v38  ;;  %v466_v38 = vpop.permute.xlu0 %465 }
  0xcc   :  { %2665 = vmatmul.mubr.bf16.gmra.mrb[84].mxu1 %v4441_v39  ;;  %2704 = vmatprep.mubr.bf16.mxu0 %v4284_v40  ;;  %v102_v39 = vld [vmem:[%s7223_s1 + $0x2a0] sm:$0xff] }
  0xcd   :  { %2824 = vmatprep.mubr.bf16.mxu1 %v4286_v41  ;;  %v110_v40 = vld [vmem:[%s7223_s1 + $0x2e0] sm:$0xff]  ;;  %v5492_v41 = vld [vmem:[%s7222_s0 + $0x338] sm:$0xff]  }
  0xce   :  { %v4363_v59 = vcombine.low %v102_v39, %v110_v40 }
  0xd3   :  { %2705 = vmatmul.mubr.bf16.vlgmr.msra.gmra.mrb[88].mxu0 %v4283_v44  ;;  %v5498_v44 = vld [vmem:[%s7222_s0 + $0x3b8] sm:$0xff]  }
  0xd4   :  { %2825 = vmatmul.mubr.bf16.vlgmr.msra.gmra.mrb[88].mxu1 %v4285_v47  ;;  %5075 = vmatpush3.bf16.msra.mxu0 %v5464_v48  ;;  %v4364_v47 = vcombine.high %v102_v39, %v110_v40  ;;  %v4366_v48 = vcombine.high %v103_v42, %v111_v43  ;;  %v158_v39 = vld [vmem:[%s7223_s1 + $0x460] sm:$0xff] }
  0xd5   :  { %5157 = vmatpush3.bf16.msra.mxu1 %v5466_v49  ;;  %2712 = vmatprep.mubr.bf16.mxu0 %v4300_v50  ;;  %v471_v49 = vpop.permute.xlu0 %470  ;;  %v476_v50 = vpop.permute.xlu1 %475 }
  0xd6   :  { %2832 = vmatprep.mubr.bf16.mxu1 %v4302_v51  ;;  %5076 = vmatprep.subr.bf16.mxu0 %v5467_v52  ;;  %v118_v51 = vld [vmem:[%s7223_s1 + $0x320] sm:$0xff] }
  0xd7   :  { %5158 = vmatprep.subr.bf16.mxu1 %v5469_v53  ;;  %v126_v52 = vld [vmem:[%s7223_s1 + $0x360] sm:$0xff] }
  0xd8   :  { %5077 = vmatpush3.bf16.msra.mxu0 %v5468_v54  ;;  %v119_v54 = vld [vmem:[%s7223_s1 + $0x328] sm:$0xff] }
  0xd9   :  { %5159 = vmatpush3.bf16.msra.mxu1 %v5470_v55  ;;  %5078 = vmatprep.subr.bf16.mxu0 %v5471_v58  ;;  %v127_v55 = vld [vmem:[%s7223_s1 + $0x368] sm:$0xff]  ;;  %v6367_v56 = vpop.permute.xlu0 %485 }
  0xda   :  { %5160 = vmatprep.subr.bf16.mxu1 %v5473_v61 }
  0xdb   :  { %2713 = vmatmul.mubr.bf16.gmra.mrb[92].mxu0 %v4299_v62 }
  0xdc   :  { %2833 = vmatmul.mubr.bf16.gmra.mrb[92].mxu1 %v4301_v63  ;;  %2720 = vmatprep.mubr.bf16.mxu0 %v4316_v0  ;;  %v4365_v63 = vcombine.low %v103_v42, %v111_v43  ;;  %v4380_v0 = vcombine.high %v118_v51, %v126_v52  ;;  %v151_v43 = vld [vmem:[%s7223_s1 + $0x428] sm:$0xff] }
  0xdd   :  { %2840 = vmatprep.mubr.bf16.mxu1 %v4318_v1  ;;  %5079 = vmatpush3.bf16.msra.mxu0 %v5472_v2 }
  0xde   :  { %5161 = vmatpush3.bf16.msra.mxu1 %v5474_v3  ;;  %5080 = vmatprep.subr.bf16.mxu0 %v5475_v4  ;;  %v4382_v4 = vcombine.high %v119_v54, %v127_v55 }
  0xdf   :  { %5162 = vmatprep.subr.bf16.mxu1 %v5477_v5 }
  0xe1   :  { %5081 = vmatpush3.bf16.msra.mxu0 %v5476_v9 }
  0xe2   :  { %5163 = vmatpush3.bf16.msra.mxu1 %v5478_v11  ;;  %5082 = vmatprep.subr.bf16.mxu0 %v5479_v12  ;;  %v481_v11 = vpop.permute.xlu1 %480  ;;  %v134_v12 = vld [vmem:[%s7223_s1 + $0x3a0] sm:$0xff] }
  0xe3   :  { %2721 = vmatmul.mubr.bf16.gmra.mrb[96].mxu0 %v4315_v13  ;;  %5164 = vmatprep.subr.bf16.mxu1 %v5481_v14  ;;  %v142_v13 = vld [vmem:[%s7223_s1 + $0x3e0] sm:$0xff] }
  0xe4   :  { %2841 = vmatmul.mubr.bf16.gmra.mrb[96].mxu1 %v4317_v15  ;;  %2728 = vmatprep.mubr.bf16.mxu0 %v4332_v16  ;;  %v135_v16 = vld [vmem:[%s7223_s1 + $0x3a8] sm:$0xff]  ;;  %v4396_v26 = vcombine.high %v134_v12, %v142_v13 }
  0xe5   :  { %2848 = vmatprep.mubr.bf16.mxu1 %v4334_v17  ;;  %5083 = vmatpush3.bf16.msra.mxu0 %v5480_v18  ;;  %v143_v17 = vld [vmem:[%s7223_s1 + $0x3e8] sm:$0xff]  ;;  %v6385_v18 = vpop.permute.xlu0 %505 }
  0xe6   :  { %5165 = vmatpush3.bf16.msra.mxu1 %v5482_v19  ;;  %5084 = vmatprep.subr.bf16.mxu0 %v5483_v20 }
  0xe7   :  { %5166 = vmatprep.subr.bf16.mxu1 %v5485_v21  ;;  %v4379_v21 = vcombine.low %v118_v51, %v126_v52  ;;  %v4397_v51 = vcombine.low %v135_v16, %v143_v17 }
  0xe9   :  { %5085 = vmatpush3.bf16.msra.mxu0 %v5484_v25  ;;  %v4381_v25 = vcombine.low %v119_v54, %v127_v55  ;;  %v496_v42 = vpop.permute.xlu0 %495 }
  0xea   :  { %5167 = vmatpush3.bf16.msra.mxu1 %v5486_v27  ;;  %5086 = vmatprep.subr.bf16.mxu0 %v5487_v28 }
  0xeb   :  { %2729 = vmatmul.mubr.bf16.gmra.mrb[100].mxu0 %v4331_v29  ;;  %5168 = vmatprep.subr.bf16.mxu1 %v5489_v30  ;;  %v4398_v30 = vcombine.high %v135_v16, %v143_v17 }
  0xec   :  { %2849 = vmatmul.mubr.bf16.gmra.mrb[100].mxu1 %v4333_v31  ;;  %2736 = vmatprep.mubr.bf16.mxu0 %v4348_v32 }
  0xed   :  { %2856 = vmatprep.mubr.bf16.mxu1 %v4350_v33  ;;  %5087 = vmatpush3.bf16.msra.mxu0 %v5488_v34 }
  0xee   :  { %5169 = vmatpush3.bf16.msra.mxu1 %v5490_v35  ;;  %5088 = vmatprep.subr.bf16.mxu0 %v5491_v36 }
  0xef   :  { %5170 = vmatprep.subr.bf16.mxu1 %v5495_v37  ;;  %v491_v37 = vpop.permute.xlu1 %490 }
  0xf1   :  { %5089 = vmatpush3.bf16.msra.mxu0 %v5492_v41 }
  0xf2   :  { %5171 = vmatpush3.bf16.msra.mxu1 %v5498_v44  ;;  %v159_v44 = vld [vmem:[%s7223_s1 + $0x468] sm:$0xff] }
  0xf3   :  { %2737 = vmatmul.mubr.bf16.gmra.mrb[104].mxu0 %v4347_v45 }
  0xf4   :  { %2857 = vmatmul.mubr.bf16.gmra.mrb[104].mxu1 %v4349_v46  ;;  %2744 = vmatprep.mubr.bf16.mxu0 %v4364_v47  ;;  %v4395_v47 = vcombine.low %v134_v12, %v142_v13 }
  0xf5   :  { %2864 = vmatprep.mubr.bf16.mxu1 %v4366_v48 }
  0xf6   :  { %v4598_v53 = vpop.f32.mrb[0].mxu0 }
  0xf7   :  { %v4680_v57 = vpop.f32.mrb[0].mxu1  ;;  %v4599_v58 = vpop.f32.mrb[1].mxu0 }
  0xf8   :  { %v4600_v60 = vadd.f32 %v4599_v58, %v4598_v53  ;;  %v4681_v61 = vpop.f32.mrb[1].mxu1  ;;  %v4601_v62 = vpop.f32.mrb[2].mxu0 }
  0xf9   :  { %v4682_v1 = vadd.f32 %v4681_v61, %v4680_v57  ;;  %v4683_v2 = vpop.f32.mrb[2].mxu1  ;;  %v4602_v3 = vpop.f32.mrb[3].mxu0  ;;  %v4414_v57 = vcombine.high %v151_v43, %v159_v44 }
  0xfa   :  { %v2227_v5 = vadd.f32 %v4600_v60, %v466_v38  ;;  %v4603_v6 = vadd.f32 %v4602_v3, %v4601_v62  ;;  %v4684_v7 = vpop.f32.mrb[3].mxu1  ;;  %v150_v38 = vld [vmem:[%s7223_s1 + $0x420] sm:$0xff] }
  0xfb   :  { %v4685_v8 = vadd.f32 %v4684_v7, %v4683_v2  ;;  %2745 = vmatmul.mubr.bf16.gmra.mrb[108].mxu0 %v4363_v59  ;;  %v4412_v52 = vcombine.high %v150_v38, %v158_v39  ;;  %v511_v2 = vpop.permute.xlu1 %510 }
  0xfc   :  { %v6369_v9 = vadd.f32 %v4682_v1, %v2227_v5  ;;  %v2230_v10 = vadd.f32 %v4603_v6, %v471_v49  ;;  %2865 = vmatmul.mubr.bf16.gmra.mrb[108].mxu1 %v4365_v63  ;;  %2752 = vmatprep.mubr.bf16.mxu0 %v4380_v0  ;;  %v166_v0 = vld [vmem:[%s7223_s1 + $0x4a0] sm:$0xff]  ;;  %v167_v5 = vld [vmem:[%s7223_s1 + $0x4a8] sm:$0xff] }
  0xfd   :  { %2872 = vmatprep.mubr.bf16.mxu1 %v4382_v4  ;;  %v174_v1 = vld [vmem:[%s7223_s1 + $0x4e0] sm:$0xff]  ;;  %v501_v4 = vpop.permute.xlu0 %500  ;;  %v175_v6 = vld [vmem:[%s7223_s1 + $0x4e8] sm:$0xff] }
  0xfe   :  { %v6377_v14 = vadd.f32 %v4685_v8, %v2230_v10  ;;  %v4604_v15 = vpop.f32.mrb[4].mxu0  ;;  %v4411_v10 = vcombine.low %v150_v38, %v158_v39  ;;  %v4428_v16 = vcombine.high %v166_v0, %v174_v1 }
  0xff   :  { %v4686_v19 = vpop.f32.mrb[4].mxu1  ;;  %v4605_v20 = vpop.f32.mrb[5].mxu0 }
 0x100   :  { %v4606_v22 = vadd.f32 %v4605_v20, %v4604_v15  ;;  %v4687_v23 = vpop.f32.mrb[5].mxu1  ;;  %v4607_v24 = vpop.f32.mrb[6].mxu0  ;;  %v4413_v15 = vcombine.low %v151_v43, %v159_v44 }
 0x101   :  { %v4688_v27 = vadd.f32 %v4687_v23, %v4686_v19  ;;  %v4689_v28 = vpop.f32.mrb[6].mxu1  ;;  %v4608_v29 = vpop.f32.mrb[7].mxu0 }
 0x102   :  { %v2235_v31 = vadd.f32 %v4606_v22, %v476_v50  ;;  %v4609_v32 = vadd.f32 %v4608_v29, %v4607_v24  ;;  %v4690_v33 = vpop.f32.mrb[7].mxu1  ;;  %v182_v29 = vld [vmem:[%s7223_s1 + $0x520] sm:$0xff] }
 0x103   :  { %v4691_v34 = vadd.f32 %v4690_v33, %v4689_v28  ;;  %2753 = vmatmul.mubr.bf16.gmra.mrb[112].mxu0 %v4379_v21  ;;  %v4430_v21 = vcombine.high %v167_v5, %v175_v6  ;;  %v516_v28 = vpop.permute.xlu1 %515  ;;  %v6430_v33 = vpop.permute.xlu0 %525  ;;  %v4444_v43 = vcombine.high %v182_v29, %v182_v29 }
 0x104   :  { %v6387_v35 = vadd.f32 %v4688_v27, %v2235_v31  ;;  %v2238_v36 = vadd.f32 %v4609_v32, %v481_v11  ;;  %2873 = vmatmul.mubr.bf16.gmra.mrb[112].mxu1 %v4381_v25  ;;  %2760 = vmatprep.mubr.bf16.mxu0 %v4396_v26  ;;  %v183_v32 = vld [vmem:[%s7223_s1 + $0x528] sm:$0xff] }
 0x105   :  { %2880 = vmatprep.mubr.bf16.mxu1 %v4398_v30 }
 0x106   :  { %v6395_v40 = vadd.f32 %v4691_v34, %v2238_v36  ;;  %v4610_v41 = vpop.f32.mrb[8].mxu0 }
 0x107   :  { %v4692_v45 = vpop.f32.mrb[8].mxu1  ;;  %v4611_v46 = vpop.f32.mrb[9].mxu0 }
 0x108   :  { %v4612_v48 = vadd.f32 %v4611_v46, %v4610_v41  ;;  %v4693_v49 = vpop.f32.mrb[9].mxu1  ;;  %v4613_v50 = vpop.f32.mrb[10].mxu0 }
 0x109   :  { %v4694_v53 = vadd.f32 %v4693_v49, %v4692_v45  ;;  %v4695_v54 = vpop.f32.mrb[10].mxu1  ;;  %v4614_v55 = vpop.f32.mrb[11].mxu0 }
 0x10a   :  { %v2243_v58 = vadd.f32 %v4612_v48, %v6367_v56  ;;  %v4615_v59 = vadd.f32 %v4614_v55, %v4613_v50  ;;  %v4696_v60 = vpop.f32.mrb[11].mxu1  ;;  %v24_v55 = vld [vmem:[%s7223_s1 + $0x30] sm:$0xff] }
 0x10b   :  { %v4697_v61 = vadd.f32 %v4696_v60, %v4695_v54  ;;  %2761 = vmatmul.mubr.bf16.gmra.mrb[116].mxu0 %v4395_v47  ;;  %v4446_v47 = vcombine.high %v183_v32, %v183_v32  ;;  %v521_v54 = vpop.permute.xlu1 %520  ;;  %v33_v60 = vld [vmem:[%s7223_s1 + $0x78] sm:$0xff] }
 0x10c   :  { %v6404_v62 = vadd.f32 %v4694_v53, %v2243_v58  ;;  %v2246_v63 = vadd.f32 %v4615_v59, %v491_v37  ;;  %2881 = vmatmul.mubr.bf16.gmra.mrb[116].mxu1 %v4397_v51  ;;  %2768 = vmatprep.mubr.bf16.mxu0 %v4412_v52  ;;  %v4427_v37 = vcombine.low %v166_v0, %v174_v1  ;;  %v25_v59 = vld [vmem:[%s7223_s1 + $0x38] sm:$0xff] }
 0x10d   :  { %2888 = vmatprep.mubr.bf16.mxu1 %v4414_v57  ;;  %v32_v57 = vld [vmem:[%s7223_s1 + $0x70] sm:$0xff]  ;;  %v4443_v1 = vcombine.low %v182_v29, %v182_v29 }
 0x10e   :  { %v6412_v56 = vadd.f32 %v4697_v61, %v2246_v63  ;;  %v4616_v3 = vpop.f32.mrb[12].mxu0  ;;  %v6449_v61 = vpop.permute.xlu0 %545 }
 0x10f   :  { %v4698_v7 = vpop.f32.mrb[12].mxu1  ;;  %v4617_v8 = vpop.f32.mrb[13].mxu0 }
 0x110   :  { %v4618_v11 = vadd.f32 %v4617_v8, %v4616_v3  ;;  %v4699_v12 = vpop.f32.mrb[13].mxu1  ;;  %v4619_v13 = vpop.f32.mrb[14].mxu0 }
 0x111   :  { %v4700_v17 = vadd.f32 %v4699_v12, %v4698_v7  ;;  %v4701_v19 = vpop.f32.mrb[14].mxu1  ;;  %v4620_v20 = vpop.f32.mrb[15].mxu0 }
 0x112   :  { %v2251_v22 = vadd.f32 %v4618_v11, %v496_v42  ;;  %v4621_v23 = vadd.f32 %v4620_v20, %v4619_v13  ;;  %v4702_v24 = vpop.f32.mrb[15].mxu1  ;;  %v4429_v42 = vcombine.low %v167_v5, %v175_v6  ;;  %v4445_v5 = vcombine.low %v183_v32, %v183_v32  ;;  %v531_v20 = vpop.permute.xlu1 %530 }
 0x113   :  { %v4703_v25 = vadd.f32 %v4702_v24, %v4701_v19  ;;  %2769 = vmatmul.mubr.bf16.gmra.mrb[120].mxu0 %v4411_v10  ;;  %v4288_v6 = vcombine.high %v24_v55, %v32_v57  ;;  %v4290_v11 = vcombine.high %v25_v59, %v33_v60  ;;  %v4287_v32 = vcombine.low %v24_v55, %v32_v57 }
 0x114   :  { %v6420_v26 = vadd.f32 %v4700_v17, %v2251_v22  ;;  %v2254_v27 = vadd.f32 %v4621_v23, %v501_v4  ;;  %2889 = vmatmul.mubr.bf16.gmra.mrb[120].mxu1 %v4413_v15  ;;  %2776 = vmatprep.mubr.bf16.mxu0 %v4428_v16  ;;  %v48_v22 = vld [vmem:[%s7223_s1 + $0xf0] sm:$0xff] }
 0x115   :  { %2896 = vmatprep.mubr.bf16.mxu1 %v4430_v21  ;;  %v40_v21 = vld [vmem:[%s7223_s1 + $0xb0] sm:$0xff] }
 0x116   :  { %v6425_v30 = vadd.f32 %v4703_v25, %v2254_v27  ;;  %v4622_v31 = vpop.f32.mrb[16].mxu0  ;;  %v536_v25 = vpop.permute.xlu0 %535  ;;  %v41_v27 = vld [vmem:[%s7223_s1 + $0xb8] sm:$0xff] }
 0x117   :  { %v4704_v34 = vpop.f32.mrb[16].mxu1  ;;  %v4623_v36 = vpop.f32.mrb[17].mxu0 }
 0x118   :  { %v4624_v38 = vadd.f32 %v4623_v36, %v4622_v31  ;;  %v4705_v39 = vpop.f32.mrb[17].mxu1  ;;  %v4625_v41 = vpop.f32.mrb[18].mxu0 }
 0x119   :  { %v4706_v44 = vadd.f32 %v4705_v39, %v4704_v34  ;;  %v4707_v45 = vpop.f32.mrb[18].mxu1  ;;  %v4626_v46 = vpop.f32.mrb[19].mxu0  ;;  %v4304_v39 = vcombine.high %v40_v21, %v48_v22 }
 0x11a   :  { %v2259_v48 = vadd.f32 %v4624_v38, %v6385_v18  ;;  %v4627_v49 = vadd.f32 %v4626_v46, %v4625_v41  ;;  %v4708_v50 = vpop.f32.mrb[19].mxu1  ;;  %v4289_v38 = vcombine.low %v25_v59, %v33_v60  ;;  %v541_v57 = vpop.permute.xlu0 %540  ;;  %v65_v59 = vld [vmem:[%s7223_s1 + $0x178] sm:$0xff] }
 0x11b   :  { %v4709_v51 = vadd.f32 %v4708_v50, %v4707_v45  ;;  %2777 = vmatmul.mubr.bf16.gmra.mrb[124].mxu0 %v4427_v37 }
 0x11c   :  { %v6433_v52 = vadd.f32 %v4706_v44, %v2259_v48  ;;  %v2262_v53 = vadd.f32 %v4627_v49, %v511_v2  ;;  %2897 = vmatmul.mubr.bf16.gmra.mrb[124].mxu1 %v4429_v42  ;;  %2784 = vmatprep.mubr.bf16.mxu0 %v4444_v43 }
 0x11d   :  { %2904 = vmatprep.mubr.bf16.mxu1 %v4446_v47 }
 0x11e   :  { %v6441_v18 = vadd.f32 %v4709_v51, %v2262_v53  ;;  %v4628_v58 = vpop.f32.mrb[20].mxu0  ;;  %v56_v51 = vld [vmem:[%s7223_s1 + $0x130] sm:$0xff] }
 0x11f   :  { %v4710_v63 = vpop.f32.mrb[20].mxu1  ;;  %v4629_v0 = vpop.f32.mrb[21].mxu0  ;;  %v64_v53 = vld [vmem:[%s7223_s1 + $0x170] sm:$0xff] }
 0x120   :  { %v4630_v2 = vadd.f32 %v4629_v0, %v4628_v58  ;;  %v4711_v3 = vpop.f32.mrb[21].mxu1  ;;  %v4631_v4 = vpop.f32.mrb[22].mxu0  ;;  %v57_v58 = vld [vmem:[%s7223_s1 + $0x138] sm:$0xff]  ;;  %v4303_v0 = vcombine.low %v40_v21, %v48_v22  ;;  %v80_v21 = vld [vmem:[%s7223_s1 + $0x1f0] sm:$0xff] }
 0x121   :  { %v4712_v7 = vadd.f32 %v4711_v3, %v4710_v63  ;;  %v4713_v8 = vpop.f32.mrb[22].mxu1  ;;  %v4632_v10 = vpop.f32.mrb[23].mxu0 }
 0x122   :  { %v2267_v12 = vadd.f32 %v4630_v2, %v516_v28  ;;  %v4633_v13 = vadd.f32 %v4632_v10, %v4631_v4  ;;  %v4714_v15 = vpop.f32.mrb[23].mxu1  ;;  %v49_v28 = vld [vmem:[%s7223_s1 + $0xf8] sm:$0xff]  ;;  %v4322_v10 = vcombine.high %v57_v58, %v65_v59 }
 0x123   :  { %v4715_v16 = vadd.f32 %v4714_v15, %v4713_v8  ;;  %2785 = vmatmul.mubr.bf16.gmra.mrb[128].mxu0 %v4443_v1  ;;  %v4306_v44 = vcombine.high %v41_v27, %v49_v28  ;;  %v4305_v4 = vcombine.low %v41_v27, %v49_v28  ;;  %v73_v27 = vld [vmem:[%s7223_s1 + $0x1b8] sm:$0xff] }
 0x124   :  { %v6451_v17 = vadd.f32 %v4712_v7, %v2267_v12  ;;  %v2270_v19 = vadd.f32 %v4633_v13, %v521_v54  ;;  %2905 = vmatmul.mubr.bf16.gmra.mrb[128].mxu1 %v4445_v5  ;;  %2944 = vmatprep.mubr.bf16.mxu0 %v4288_v6  ;;  %v551_v54 = vpop.permute.xlu1 %550  ;;  %v4320_v5 = vcombine.high %v56_v51, %v64_v53  ;;  %v81_v28 = vld [vmem:[%s7223_s1 + $0x1f8] sm:$0xff] }
 0x125   :  { %3064 = vmatprep.mubr.bf16.mxu1 %v4290_v11 }
 0x126   :  { %v6459_v23 = vadd.f32 %v4715_v16, %v2270_v19  ;;  %v4634_v24 = vpop.f32.mrb[24].mxu0 }
 0x127   :  { %v4716_v29 = vpop.f32.mrb[24].mxu1  ;;  %v4635_v31 = vpop.f32.mrb[25].mxu0 }
 0x128   :  { %v4636_v34 = vadd.f32 %v4635_v31, %v4634_v24  ;;  %v4717_v36 = vpop.f32.mrb[25].mxu1  ;;  %v4637_v37 = vpop.f32.mrb[26].mxu0 }
 0x129   :  { %v4718_v41 = vadd.f32 %v4717_v36, %v4716_v29  ;;  %v4719_v42 = vpop.f32.mrb[26].mxu1  ;;  %v4638_v43 = vpop.f32.mrb[27].mxu0 }
 0x12a   :  { %v2275_v45 = vadd.f32 %v4636_v34, %v6430_v33  ;;  %v4639_v46 = vadd.f32 %v4638_v43, %v4637_v37  ;;  %v4720_v47 = vpop.f32.mrb[27].mxu1 }
 0x12b   :  { %v4721_v48 = vadd.f32 %v4720_v47, %v4719_v42  ;;  %2945 = vmatmul.mubr.bf16.vlgmr.msra.gmra.mrb[132].mxu0 %v4287_v32  ;;  %v4319_v32 = vcombine.low %v56_v51, %v64_v53  ;;  %v88_v51 = vld [vmem:[%s7223_s1 + $0x230] sm:$0xff] }
 0x12c   :  { %v6468_v49 = vadd.f32 %v4718_v41, %v2275_v45  ;;  %v2278_v50 = vadd.f32 %v4639_v46, %v531_v20  ;;  %3065 = vmatmul.mubr.bf16.vlgmr.msra.gmra.mrb[132].mxu1 %v4289_v38  ;;  %2952 = vmatprep.mubr.bf16.mxu0 %v4304_v39  ;;  %v72_v20 = vld [vmem:[%s7223_s1 + $0x1b0] sm:$0xff]  ;;  %v4321_v38 = vcombine.low %v57_v58, %v65_v59  ;;  %v89_v59 = vld [vmem:[%s7223_s1 + $0x238] sm:$0xff] }
 0x12d   :  { %3072 = vmatprep.mubr.bf16.mxu1 %v4306_v44  ;;  %v4336_v39 = vcombine.high %v72_v20, %v80_v21  ;;  %v4338_v44 = vcombine.high %v73_v27, %v81_v28  ;;  %v96_v53 = vld [vmem:[%s7223_s1 + $0x270] sm:$0xff] }
 0x12e   :  { %v6476_v33 = vadd.f32 %v4721_v48, %v2278_v50  ;;  %v4640_v55 = vpop.f32.mrb[28].mxu0 }
 0x12f   :  { %v4722_v60 = vpop.f32.mrb[28].mxu1  ;;  %v4641_v63 = vpop.f32.mrb[29].mxu0 }
 0x130   :  { %v4642_v1 = vadd.f32 %v4641_v63, %v4640_v55  ;;  %v4723_v2 = vpop.f32.mrb[29].mxu1  ;;  %v4643_v3 = vpop.f32.mrb[30].mxu0 }
 0x131   :  { %v4724_v6 = vadd.f32 %v4723_v2, %v4722_v60  ;;  %v4725_v7 = vpop.f32.mrb[30].mxu1  ;;  %v4644_v8 = vpop.f32.mrb[31].mxu0 }
 0x132   :  { %v2283_v11 = vadd.f32 %v4642_v1, %v536_v25  ;;  %v4645_v12 = vadd.f32 %v4644_v8, %v4643_v3  ;;  %v4726_v13 = vpop.f32.mrb[31].mxu1  ;;  %v556_v25 = vpop.permute.xlu1 %555 }
 0x133   :  { %v4727_v15 = vadd.f32 %v4726_v13, %v4725_v7  ;;  %2953 = vmatmul.mubr.bf16.gmra.mrb[136].mxu0 %v4303_v0  ;;  %v4335_v0 = vcombine.low %v72_v20, %v80_v21  ;;  %v104_v20 = vld [vmem:[%s7223_s1 + $0x2b0] sm:$0xff] }
 0x134   :  { %v6484_v16 = vadd.f32 %v4724_v6, %v2283_v11  ;;  %v2286_v19 = vadd.f32 %v4645_v12, %v541_v57  ;;  %3073 = vmatmul.mubr.bf16.gmra.mrb[136].mxu1 %v4305_v4  ;;  %2960 = vmatprep.mubr.bf16.mxu0 %v4320_v5  ;;  %v4337_v4 = vcombine.low %v73_v27, %v81_v28  ;;  %v112_v21 = vld [vmem:[%s7223_s1 + $0x2f0] sm:$0xff]  ;;  %v566_v28 = vpop.permute.xlu0 %565 }
 0x135   :  { %3080 = vmatprep.mubr.bf16.mxu1 %v4322_v10  ;;  %v4352_v5 = vcombine.high %v88_v51, %v96_v53 }
 0x136   :  { %v6492_v22 = vadd.f32 %v4727_v15, %v2286_v19  ;;  %v4646_v24 = vpop.f32.mrb[32].mxu0  ;;  %v561_v58 = vpop.permute.xlu1 %560 }
 0x137   :  { %v4728_v29 = vpop.f32.mrb[32].mxu1  ;;  %v4647_v31 = vpop.f32.mrb[33].mxu0 }
 0x138   :  { %v4648_v34 = vadd.f32 %v4647_v31, %v4646_v24  ;;  %v4729_v36 = vpop.f32.mrb[33].mxu1  ;;  %v4649_v37 = vpop.f32.mrb[34].mxu0  ;;  %v113_v31 = vld [vmem:[%s7223_s1 + $0x2f8] sm:$0xff] }
 0x139   :  { %v4730_v41 = vadd.f32 %v4729_v36, %v4728_v29  ;;  %v4731_v42 = vpop.f32.mrb[34].mxu1  ;;  %v4650_v43 = vpop.f32.mrb[35].mxu0  ;;  %v105_v29 = vld [vmem:[%s7223_s1 + $0x2b8] sm:$0xff]  ;;  %v4351_v36 = vcombine.low %v88_v51, %v96_v53  ;;  %v120_v51 = vld [vmem:[%s7223_s1 + $0x330] sm:$0xff] }
 0x13a   :  { %v2291_v45 = vadd.f32 %v4648_v34, %v6449_v61  ;;  %v4651_v46 = vadd.f32 %v4650_v43, %v4649_v37  ;;  %v4732_v47 = vpop.f32.mrb[35].mxu1  ;;  %v128_v53 = vld [vmem:[%s7223_s1 + $0x370] sm:$0xff] }
 0x13b   :  { %v4733_v48 = vadd.f32 %v4732_v47, %v4731_v42  ;;  %2961 = vmatmul.mubr.bf16.gmra.mrb[140].mxu0 %v4319_v32  ;;  %v4368_v42 = vcombine.high %v104_v20, %v112_v21 }
 0x13c   :  { %v6501_v50 = vadd.f32 %v4730_v41, %v2291_v45  ;;  %v2294_v55 = vadd.f32 %v4651_v46, %v551_v54  ;;  %3081 = vmatmul.mubr.bf16.gmra.mrb[140].mxu1 %v4321_v38  ;;  %2968 = vmatprep.mubr.bf16.mxu0 %v4336_v39  ;;  %v97_v54 = vld [vmem:[%s7223_s1 + $0x278] sm:$0xff]  ;;  %v4370_v46 = vcombine.high %v105_v29, %v113_v31 }
 0x13d   :  { %3088 = vmatprep.mubr.bf16.mxu1 %v4338_v44  ;;  %v4354_v10 = vcombine.high %v89_v59, %v97_v54  ;;  %v4353_v41 = vcombine.low %v89_v59, %v97_v54  ;;  %v129_v59 = vld [vmem:[%s7223_s1 + $0x378] sm:$0xff] }
 0x13e   :  { %v6509_v57 = vadd.f32 %v4733_v48, %v2294_v55  ;;  %v4652_v61 = vpop.f32.mrb[36].mxu0 }
 0x13f   :  { %v4734_v60 = vpop.f32.mrb[36].mxu1  ;;  %v4653_v63 = vpop.f32.mrb[37].mxu0 }
 0x140   :  { %v4654_v1 = vadd.f32 %v4653_v63, %v4652_v61  ;;  %v4735_v2 = vpop.f32.mrb[37].mxu1  ;;  %v4655_v3 = vpop.f32.mrb[38].mxu0  ;;  %v4367_v63 = vcombine.low %v104_v20, %v112_v21  ;;  %v136_v20 = vld [vmem:[%s7223_s1 + $0x3b0] sm:$0xff] }
 0x141   :  { %v4736_v6 = vadd.f32 %v4735_v2, %v4734_v60  ;;  %v4737_v7 = vpop.f32.mrb[38].mxu1  ;;  %v4656_v8 = vpop.f32.mrb[39].mxu0  ;;  %v144_v21 = vld [vmem:[%s7223_s1 + $0x3f0] sm:$0xff] }
 0x142   :  { %v2299_v11 = vadd.f32 %v4654_v1, %v556_v25  ;;  %v4657_v12 = vadd.f32 %v4656_v8, %v4655_v3  ;;  %v4738_v13 = vpop.f32.mrb[39].mxu1  ;;  %v4369_v3 = vcombine.low %v105_v29, %v113_v31 }
 0x143   :  { %v4739_v15 = vadd.f32 %v4738_v13, %v4737_v7  ;;  %2969 = vmatmul.mubr.bf16.gmra.mrb[144].mxu0 %v4335_v0 }
 0x144   :  { %v6517_v19 = vadd.f32 %v4736_v6, %v2299_v11  ;;  %v2302_v24 = vadd.f32 %v4657_v12, %v561_v58  ;;  %3089 = vmatmul.mubr.bf16.gmra.mrb[144].mxu1 %v4337_v4  ;;  %2976 = vmatprep.mubr.bf16.mxu0 %v4352_v5  ;;  %v121_v58 = vld [vmem:[%s7223_s1 + $0x338] sm:$0xff]  ;;  %v4384_v4 = vcombine.high %v120_v51, %v128_v53 }
 0x145   :  { %3096 = vmatprep.mubr.bf16.mxu1 %v4354_v10  ;;  %v4386_v8 = vcombine.high %v121_v58, %v129_v59 }
 0x146   :  { %v6525_v27 = vadd.f32 %v4739_v15, %v2302_v24  ;;  %v4658_v25 = vpop.f32.mrb[40].mxu0 }
 0x147   :  { %v4740_v32 = vpop.f32.mrb[40].mxu1  ;;  %v4659_v34 = vpop.f32.mrb[41].mxu0 }
 0x148   :  { %v4660_v37 = vadd.f32 %v4659_v34, %v4658_v25  ;;  %v4741_v38 = vpop.f32.mrb[41].mxu1  ;;  %v4661_v39 = vpop.f32.mrb[42].mxu0 }
 0x149   :  { %v4742_v43 = vadd.f32 %v4741_v38, %v4740_v32  ;;  %v4743_v44 = vpop.f32.mrb[42].mxu1  ;;  %v4662_v45 = vpop.f32.mrb[43].mxu0  ;;  %v4383_v32 = vcombine.low %v120_v51, %v128_v53  ;;  %v4385_v38 = vcombine.low %v121_v58, %v129_v59  ;;  %v4400_v39 = vcombine.high %v136_v20, %v144_v21  ;;  %v152_v51 = vld [vmem:[%s7223_s1 + $0x430] sm:$0xff]  ;;  %v153_v59 = vld [vmem:[%s7223_s1 + $0x438] sm:$0xff] }
 0x14a   :  { %v2307_v47 = vadd.f32 %v4660_v37, %v566_v28  ;;  %v4744_v48 = vpop.f32.mrb[43].mxu1  ;;  %v137_v28 = vld [vmem:[%s7223_s1 + $0x3b8] sm:$0xff]  ;;  %v160_v53 = vld [vmem:[%s7223_s1 + $0x470] sm:$0xff] }
 0x14b   :  { %2977 = vmatmul.mubr.bf16.gmra.mrb[148].mxu0 %v4351_v36 }
 0x14c   :  { %v6533_v55 = vadd.f32 %v4742_v43, %v2307_v47  ;;  %3097 = vmatmul.mubr.bf16.gmra.mrb[148].mxu1 %v4353_v41  ;;  %2984 = vmatprep.mubr.bf16.mxu0 %v4368_v42 }
 0x14d   :  { %3104 = vmatprep.mubr.bf16.mxu1 %v4370_v46 }
 0x14e   :  { %v4762_v61 = vpop.f32.mrb[44].mxu0 }
 0x14f   :  { %v4844_v54 = vpop.f32.mrb[44].mxu1  ;;  %v4763_v60 = vpop.f32.mrb[45].mxu0 }
 0x150   :  { %v4764_v0 = vadd.f32 %v4763_v60, %v4762_v61  ;;  %v4845_v1 = vpop.f32.mrb[45].mxu1  ;;  %v4765_v2 = vpop.f32.mrb[46].mxu0 }
 0x151   :  { %v4846_v5 = vadd.f32 %v4845_v1, %v4844_v54  ;;  %v4847_v6 = vpop.f32.mrb[46].mxu1  ;;  %v4766_v7 = vpop.f32.mrb[47].mxu0 }
 0x152   :  { %v2467_v10 = vadd.f32 %v4764_v0, %v6369_v9  ;;  %v4767_v11 = vadd.f32 %v4766_v7, %v4765_v2  ;;  %v4848_v12 = vpop.f32.mrb[47].mxu1  ;;  %v4399_v0 = vcombine.low %v136_v20, %v144_v21  ;;  %v168_v20 = vld [vmem:[%s7223_s1 + $0x4b0] sm:$0xff] }
 0x153   :  { %v4849_v13 = vadd.f32 %v4848_v12, %v4847_v6  ;;  %2985 = vmatmul.mubr.bf16.gmra.mrb[152].mxu0 %v4367_v63  ;;  %v176_v21 = vld [vmem:[%s7223_s1 + $0x4f0] sm:$0xff] }
 0x154   :  { %v6548_v15 = vadd.f32 %v4846_v5, %v2467_v10  ;;  %v2470_v24 = vadd.f32 %v4767_v11, %v6377_v14  ;;  %3105 = vmatmul.mubr.bf16.gmra.mrb[152].mxu1 %v4369_v3  ;;  %2992 = vmatprep.mubr.bf16.mxu0 %v4384_v4  ;;  %v145_v14 = vld [vmem:[%s7223_s1 + $0x3f8] sm:$0xff]  ;;  %v4416_v5 = vcombine.high %v152_v51, %v160_v53 }
 0x155   :  { %3112 = vmatprep.mubr.bf16.mxu1 %v4386_v8  ;;  %v4402_v44 = vcombine.high %v137_v28, %v145_v14  ;;  %v4401_v4 = vcombine.low %v137_v28, %v145_v14  ;;  %v169_v14 = vld [vmem:[%s7223_s1 + $0x4b8] sm:$0xff] }
 0x156   :  { %v6557_v9 = vadd.f32 %v4849_v13, %v2470_v24  ;;  %v4768_v25 = vpop.f32.mrb[48].mxu0 }
 0x157   :  { %v4850_v29 = vpop.f32.mrb[48].mxu1  ;;  %v4769_v31 = vpop.f32.mrb[49].mxu0 }
 0x158   :  { %v4770_v34 = vadd.f32 %v4769_v31, %v4768_v25  ;;  %v4851_v36 = vpop.f32.mrb[49].mxu1  ;;  %v4771_v37 = vpop.f32.mrb[50].mxu0 }
 0x159   :  { %v4852_v41 = vadd.f32 %v4851_v36, %v4850_v29  ;;  %v4853_v42 = vpop.f32.mrb[50].mxu1  ;;  %v4772_v43 = vpop.f32.mrb[51].mxu0 }
 0x15a   :  { %v2475_v45 = vadd.f32 %v4770_v34, %v6387_v35  ;;  %v4773_v46 = vadd.f32 %v4772_v43, %v4771_v37  ;;  %v4854_v47 = vpop.f32.mrb[51].mxu1  ;;  %v4415_v34 = vcombine.low %v152_v51, %v160_v53  ;;  %v184_v51 = vld [vmem:[%s7223_s1 + $0x530] sm:$0xff] }
 0x15b   :  { %v4855_v48 = vadd.f32 %v4854_v47, %v4853_v42  ;;  %2993 = vmatmul.mubr.bf16.gmra.mrb[156].mxu0 %v4383_v32 }
 0x15c   :  { %v6566_v61 = vadd.f32 %v4852_v41, %v2475_v45  ;;  %v2478_v54 = vadd.f32 %v4773_v46, %v6395_v40  ;;  %3113 = vmatmul.mubr.bf16.gmra.mrb[156].mxu1 %v4385_v38  ;;  %3000 = vmatprep.mubr.bf16.mxu0 %v4400_v39  ;;  %v161_v40 = vld [vmem:[%s7223_s1 + $0x478] sm:$0xff]  ;;  %v4432_v41 = vcombine.high %v168_v20, %v176_v21 }
 0x15d   :  { %3120 = vmatprep.mubr.bf16.mxu1 %v4402_v44  ;;  %v4418_v10 = vcombine.high %v153_v59, %v161_v40  ;;  %v4417_v39 = vcombine.low %v153_v59, %v161_v40 }
 0x15e   :  { %v6575_v35 = vadd.f32 %v4855_v48, %v2478_v54  ;;  %v4774_v58 = vpop.f32.mrb[52].mxu0 }
 0x15f   :  { %v4856_v60 = vpop.f32.mrb[52].mxu1  ;;  %v4775_v63 = vpop.f32.mrb[53].mxu0 }
 0x160   :  { %v4776_v1 = vadd.f32 %v4775_v63, %v4774_v58  ;;  %v4857_v2 = vpop.f32.mrb[53].mxu1  ;;  %v4777_v3 = vpop.f32.mrb[54].mxu0 }
 0x161   :  { %v4858_v6 = vadd.f32 %v4857_v2, %v4856_v60  ;;  %v4859_v7 = vpop.f32.mrb[54].mxu1  ;;  %v4778_v8 = vpop.f32.mrb[55].mxu0 }
 0x162   :  { %v2483_v11 = vadd.f32 %v4776_v1, %v6404_v62  ;;  %v4779_v12 = vadd.f32 %v4778_v8, %v4777_v3  ;;  %v4860_v13 = vpop.f32.mrb[55].mxu1 }
 0x163   :  { %v4861_v24 = vadd.f32 %v4860_v13, %v4859_v7  ;;  %3001 = vmatmul.mubr.bf16.gmra.mrb[160].mxu0 %v4399_v0  ;;  %v4431_v0 = vcombine.low %v168_v20, %v176_v21 }
 0x164   :  { %v6584_v25 = vadd.f32 %v4858_v6, %v2483_v11  ;;  %v2486_v29 = vadd.f32 %v4779_v12, %v6412_v56  ;;  %3121 = vmatmul.mubr.bf16.gmra.mrb[160].mxu1 %v4401_v4  ;;  %3008 = vmatprep.mubr.bf16.mxu0 %v4416_v5  ;;  %v177_v56 = vld [vmem:[%s7223_s1 + $0x4f8] sm:$0xff]  ;;  %v4448_v4 = vcombine.high %v184_v51, %v184_v51 }
 0x165   :  { %3128 = vmatprep.mubr.bf16.mxu1 %v4418_v10  ;;  %v4434_v45 = vcombine.high %v169_v14, %v177_v56  ;;  %v4433_v3 = vcombine.low %v169_v14, %v177_v56  ;;  %v4447_v56 = vcombine.low %v184_v51, %v184_v51 }
 0x166   :  { %v6593_v62 = vadd.f32 %v4861_v24, %v2486_v29  ;;  %v4780_v28 = vpop.f32.mrb[56].mxu0 }
 0x167   :  { %v4862_v31 = vpop.f32.mrb[56].mxu1  ;;  %v4781_v32 = vpop.f32.mrb[57].mxu0 }
 0x168   :  { %v4782_v36 = vadd.f32 %v4781_v32, %v4780_v28  ;;  %v4863_v37 = vpop.f32.mrb[57].mxu1  ;;  %v4783_v38 = vpop.f32.mrb[58].mxu0 }
 0x169   :  { %v4864_v42 = vadd.f32 %v4863_v37, %v4862_v31  ;;  %v4865_v43 = vpop.f32.mrb[58].mxu1  ;;  %v4784_v44 = vpop.f32.mrb[59].mxu0 }
 0x16a   :  { %v2491_v46 = vadd.f32 %v4782_v36, %v6420_v26  ;;  %v4785_v47 = vadd.f32 %v4784_v44, %v4783_v38  ;;  %v4866_v48 = vpop.f32.mrb[59].mxu1  ;;  %v185_v26 = vld [vmem:[%s7223_s1 + $0x538] sm:$0xff] }
 0x16b   :  { %v4867_v54 = vadd.f32 %v4866_v48, %v4865_v43  ;;  %3009 = vmatmul.mubr.bf16.gmra.mrb[164].mxu0 %v4415_v34  ;;  %v4450_v8 = vcombine.high %v185_v26, %v185_v26  ;;  %v4449_v34 = vcombine.low %v185_v26, %v185_v26 }
 0x16c   :  { %v6602_v58 = vadd.f32 %v4864_v42, %v2491_v46  ;;  %v2494_v60 = vadd.f32 %v4785_v47, %v6425_v30  ;;  %3129 = vmatmul.mubr.bf16.gmra.mrb[164].mxu1 %v4417_v39  ;;  %3016 = vmatprep.mubr.bf16.mxu0 %v4432_v41 }
 0x16d   :  { %3136 = vmatprep.mubr.bf16.mxu1 %v4434_v45 }
 0x16e   :  { %v6608_v53 = vadd.f32 %v4867_v54, %v2494_v60  ;;  %v4786_v59 = vpop.f32.mrb[60].mxu0 }
 0x16f   :  { %v4868_v40 = vpop.f32.mrb[60].mxu1  ;;  %v4787_v63 = vpop.f32.mrb[61].mxu0 }
 0x170   :  { %v4788_v1 = vadd.f32 %v4787_v63, %v4786_v59  ;;  %v4869_v2 = vpop.f32.mrb[61].mxu1  ;;  %v4789_v30 = vpop.f32.mrb[62].mxu0 }
 0x171   :  { %v4870_v5 = vadd.f32 %v4869_v2, %v4868_v40  ;;  %v4871_v6 = vpop.f32.mrb[62].mxu1  ;;  %v4790_v7 = vpop.f32.mrb[63].mxu0 }
 0x172   :  { %v2499_v10 = vadd.f32 %v4788_v1, %v6433_v52  ;;  %v4791_v11 = vadd.f32 %v4790_v7, %v4789_v30  ;;  %v4872_v12 = vpop.f32.mrb[63].mxu1 }
 0x173   :  { %v4873_v13 = vadd.f32 %v4872_v12, %v4871_v6  ;;  %3017 = vmatmul.mubr.bf16.gmra.mrb[168].mxu0 %v4431_v0 }
 0x174   :  { %v6614_v24 = vadd.f32 %v4870_v5, %v2499_v10  ;;  %v2502_v29 = vadd.f32 %v4791_v11, %v6441_v18  ;;  %3137 = vmatmul.mubr.bf16.gmra.mrb[168].mxu1 %v4433_v3  ;;  %3024 = vmatprep.mubr.bf16.mxu0 %v4448_v4 }
 0x175   :  { %3144 = vmatprep.mubr.bf16.mxu1 %v4450_v8 }
 0x176   :  { %v6617_v20 = vadd.f32 %v4873_v13, %v2502_v29  ;;  %v4792_v21 = vpop.f32.mrb[64].mxu0 }
 0x177   :  { %v4874_v28 = vpop.f32.mrb[64].mxu1  ;;  %v4793_v14 = vpop.f32.mrb[65].mxu0 }
 0x178   :  { %v4794_v31 = vadd.f32 %v4793_v14, %v4792_v21  ;;  %v4875_v32 = vpop.f32.mrb[65].mxu1  ;;  %v4795_v52 = vpop.f32.mrb[66].mxu0 }
 0x179   :  { %v4876_v36 = vadd.f32 %v4875_v32, %v4874_v28  ;;  %v4877_v37 = vpop.f32.mrb[66].mxu1  ;;  %v4796_v38 = vpop.f32.mrb[67].mxu0 }
 0x17a   :  { %v2507_v39 = vadd.f32 %v4794_v31, %v6451_v17  ;;  %v4797_v41 = vadd.f32 %v4796_v38, %v4795_v52  ;;  %v4878_v18 = vpop.f32.mrb[67].mxu1 }
 0x17b   :  { %v4879_v42 = vadd.f32 %v4878_v18, %v4877_v37  ;;  %3025 = vmatmul.mubr.bf16.gmra.mrb[172].mxu0 %v4447_v56 }
 0x17c   :  { %v6620_v43 = vadd.f32 %v4876_v36, %v2507_v39  ;;  %v2510_v44 = vadd.f32 %v4797_v41, %v6459_v23  ;;  %3145 = vmatmul.mubr.bf16.gmra.mrb[172].mxu1 %v4449_v34 }
 0x17e   :  { %v6623_v45 = vadd.f32 %v4879_v42, %v2510_v44  ;;  %v4798_v46 = vpop.f32.mrb[68].mxu0 }
 0x17f   :  { %v4880_v47 = vpop.f32.mrb[68].mxu1  ;;  %v4799_v48 = vpop.f32.mrb[69].mxu0 }
 0x180   :  { %v4800_v54 = vadd.f32 %v4799_v48, %v4798_v46  ;;  %v4881_v60 = vpop.f32.mrb[69].mxu1  ;;  %v4801_v51 = vpop.f32.mrb[70].mxu0 }
 0x181   :  { %v4882_v59 = vadd.f32 %v4881_v60, %v4880_v47  ;;  %v4883_v26 = vpop.f32.mrb[70].mxu1  ;;  %v4802_v17 = vpop.f32.mrb[71].mxu0 }
 0x182   :  { %v2515_v40 = vadd.f32 %v4800_v54, %v6468_v49  ;;  %v4803_v63 = vadd.f32 %v4802_v17, %v4801_v51  ;;  %v4884_v0 = vpop.f32.mrb[71].mxu1 }
 0x183   :  { %v4885_v1 = vadd.f32 %v4884_v0, %v4883_v26 }
 0x184   :  { %v6626_v2 = vadd.f32 %v4882_v59, %v2515_v40  ;;  %v2518_v23 = vadd.f32 %v4803_v63, %v6476_v33 }
 0x186   :  { %v6629_v30 = vadd.f32 %v4885_v1, %v2518_v23  ;;  %v4804_v3 = vpop.f32.mrb[72].mxu0 }
 0x187   :  { %v4886_v4 = vpop.f32.mrb[72].mxu1  ;;  %v4805_v5 = vpop.f32.mrb[73].mxu0 }
 0x188   :  { %v4806_v6 = vadd.f32 %v4805_v5, %v4804_v3  ;;  %v4887_v7 = vpop.f32.mrb[73].mxu1  ;;  %v4807_v8 = vpop.f32.mrb[74].mxu0 }
 0x189   :  { %v4888_v10 = vadd.f32 %v4887_v7, %v4886_v4  ;;  %v4889_v11 = vpop.f32.mrb[74].mxu1  ;;  %v4808_v12 = vpop.f32.mrb[75].mxu0 }
 0x18a   :  { %v2523_v49 = vadd.f32 %v4806_v6, %v6484_v16  ;;  %v4809_v13 = vadd.f32 %v4808_v12, %v4807_v8  ;;  %v4890_v29 = vpop.f32.mrb[75].mxu1 }
 0x18b   :  { %v4891_v21 = vadd.f32 %v4890_v29, %v4889_v11 }
 0x18c   :  { %v6632_v28 = vadd.f32 %v4888_v10, %v2523_v49  ;;  %v2526_v33 = vadd.f32 %v4809_v13, %v6492_v22 }
 0x18e   :  { %v6635_v14 = vadd.f32 %v4891_v21, %v2526_v33  ;;  %v4810_v56 = vpop.f32.mrb[76].mxu0 }
 0x18f   :  { %v4892_v31 = vpop.f32.mrb[76].mxu1  ;;  %v4811_v32 = vpop.f32.mrb[77].mxu0 }
 0x190   :  { %v4812_v52 = vadd.f32 %v4811_v32, %v4810_v56  ;;  %v4893_v34 = vpop.f32.mrb[77].mxu1  ;;  %v4813_v36 = vpop.f32.mrb[78].mxu0 }
 0x191   :  { %v4894_v37 = vadd.f32 %v4893_v34, %v4892_v31  ;;  %v4895_v38 = vpop.f32.mrb[78].mxu1  ;;  %v4814_v39 = vpop.f32.mrb[79].mxu0 }
 0x192   :  { %v2531_v16 = vadd.f32 %v4812_v52, %v6501_v50  ;;  %v4815_v41 = vadd.f32 %v4814_v39, %v4813_v36  ;;  %v4896_v18 = vpop.f32.mrb[79].mxu1 }
 0x193   :  { %v4897_v42 = vadd.f32 %v4896_v18, %v4895_v38 }
 0x194   :  { %v6638_v44 = vadd.f32 %v4894_v37, %v2531_v16  ;;  %v2534_v22 = vadd.f32 %v4815_v41, %v6509_v57 }
 0x196   :  { %v6641_v46 = vadd.f32 %v4897_v42, %v2534_v22  ;;  %v4816_v47 = vpop.f32.mrb[80].mxu0 }
 0x197   :  { %v4898_v48 = vpop.f32.mrb[80].mxu1  ;;  %v4817_v54 = vpop.f32.mrb[81].mxu0 }
 0x198   :  { %v4818_v60 = vadd.f32 %v4817_v54, %v4816_v47  ;;  %v4899_v51 = vpop.f32.mrb[81].mxu1  ;;  %v4819_v59 = vpop.f32.mrb[82].mxu0 }
 0x199   :  { %v4900_v26 = vadd.f32 %v4899_v51, %v4898_v48  ;;  %v4901_v17 = vpop.f32.mrb[82].mxu1  ;;  %v4820_v40 = vpop.f32.mrb[83].mxu0 }
 0x19a   :  { %v2539_v50 = vadd.f32 %v4818_v60, %v6517_v19  ;;  %v4821_v63 = vadd.f32 %v4820_v40, %v4819_v59  ;;  %v4902_v0 = vpop.f32.mrb[83].mxu1 }
 0x19b   :  { %v4903_v1 = vadd.f32 %v4902_v0, %v4901_v17 }
 0x19c   :  { %v6644_v23 = vadd.f32 %v4900_v26, %v2539_v50  ;;  %v2542_v57 = vadd.f32 %v4821_v63, %v6525_v27 }
 0x19e   :  { %v6647_v3 = vadd.f32 %v4903_v1, %v2542_v57  ;;  %v4822_v4 = vpop.f32.mrb[84].mxu0 }
 0x19f   :  { %v4904_v5 = vpop.f32.mrb[84].mxu1  ;;  %v4823_v6 = vpop.f32.mrb[85].mxu0 }
 0x1a0   :  { %v4824_v7 = vadd.f32 %v4823_v6, %v4822_v4  ;;  %v4905_v8 = vpop.f32.mrb[85].mxu1  ;;  %v4825_v10 = vpop.f32.mrb[86].mxu0 }
 0x1a1   :  { %v4906_v11 = vadd.f32 %v4905_v8, %v4904_v5  ;;  %v4907_v12 = vpop.f32.mrb[86].mxu1  ;;  %v4826_v49 = vpop.f32.mrb[87].mxu0 }
 0x1a2   :  { %v2547_v19 = vadd.f32 %v4824_v7, %v6533_v55  ;;  %v4908_v13 = vpop.f32.mrb[87].mxu1 }
 0x1a4   :  { %v6650_v29 = vadd.f32 %v4906_v11, %v2547_v19 }
 0x1a6   :  { %v4926_v21 = vpop.f32.mrb[88].mxu0 }
 0x1a7   :  { %v5008_v33 = vpop.f32.mrb[88].mxu1  ;;  %v4927_v56 = vpop.f32.mrb[89].mxu0 }
 0x1a8   :  { %v4928_v27 = vadd.f32 %v4927_v56, %v4926_v21  ;;  %v5009_v31 = vpop.f32.mrb[89].mxu1  ;;  %v4929_v32 = vpop.f32.mrb[90].mxu0 }
 0x1a9   :  { %v5010_v52 = vadd.f32 %v5009_v31, %v5008_v33  ;;  %v5011_v34 = vpop.f32.mrb[90].mxu1  ;;  %v4930_v36 = vpop.f32.mrb[91].mxu0 }
 0x1aa   :  { %v2707_v37 = vadd.f32 %v4928_v27, %v6548_v15  ;;  %v4931_v38 = vadd.f32 %v4930_v36, %v4929_v32  ;;  %v5012_v39 = vpop.f32.mrb[91].mxu1 }
 0x1ab   :  { %v5013_v16 = vadd.f32 %v5012_v39, %v5011_v34 }
 0x1ac   :  { %v6653_v41 = vadd.f32 %v5010_v52, %v2707_v37  ;;  %v2710_v55 = vadd.f32 %v4931_v38, %v6557_v9 }
 0x1ae   :  { %v6656_v18 = vadd.f32 %v5013_v16, %v2710_v55  ;;  %v4932_v42 = vpop.f32.mrb[92].mxu0 }
 0x1af   :  { %v5014_v22 = vpop.f32.mrb[92].mxu1  ;;  %v4933_v47 = vpop.f32.mrb[93].mxu0 }
 0x1b0   :  { %v4934_v48 = vadd.f32 %v4933_v47, %v4932_v42  ;;  %v5015_v54 = vpop.f32.mrb[93].mxu1  ;;  %v4935_v60 = vpop.f32.mrb[94].mxu0 }
 0x1b1   :  { %v5016_v51 = vadd.f32 %v5015_v54, %v5014_v22  ;;  %v5017_v59 = vpop.f32.mrb[94].mxu1  ;;  %v4936_v26 = vpop.f32.mrb[95].mxu0 }
 0x1b2   :  { %v2715_v15 = vadd.f32 %v4934_v48, %v6566_v61  ;;  %v4937_v17 = vadd.f32 %v4936_v26, %v4935_v60  ;;  %v5018_v40 = vpop.f32.mrb[95].mxu1 }
 0x1b3   :  { %v5019_v50 = vadd.f32 %v5018_v40, %v5017_v59 }
 0x1b4   :  { %v6659_v63 = vadd.f32 %v5016_v51, %v2715_v15  ;;  %v2718_v9 = vadd.f32 %v4937_v17, %v6575_v35 }
 0x1b6   :  { %v6662_v0 = vadd.f32 %v5019_v50, %v2718_v9  ;;  %v4938_v1 = vpop.f32.mrb[96].mxu0 }
 0x1b7   :  { %v5020_v57 = vpop.f32.mrb[96].mxu1  ;;  %v4939_v4 = vpop.f32.mrb[97].mxu0 }
 0x1b8   :  { %v4940_v5 = vadd.f32 %v4939_v4, %v4938_v1  ;;  %v5021_v6 = vpop.f32.mrb[97].mxu1  ;;  %v4941_v7 = vpop.f32.mrb[98].mxu0 }
 0x1b9   :  { %v5022_v8 = vadd.f32 %v5021_v6, %v5020_v57  ;;  %v5023_v10 = vpop.f32.mrb[98].mxu1  ;;  %v4942_v11 = vpop.f32.mrb[99].mxu0 }
 0x1ba   :  { %v2723_v61 = vadd.f32 %v4940_v5, %v6584_v25  ;;  %v4943_v12 = vadd.f32 %v4942_v11, %v4941_v7  ;;  %v5024_v49 = vpop.f32.mrb[99].mxu1 }
 0x1bb   :  { %v5025_v19 = vadd.f32 %v5024_v49, %v5023_v10 }
 0x1bc   :  { %v6665_v13 = vadd.f32 %v5022_v8, %v2723_v61  ;;  %v2726_v35 = vadd.f32 %v4943_v12, %v6593_v62 }
 0x1be   :  { %v6668_v21 = vadd.f32 %v5025_v19, %v2726_v35  ;;  %v4944_v33 = vpop.f32.mrb[100].mxu0 }
 0x1bf   :  { %v5026_v56 = vpop.f32.mrb[100].mxu1  ;;  %v4945_v27 = vpop.f32.mrb[101].mxu0 }
 0x1c0   :  { %v4946_v31 = vadd.f32 %v4945_v27, %v4944_v33  ;;  %v5027_v32 = vpop.f32.mrb[101].mxu1  ;;  %v4947_v52 = vpop.f32.mrb[102].mxu0 }
 0x1c1   :  { %v5028_v34 = vadd.f32 %v5027_v32, %v5026_v56  ;;  %v5029_v36 = vpop.f32.mrb[102].mxu1  ;;  %v4948_v37 = vpop.f32.mrb[103].mxu0 }
 0x1c2   :  { %v2731_v25 = vadd.f32 %v4946_v31, %v6602_v58  ;;  %v4949_v38 = vadd.f32 %v4948_v37, %v4947_v52  ;;  %v5030_v39 = vpop.f32.mrb[103].mxu1 }
 0x1c3   :  { %v5031_v16 = vadd.f32 %v5030_v39, %v5029_v36 }
 0x1c4   :  { %v6671_v55 = vadd.f32 %v5028_v34, %v2731_v25  ;;  %v2734_v62 = vadd.f32 %v4949_v38, %v6608_v53 }
 0x1c6   :  { %v6674_v42 = vadd.f32 %v5031_v16, %v2734_v62  ;;  %v4950_v22 = vpop.f32.mrb[104].mxu0 }
 0x1c7   :  { %v5032_v47 = vpop.f32.mrb[104].mxu1  ;;  %v4951_v48 = vpop.f32.mrb[105].mxu0 }
 0x1c8   :  { %v4952_v54 = vadd.f32 %v4951_v48, %v4950_v22  ;;  %v5033_v60 = vpop.f32.mrb[105].mxu1  ;;  %v4953_v51 = vpop.f32.mrb[106].mxu0 }
 0x1c9   :  { %v5034_v59 = vadd.f32 %v5033_v60, %v5032_v47  ;;  %v5035_v26 = vpop.f32.mrb[106].mxu1  ;;  %v4954_v15 = vpop.f32.mrb[107].mxu0 }
 0x1ca   :  { %v2739_v58 = vadd.f32 %v4952_v54, %v6614_v24  ;;  %v4955_v17 = vadd.f32 %v4954_v15, %v4953_v51  ;;  %v5036_v40 = vpop.f32.mrb[107].mxu1 }
 0x1cb   :  { %v5037_v50 = vadd.f32 %v5036_v40, %v5035_v26 }
 0x1cc   :  { %v6677_v9 = vadd.f32 %v5034_v59, %v2739_v58  ;;  %v2742_v53 = vadd.f32 %v4955_v17, %v6617_v20 }
 0x1ce   :  { %v6680_v1 = vadd.f32 %v5037_v50, %v2742_v53  ;;  %v4956_v57 = vpop.f32.mrb[108].mxu0 }
 0x1cf   :  { %v5038_v4 = vpop.f32.mrb[108].mxu1  ;;  %v4957_v5 = vpop.f32.mrb[109].mxu0 }
 0x1d0   :  { %v4958_v6 = vadd.f32 %v4957_v5, %v4956_v57  ;;  %v5039_v7 = vpop.f32.mrb[109].mxu1  ;;  %v4959_v8 = vpop.f32.mrb[110].mxu0 }
 0x1d1   :  { %v5040_v10 = vadd.f32 %v5039_v7, %v5038_v4  ;;  %v5041_v11 = vpop.f32.mrb[110].mxu1  ;;  %v4960_v61 = vpop.f32.mrb[111].mxu0 }
 0x1d2   :  { %v2747_v24 = vadd.f32 %v4958_v6, %v6620_v43  ;;  %v4961_v12 = vadd.f32 %v4960_v61, %v4959_v8  ;;  %v5042_v49 = vpop.f32.mrb[111].mxu1 }
 0x1d3   :  { %v5043_v19 = vadd.f32 %v5042_v49, %v5041_v11 }
 0x1d4   :  { %v6683_v35 = vadd.f32 %v5040_v10, %v2747_v24  ;;  %v2750_v20 = vadd.f32 %v4961_v12, %v6623_v45 }
 0x1d6   :  { %v6686_v33 = vadd.f32 %v5043_v19, %v2750_v20  ;;  %v4962_v56 = vpop.f32.mrb[112].mxu0 }
 0x1d7   :  { %v5044_v27 = vpop.f32.mrb[112].mxu1  ;;  %v4963_v31 = vpop.f32.mrb[113].mxu0 }
 0x1d8   :  { %v4964_v32 = vadd.f32 %v4963_v31, %v4962_v56  ;;  %v5045_v52 = vpop.f32.mrb[113].mxu1  ;;  %v4965_v34 = vpop.f32.mrb[114].mxu0 }
 0x1d9   :  { %v5046_v36 = vadd.f32 %v5045_v52, %v5044_v27  ;;  %v5047_v37 = vpop.f32.mrb[114].mxu1  ;;  %v4966_v25 = vpop.f32.mrb[115].mxu0 }
 0x1da   :  { %v2755_v43 = vadd.f32 %v4964_v32, %v6626_v2  ;;  %v4967_v38 = vadd.f32 %v4966_v25, %v4965_v34  ;;  %v5048_v39 = vpop.f32.mrb[115].mxu1 }
 0x1db   :  { %v5049_v16 = vadd.f32 %v5048_v39, %v5047_v37 }
 0x1dc   :  { %v6689_v62 = vadd.f32 %v5046_v36, %v2755_v43  ;;  %v2758_v45 = vadd.f32 %v4967_v38, %v6629_v30 }
 0x1de   :  { %v6692_v22 = vadd.f32 %v5049_v16, %v2758_v45  ;;  %v4968_v47 = vpop.f32.mrb[116].mxu0 }
 0x1df   :  { %v5050_v48 = vpop.f32.mrb[116].mxu1  ;;  %v4969_v54 = vpop.f32.mrb[117].mxu0 }
 0x1e0   :  { %v4970_v60 = vadd.f32 %v4969_v54, %v4968_v47  ;;  %v5051_v51 = vpop.f32.mrb[117].mxu1  ;;  %v4971_v59 = vpop.f32.mrb[118].mxu0 }
 0x1e1   :  { %v5052_v26 = vadd.f32 %v5051_v51, %v5050_v48  ;;  %v5053_v15 = vpop.f32.mrb[118].mxu1  ;;  %v4972_v58 = vpop.f32.mrb[119].mxu0 }
 0x1e2   :  { %v2763_v2 = vadd.f32 %v4970_v60, %v6632_v28  ;;  %v4973_v17 = vadd.f32 %v4972_v58, %v4971_v59  ;;  %v5054_v40 = vpop.f32.mrb[119].mxu1 }
 0x1e3   :  { %v5055_v50 = vadd.f32 %v5054_v40, %v5053_v15 }
 0x1e4   :  { %v6695_v53 = vadd.f32 %v5052_v26, %v2763_v2  ;;  %v2766_v30 = vadd.f32 %v4973_v17, %v6635_v14 }
 0x1e6   :  { %v6698_v57 = vadd.f32 %v5055_v50, %v2766_v30  ;;  %v4974_v4 = vpop.f32.mrb[120].mxu0 }
 0x1e7   :  { %v5056_v5 = vpop.f32.mrb[120].mxu1  ;;  %v4975_v6 = vpop.f32.mrb[121].mxu0 }
 0x1e8   :  { %v4976_v7 = vadd.f32 %v4975_v6, %v4974_v4  ;;  %v5057_v8 = vpop.f32.mrb[121].mxu1  ;;  %v4977_v10 = vpop.f32.mrb[122].mxu0 }
 0x1e9   :  { %v5058_v11 = vadd.f32 %v5057_v8, %v5056_v5  ;;  %v5059_v61 = vpop.f32.mrb[122].mxu1  ;;  %v4978_v24 = vpop.f32.mrb[123].mxu0 }
 0x1ea   :  { %v2771_v28 = vadd.f32 %v4976_v7, %v6638_v44  ;;  %v4979_v12 = vadd.f32 %v4978_v24, %v4977_v10  ;;  %v5060_v49 = vpop.f32.mrb[123].mxu1 }
 0x1eb   :  { %v5061_v19 = vadd.f32 %v5060_v49, %v5059_v61 }
 0x1ec   :  { %v6701_v20 = vadd.f32 %v5058_v11, %v2771_v28  ;;  %v2774_v14 = vadd.f32 %v4979_v12, %v6641_v46 }
 0x1ee   :  { %v6704_v56 = vadd.f32 %v5061_v19, %v2774_v14  ;;  %v4980_v27 = vpop.f32.mrb[124].mxu0 }
 0x1ef   :  { %v5062_v31 = vpop.f32.mrb[124].mxu1  ;;  %v4981_v32 = vpop.f32.mrb[125].mxu0 }
 0x1f0   :  { %v4982_v52 = vadd.f32 %v4981_v32, %v4980_v27  ;;  %v5063_v34 = vpop.f32.mrb[125].mxu1  ;;  %v4983_v36 = vpop.f32.mrb[126].mxu0 }
 0x1f1   :  { %v5064_v37 = vadd.f32 %v5063_v34, %v5062_v31  ;;  %v5065_v25 = vpop.f32.mrb[126].mxu1  ;;  %v4984_v43 = vpop.f32.mrb[127].mxu0 }
 0x1f2   :  { %v2779_v44 = vadd.f32 %v4982_v52, %v6644_v23  ;;  %v4985_v38 = vadd.f32 %v4984_v43, %v4983_v36  ;;  %v5066_v39 = vpop.f32.mrb[127].mxu1 }
 0x1f3   :  { %v5067_v16 = vadd.f32 %v5066_v39, %v5065_v25 }
 0x1f4   :  { %v6707_v45 = vadd.f32 %v5064_v37, %v2779_v44  ;;  %v2782_v46 = vadd.f32 %v4985_v38, %v6647_v3 }
 0x1f6   :  { %v6710_v47 = vadd.f32 %v5067_v16, %v2782_v46  ;;  %v4986_v48 = vpop.f32.mrb[128].mxu0 }
 0x1f7   :  { %v5068_v54 = vpop.f32.mrb[128].mxu1  ;;  %v4987_v60 = vpop.f32.mrb[129].mxu0 }
 0x1f8   :  { %v4988_v51 = vadd.f32 %v4987_v60, %v4986_v48  ;;  %v5069_v59 = vpop.f32.mrb[129].mxu1  ;;  %v4989_v26 = vpop.f32.mrb[130].mxu0 }
 0x1f9   :  { %v5070_v15 = vadd.f32 %v5069_v59, %v5068_v54  ;;  %v5071_v58 = vpop.f32.mrb[130].mxu1  ;;  %v4990_v2 = vpop.f32.mrb[131].mxu0 }
 0x1fa   :  { %v2787_v23 = vadd.f32 %v4988_v51, %v6650_v29  ;;  %v5072_v17 = vpop.f32.mrb[131].mxu1 }
 0x1fc   :  { %v6713_v40 = vadd.f32 %v5070_v15, %v2787_v23 }
 0x1fe   :  { %v5090_v50 = vpop.f32.mrb[132].mxu0 }
 0x1ff   :  { %v5172_v30 = vpop.f32.mrb[132].mxu1  ;;  %v5091_v4 = vpop.f32.mrb[133].mxu0 }
 0x200   :  { %v5092_v3 = vadd.f32 %v5091_v4, %v5090_v50  ;;  %v5173_v5 = vpop.f32.mrb[133].mxu1  ;;  %v5093_v6 = vpop.f32.mrb[134].mxu0 }
 0x201   :  { %v5174_v7 = vadd.f32 %v5173_v5, %v5172_v30  ;;  %v5175_v8 = vpop.f32.mrb[134].mxu1  ;;  %v5094_v10 = vpop.f32.mrb[135].mxu0 }
 0x202   :  { %v2947_v11 = vadd.f32 %v5092_v3, %v6653_v41  ;;  %v5095_v61 = vadd.f32 %v5094_v10, %v5093_v6  ;;  %v5176_v24 = vpop.f32.mrb[135].mxu1 }
 0x203   :  { %v5177_v28 = vadd.f32 %v5176_v24, %v5175_v8 }
 0x204   :  { %v6716_v12 = vadd.f32 %v5174_v7, %v2947_v11  ;;  %v2950_v29 = vadd.f32 %v5095_v61, %v6656_v18 }
 0x206   :  { %v6719_v49 = vadd.f32 %v5177_v28, %v2950_v29  ;;  %v5096_v19 = vpop.f32.mrb[136].mxu0  ;;  %v3152_v25 = vrot.slane %v6716_v12, 4 }
 0x207   :  { %v5178_v14 = vpop.f32.mrb[136].mxu1  ;;  %v5097_v27 = vpop.f32.mrb[137].mxu0 }
 0x208   :  { %v3158_v31 = vrot.slane %v6719_v49, 4  ;;  %v5098_v32 = vadd.f32 %v5097_v27, %v5096_v19  ;;  %v5179_v52 = vpop.f32.mrb[137].mxu1  ;;  %v5099_v34 = vpop.f32.mrb[138].mxu0  ;;  %v3153_v48 = vmax.f32 %v6716_v12, %v3152_v25 }
 0x209   :  { %v5180_v36 = vadd.f32 %v5179_v52, %v5178_v14  ;;  %v5181_v37 = vpop.f32.mrb[138].mxu1  ;;  %v5100_v41 = vpop.f32.mrb[139].mxu0 }
 0x20a   :  { %v2955_v43 = vadd.f32 %v5098_v32, %v6659_v63  ;;  %v5101_v44 = vadd.f32 %v5100_v41, %v5099_v34  ;;  %v5182_v38 = vpop.f32.mrb[139].mxu1  ;;  %v3159_v39 = vmax.f32 %v6719_v49, %v3158_v31  ;;  %v3154_v4 = vrot.slane %v3153_v48, 2 }
 0x20b   :  { %v5183_v18 = vadd.f32 %v5182_v38, %v5181_v37 }
 0x20c   :  { %v6725_v16 = vadd.f32 %v5180_v36, %v2955_v43  ;;  %v2958_v46 = vadd.f32 %v5101_v44, %v6662_v0  ;;  %v3160_v15 = vrot.slane %v3159_v39, 2  ;;  %v3155_v19 = vmax.f32 %v3153_v48, %v3154_v4 }
 0x20e   :  { %v3164_v54 = vrot.slane %v6725_v16, 4  ;;  %v6730_v60 = vadd.f32 %v5183_v18, %v2958_v46  ;;  %v5102_v51 = vpop.f32.mrb[140].mxu0  ;;  %v3161_v11 = vmax.f32 %v3159_v39, %v3160_v15  ;;  %v3156_v39 = vrot.slane %v3155_v19, 1 }
 0x20f   :  { %v5184_v59 = vpop.f32.mrb[140].mxu1  ;;  %v5103_v26 = vpop.f32.mrb[141].mxu0 }
 0x210   :  { %v3165_v63 = vmax.f32 %v6725_v16, %v3164_v54  ;;  %v3170_v58 = vrot.slane %v6730_v60, 4  ;;  %v5185_v2 = vpop.f32.mrb[141].mxu1  ;;  %v5105_v23 = vpop.f32.mrb[142].mxu0  ;;  %v5104_v17 = vadd.f32 %v5103_v26, %v5102_v51  ;;  %v3162_v34 = vrot.slane %v3161_v11, 1 }
 0x211   :  { %v5186_v50 = vadd.f32 %v5185_v2, %v5184_v59  ;;  %v5187_v30 = vpop.f32.mrb[142].mxu1  ;;  %v5106_v0 = vpop.f32.mrb[143].mxu0 }
 0x212   :  { %v3166_v3 = vrot.slane %v3165_v63, 2  ;;  %v3171_v5 = vmax.f32 %v6730_v60, %v3170_v58  ;;  %v5107_v6 = vadd.f32 %v5106_v0, %v5105_v23  ;;  %v5188_v7 = vpop.f32.mrb[143].mxu1  ;;  %v2963_v8 = vadd.f32 %v5104_v17, %v6665_v13 }
 0x213   :  { %v5189_v10 = vadd.f32 %v5188_v7, %v5187_v30  ;;  %v3163_v15 = vmax.f32 %v3161_v11, %v3162_v34  ;;  %v3157_v30 = vmax.f32 %v3155_v19, %v3156_v39 }
 0x214   :  { %v2966_v61 = vadd.f32 %v5107_v6, %v6668_v21  ;;  %v3167_v24 = vmax.f32 %v3165_v63, %v3166_v3  ;;  %v3172_v28 = vrot.slane %v3171_v5, 2  ;;  %v6737_v29 = vadd.f32 %v5186_v50, %v2963_v8 }
 0x216   :  { %v6739_v14 = vadd.f32 %v5189_v10, %v2966_v61  ;;  %v5108_v27 = vpop.f32.mrb[144].mxu0  ;;  %v3176_v31 = vrot.slane %v6737_v29, 4  ;;  %v3168_v25 = vrot.slane %v3167_v24, 1  ;;  %v3173_v21 = vmax.f32 %v3171_v5, %v3172_v28 }
 0x217   :  { %v5190_v32 = vpop.f32.mrb[144].mxu1  ;;  %v5109_v52 = vpop.f32.mrb[145].mxu0 }
 0x218   :  { %v3182_v36 = vrot.slane %v6739_v14, 4  ;;  %v5110_v13 = vadd.f32 %v5109_v52, %v5108_v27  ;;  %v5191_v37 = vpop.f32.mrb[145].mxu1  ;;  %v5111_v41 = vpop.f32.mrb[146].mxu0  ;;  %v3177_v43 = vmax.f32 %v6737_v29, %v3176_v31  ;;  %v3169_v23 = vmax.f32 %v3167_v24, %v3168_v25 }
 0x219   :  { %v5192_v44 = vadd.f32 %v5191_v37, %v5190_v32  ;;  %v5193_v38 = vpop.f32.mrb[146].mxu1  ;;  %v5112_v18 = vpop.f32.mrb[147].mxu0  ;;  %v3174_v17 = vrot.slane %v3173_v21, 1  ;;  %v3300_v24 = vsel %vm3299_vm0, %v3163_v15, %v3157_v30 }
 0x21a   :  { %v3183_v46 = vmax.f32 %v6739_v14, %v3182_v36  ;;  %v2971_v48 = vadd.f32 %v5110_v13, %v6671_v55  ;;  %v5113_v54 = vadd.f32 %v5112_v18, %v5111_v41  ;;  %v5194_v51 = vpop.f32.mrb[147].mxu1  ;;  %v3178_v59 = vrot.slane %v3177_v43, 2 }
 0x21b   :  { %v5195_v26 = vadd.f32 %v5194_v51, %v5193_v38  ;;  %v3175_v28 = vmax.f32 %v3173_v21, %v3174_v17  ;;  %v3302_v52 = vsel %vm3301_vm1, %v3169_v23, %v3300_v24 }
 0x21c   :  { %v3184_v63 = vrot.slane %v3183_v46, 2  ;;  %v6746_v58 = vadd.f32 %v5192_v44, %v2971_v48  ;;  %v2974_v2 = vadd.f32 %v5113_v54, %v6674_v42  ;;  %v3179_v50 = vmax.f32 %v3177_v43, %v3178_v59 }
 0x21d   :  { %v3304_v39 = vsel %vm3303_vm2, %v3175_v28, %v3302_v52 }
 0x21e   :  { %v3185_v0 = vmax.f32 %v3183_v46, %v3184_v63  ;;  %v3188_v4 = vrot.slane %v6746_v58, 4  ;;  %v6750_v55 = vadd.f32 %v5195_v26, %v2974_v2  ;;  %v5114_v3 = vpop.f32.mrb[148].mxu0  ;;  %v3180_v5 = vrot.slane %v3179_v50, 1 }
 0x21f   :  { %v5196_v6 = vpop.f32.mrb[148].mxu1  ;;  %v5115_v7 = vpop.f32.mrb[149].mxu0 }
 0x220   :  { %v3189_v8 = vmax.f32 %v6746_v58, %v3188_v4  ;;  %v3194_v10 = vrot.slane %v6750_v55, 4  ;;  %v5116_v42 = vadd.f32 %v5115_v7, %v5114_v3  ;;  %v5197_v11 = vpop.f32.mrb[149].mxu1  ;;  %v5117_v61 = vpop.f32.mrb[150].mxu0  ;;  %v3186_v19 = vrot.slane %v3185_v0, 1 }
 0x221   :  { %v5198_v27 = vadd.f32 %v5197_v11, %v5196_v6  ;;  %v5199_v31 = vpop.f32.mrb[150].mxu1  ;;  %v5118_v32 = vpop.f32.mrb[151].mxu0  ;;  %v3181_v25 = vmax.f32 %v3179_v50, %v3180_v5 }
 0x222   :  { %v3190_v34 = vrot.slane %v3189_v8, 2  ;;  %v3195_v36 = vmax.f32 %v6750_v55, %v3194_v10  ;;  %v2979_v13 = vadd.f32 %v5116_v42, %v6677_v9  ;;  %v5119_v37 = vadd.f32 %v5118_v32, %v5117_v61  ;;  %v5200_v41 = vpop.f32.mrb[151].mxu1 }
 0x223   :  { %v5201_v43 = vadd.f32 %v5200_v41, %v5199_v31  ;;  %v3187_v54 = vmax.f32 %v3185_v0, %v3186_v19  ;;  %v3306_v15 = vsel %vm3305_vm3, %v3181_v25, %v3304_v39 }
 0x224   :  { %v3191_v44 = vmax.f32 %v3189_v8, %v3190_v34  ;;  %v3196_v38 = vrot.slane %v3195_v36, 2  ;;  %v6758_v18 = vadd.f32 %v5198_v27, %v2979_v13  ;;  %v2982_v21 = vadd.f32 %v5119_v37, %v6680_v1 }
 0x225   :  { %v3308_v8 = vsel %vm3307_vm4, %v3187_v54, %v3306_v15 }
 0x226   :  { %v6762_v46 = vadd.f32 %v5201_v43, %v2982_v21  ;;  %v5120_v48 = vpop.f32.mrb[152].mxu0  ;;  %v3192_v51 = vrot.slane %v3191_v44, 1  ;;  %v3197_v59 = vmax.f32 %v3195_v36, %v3196_v38  ;;  %v3200_v0 = vrot.slane %v6758_v18, 4 }
 0x227   :  { %v5202_v9 = vpop.f32.mrb[152].mxu1  ;;  %v5121_v26 = vpop.f32.mrb[153].mxu0 }
 0x228   :  { %v3206_v63 = vrot.slane %v6762_v46, 4  ;;  %v5122_v2 = vadd.f32 %v5121_v26, %v5120_v48  ;;  %v5203_v23 = vpop.f32.mrb[153].mxu1  ;;  %v5123_v17 = vpop.f32.mrb[154].mxu0  ;;  %v3193_v50 = vmax.f32 %v3191_v44, %v3192_v51  ;;  %v3198_v3 = vrot.slane %v3197_v59, 1 }
 0x229   :  { %v5204_v1 = vadd.f32 %v5203_v23, %v5202_v9  ;;  %v5205_v30 = vpop.f32.mrb[154].mxu1  ;;  %v5124_v4 = vpop.f32.mrb[155].mxu0 }
 0x22a   :  { %v2987_v5 = vadd.f32 %v5122_v2, %v6683_v35  ;;  %v5125_v6 = vadd.f32 %v5124_v4, %v5123_v17  ;;  %v5206_v7 = vpop.f32.mrb[155].mxu1  ;;  %v3199_v42 = vmax.f32 %v3197_v59, %v3198_v3  ;;  %v3310_v11 = vsel %vm3309_vm5, %v3193_v50, %v3308_v8 }
 0x22b   :  { %v5207_v10 = vadd.f32 %v5206_v7, %v5205_v30  ;;  %v3207_v61 = vmax.f32 %v6762_v46, %v3206_v63  ;;  %v3201_v35 = vmax.f32 %v6758_v18, %v3200_v0 }
 0x22c   :  { %v6771_v24 = vadd.f32 %v5204_v1, %v2987_v5  ;;  %v2990_v28 = vadd.f32 %v5125_v6, %v6686_v33  ;;  %v3312_v19 = vsel %vm3311_vm6, %v3199_v42, %v3310_v11 }
 0x22d   :  { %v3339_v34 = vsel %vm3338_vm7, %v3312_v19, -inf  ;;  %v3328_v36 = vsel %vm3327_vm8, %v3312_v19, -inf  ;;  %v3208_v37 = vrot.slane %v3207_v61, 2  ;;  %v3202_v48 = vrot.slane %v3201_v35, 2 }
 0x22e   :  { %v3212_v27 = vrot.slane %v6771_v24, 4  ;;  %v6777_v31 = vadd.f32 %v5207_v10, %v2990_v28  ;;  %v5126_v32 = vpop.f32.mrb[156].mxu0  ;;  %3340 = vmax.xlane.f32.xlu0 %v3339_v34  ;;  %3329 = vmax.xlane.f32.xlu1 %v3328_v36 }
 0x22f   :  { %v5208_v52 = vpop.f32.mrb[156].mxu1  ;;  %v5127_v13 = vpop.f32.mrb[157].mxu0  ;;  %v3209_v63 = vmax.f32 %v3207_v61, %v3208_v37  ;;  %v3203_v1 = vmax.f32 %v3201_v35, %v3202_v48 }
 0x230   :  { %v3213_v41 = vmax.f32 %v6771_v24, %v3212_v27  ;;  %v3218_v33 = vrot.slane %v6777_v31, 4  ;;  %v5209_v25 = vpop.f32.mrb[157].mxu1  ;;  %v5129_v43 = vpop.f32.mrb[158].mxu0  ;;  %v5128_v44 = vadd.f32 %v5127_v13, %v5126_v32 }
 0x231   :  { %v5210_v38 = vadd.f32 %v5209_v25, %v5208_v52  ;;  %v5211_v21 = vpop.f32.mrb[158].mxu1  ;;  %v5130_v39 = vpop.f32.mrb[159].mxu0  ;;  %v3210_v6 = vrot.slane %v3209_v63, 1  ;;  %v3204_v35 = vrot.slane %v3203_v1, 1 }
 0x232   :  { %v3214_v54 = vrot.slane %v3213_v41, 2  ;;  %v3219_v51 = vmax.f32 %v6777_v31, %v3218_v33  ;;  %v5131_v59 = vadd.f32 %v5130_v39, %v5129_v43  ;;  %v5212_v9 = vpop.f32.mrb[159].mxu1  ;;  %v2995_v26 = vadd.f32 %v5128_v44, %v6689_v62 }
 0x233   :  { %v5213_v15 = vadd.f32 %v5212_v9, %v5211_v21  ;;  %v3211_v37 = vmax.f32 %v3209_v63, %v3210_v6  ;;  %v3205_v21 = vmax.f32 %v3203_v1, %v3204_v35 }
 0x234   :  { %v2998_v2 = vadd.f32 %v5131_v59, %v6692_v22  ;;  %v3215_v23 = vmax.f32 %v3213_v41, %v3214_v54  ;;  %v3220_v17 = vrot.slane %v3219_v51, 2  ;;  %v6786_v50 = vadd.f32 %v5210_v38, %v2995_v26 }
 0x236   :  { %v6788_v30 = vadd.f32 %v5213_v15, %v2998_v2  ;;  %v5132_v4 = vpop.f32.mrb[160].mxu0  ;;  %v3224_v3 = vrot.slane %v6786_v50, 4  ;;  %v3216_v42 = vrot.slane %v3215_v23, 1  ;;  %v3221_v22 = vmax.f32 %v3219_v51, %v3220_v17 }
 0x237   :  { %v5214_v0 = vpop.f32.mrb[160].mxu1  ;;  %v5133_v5 = vpop.f32.mrb[161].mxu0 }
 0x238   :  { %v3230_v7 = vrot.slane %v6788_v30, 4  ;;  %v5134_v62 = vadd.f32 %v5133_v5, %v5132_v4  ;;  %v5215_v8 = vpop.f32.mrb[161].mxu1  ;;  %v5135_v10 = vpop.f32.mrb[162].mxu0  ;;  %v3225_v11 = vmax.f32 %v6786_v50, %v3224_v3  ;;  %v3217_v43 = vmax.f32 %v3215_v23, %v3216_v42 }
 0x239   :  { %v5216_v61 = vadd.f32 %v5215_v8, %v5214_v0  ;;  %v5217_v28 = vpop.f32.mrb[162].mxu1  ;;  %v5136_v19 = vpop.f32.mrb[163].mxu0  ;;  %v3222_v44 = vrot.slane %v3221_v22, 1  ;;  %v3313_v23 = vsel %vm3299_vm0, %v3211_v37, %v3205_v21 }
 0x23a   :  { %v3231_v27 = vmax.f32 %v6788_v30, %v3230_v7  ;;  %v3003_v32 = vadd.f32 %v5134_v62, %v6695_v53  ;;  %v5137_v52 = vadd.f32 %v5136_v19, %v5135_v10  ;;  %v5218_v34 = vpop.f32.mrb[163].mxu1  ;;  %v3226_v36 = vrot.slane %v3225_v11, 2 }
 0x23b   :  { %v5219_v13 = vadd.f32 %v5218_v34, %v5217_v28  ;;  %v3223_v17 = vmax.f32 %v3221_v22, %v3222_v44  ;;  %v3314_v5 = vsel %vm3301_vm1, %v3217_v43, %v3313_v23 }
 0x23c   :  { %v3232_v41 = vrot.slane %v3231_v27, 2  ;;  %v6795_v33 = vadd.f32 %v5216_v61, %v3003_v32  ;;  %v3006_v25 = vadd.f32 %v5137_v52, %v6698_v57  ;;  %v3227_v38 = vmax.f32 %v3225_v11, %v3226_v36 }
 0x23d   :  { %v3315_v35 = vsel %vm3303_vm2, %v3223_v17, %v3314_v5 }
 0x23e   :  { %v3233_v39 = vmax.f32 %v3231_v27, %v3232_v41  ;;  %v3236_v48 = vrot.slane %v6795_v33, 4  ;;  %v6799_v54 = vadd.f32 %v5219_v13, %v3006_v25  ;;  %v5138_v53 = vpop.f32.mrb[164].mxu0  ;;  %v3228_v51 = vrot.slane %v3227_v38, 1 }
 0x23f   :  { %v5220_v59 = vpop.f32.mrb[164].mxu1  ;;  %v5139_v9 = vpop.f32.mrb[165].mxu0 }
 0x240   :  { %v3237_v26 = vmax.f32 %v6795_v33, %v3236_v48  ;;  %v3242_v15 = vrot.slane %v6799_v54, 4  ;;  %v5140_v63 = vadd.f32 %v5139_v9, %v5138_v53  ;;  %v5221_v2 = vpop.f32.mrb[165].mxu1  ;;  %v5141_v57 = vpop.f32.mrb[166].mxu0  ;;  %v3234_v1 = vrot.slane %v3233_v39, 1 }
 0x241   :  { %v5222_v4 = vadd.f32 %v5221_v2, %v5220_v59  ;;  %v5223_v3 = vpop.f32.mrb[166].mxu1  ;;  %v5142_v0 = vpop.f32.mrb[167].mxu0  ;;  %v3229_v42 = vmax.f32 %v3227_v38, %v3228_v51 }
 0x242   :  { %v3238_v6 = vrot.slane %v3237_v26, 2  ;;  %v3243_v7 = vmax.f32 %v6799_v54, %v3242_v15  ;;  %v3011_v62 = vadd.f32 %v5140_v63, %v6701_v20  ;;  %v5143_v8 = vadd.f32 %v5142_v0, %v5141_v57  ;;  %v5224_v10 = vpop.f32.mrb[167].mxu1 }
 0x243   :  { %v5225_v11 = vadd.f32 %v5224_v10, %v5223_v3  ;;  %v3235_v52 = vmax.f32 %v3233_v39, %v3234_v1  ;;  %v3316_v37 = vsel %vm3305_vm3, %v3229_v42, %v3315_v35 }
 0x244   :  { %v3239_v61 = vmax.f32 %v3237_v26, %v3238_v6  ;;  %v3244_v28 = vrot.slane %v3243_v7, 2  ;;  %v6807_v19 = vadd.f32 %v5222_v4, %v3011_v62  ;;  %v3014_v22 = vadd.f32 %v5143_v8, %v6704_v56 }
 0x245   :  { %v3317_v15 = vsel %vm3307_vm4, %v3235_v52, %v3316_v37  ;;  %v4022_v37 = vld [vmem:[%s7225_s3] sm:$0xff] }
 0x246   :  { %v6811_v27 = vadd.f32 %v5225_v11, %v3014_v22  ;;  %v5144_v32 = vpop.f32.mrb[168].mxu0  ;;  %v3240_v34 = vrot.slane %v3239_v61, 1  ;;  %v3245_v36 = vmax.f32 %v3243_v7, %v3244_v28  ;;  %v3248_v41 = vrot.slane %v6807_v19, 4 }
 0x247   :  { %v5226_v13 = vpop.f32.mrb[168].mxu1  ;;  %v5145_v20 = vpop.f32.mrb[169].mxu0 }
 0x248   :  { %v3254_v25 = vrot.slane %v6811_v27, 4  ;;  %v5146_v43 = vadd.f32 %v5145_v20, %v5144_v32  ;;  %v5227_v44 = vpop.f32.mrb[169].mxu1  ;;  %v5147_v38 = vpop.f32.mrb[170].mxu0  ;;  %v3241_v56 = vmax.f32 %v3239_v61, %v3240_v34  ;;  %v3246_v51 = vrot.slane %v3245_v36, 1 }
 0x249   :  { %v5228_v21 = vadd.f32 %v5227_v44, %v5226_v13  ;;  %v5229_v48 = vpop.f32.mrb[170].mxu1  ;;  %v5148_v53 = vpop.f32.mrb[171].mxu0  ;;  %v3249_v23 = vmax.f32 %v6807_v19, %v3248_v41  ;;  %v4023_v41 = vld [vmem:[%s7225_s3 + $0x8] sm:$0xff] }
 0x24a   :  { %v3255_v39 = vmax.f32 %v6811_v27, %v3254_v25  ;;  %v3019_v59 = vadd.f32 %v5146_v43, %v6707_v45  ;;  %v5149_v9 = vadd.f32 %v5148_v53, %v5147_v38  ;;  %v5230_v26 = vpop.f32.mrb[171].mxu1  ;;  %v3247_v2 = vmax.f32 %v3245_v36, %v3246_v51  ;;  %v4024_v25 = vld [vmem:[%s7225_s3 + $0x10] sm:$0xff]  ;;  %v4026_v53 = vld [vmem:[%s7225_s3 + $0x20] sm:$0xff]  ;;  %v4027_v51 = vld [vmem:[%s7225_s3 + $0x28] sm:$0xff] }
 0x24b   :  { %v5231_v63 = vadd.f32 %v5230_v26, %v5229_v48  ;;  %v3318_v57 = vsel %vm3309_vm5, %v3241_v56, %v3317_v15  ;;  %v3250_v10 = vrot.slane %v3249_v23, 2  ;;  %v5301_v56 = vpack.c.bf16 %v4023_v41, %v4022_v37  ;;  %v4035_v37 = vld [vmem:[%s7225_s3 + $0x68] sm:$0xff] }
 0x24c   :  { %v6821_v17 = vadd.f32 %v5228_v21, %v3019_v59  ;;  %v3022_v1 = vadd.f32 %v5149_v9, %v6710_v47  ;;  %v3319_v4 = vsel %vm3311_vm6, %v3247_v2, %v3318_v57  ;;  %v3256_v3 = vrot.slane %v3255_v39, 2 }
 0x24d   :  { %v3331_v7 = vsel %vm3327_vm8, %v3319_v4, -inf  ;;  %v3342_v62 = vsel %vm3338_vm7, %v3319_v4, -inf  ;;  %v3251_v43 = vmax.f32 %v3249_v23, %v3250_v10  ;;  %5302 = vmatprep.subr.bf16.mxu0 %v5301_v56  ;;  %5333 = vmatprep.subr.bf16.mxu1 %v5301_v56 }
 0x24e   :  { %v3260_v0 = vrot.slane %v6821_v17, 4  ;;  %v6826_v45 = vadd.f32 %v5231_v63, %v3022_v1  ;;  %v5150_v5 = vpop.f32.mrb[172].mxu0  ;;  %3332 = vmax.xlane.f32.xlu0 %v3331_v7  ;;  %3343 = vmax.xlane.f32.xlu1 %v3342_v62  ;;  %v3257_v52 = vmax.f32 %v3255_v39, %v3256_v3  ;;  %v5309_v63 = vpack.c.bf16 %v4027_v51, %v4026_v53 }
 0x24f   :  { %v5232_v6 = vpop.f32.mrb[172].mxu1  ;;  %v5151_v8 = vpop.f32.mrb[173].mxu0  ;;  %5304 = vmatpush3.bf16.msra.mxu0 %v5301_v56  ;;  %5341 = vmatpush3.bf16.msra.mxu1 %v5301_v56  ;;  %v3252_v15 = vrot.slane %v3251_v43, 1 }
 0x250   :  { %v3261_v42 = vmax.f32 %v6821_v17, %v3260_v0  ;;  %v3266_v11 = vrot.slane %v6826_v45, 4  ;;  %v5233_v47 = vpop.f32.mrb[173].mxu1  ;;  %v5153_v61 = vpop.f32.mrb[174].mxu0  ;;  %v5152_v28 = vadd.f32 %v5151_v8, %v5150_v5  ;;  %v3258_v39 = vrot.slane %v3257_v52, 1 }
 0x251   :  { %v5234_v22 = vadd.f32 %v5233_v47, %v5232_v6  ;;  %v5235_v35 = vpop.f32.mrb[174].mxu1  ;;  %v5154_v32 = vpop.f32.mrb[175].mxu0  ;;  %v3253_v3 = vmax.f32 %v3251_v43, %v3252_v15  ;;  %v4028_v61 = vld [vmem:[%s7225_s3 + $0x30] sm:$0xff]  ;;  %v4037_v43 = vld [vmem:[%s7225_s3 + $0x78] sm:$0xff] }
 0x252   :  { %v3262_v34 = vrot.slane %v3261_v42, 2  ;;  %v3267_v36 = vmax.f32 %v6826_v45, %v3266_v11  ;;  %v5236_v13 = vpop.f32.mrb[175].mxu1  ;;  %v3027_v20 = vadd.f32 %v5152_v28, %v6713_v40  ;;  %v4025_v40 = vld [vmem:[%s7225_s3 + $0x18] sm:$0xff]  ;;  %v3259_v57 = vmax.f32 %v3257_v52, %v3258_v39  ;;  %v4030_v35 = vld [vmem:[%s7225_s3 + $0x40] sm:$0xff]  ;;  %v4031_v32 = vld [vmem:[%s7225_s3 + $0x48] sm:$0xff] }
 0x253   :  { %v5305_v48 = vpack.c.bf16 %v4025_v40, %v4024_v25  ;;  %v4029_v28 = vld [vmem:[%s7225_s3 + $0x38] sm:$0xff]  ;;  %v5317_v52 = vpack.c.bf16 %v4031_v32, %v4030_v35  ;;  %v4034_v13 = vld [vmem:[%s7225_s3 + $0x60] sm:$0xff]  ;;  %v4036_v25 = vld [vmem:[%s7225_s3 + $0x70] sm:$0xff]  ;;  %v3359_v40 = vlaneseq }
 0x254   :  { %v3263_v44 = vmax.f32 %v3261_v42, %v3262_v34  ;;  %v3268_v38 = vrot.slane %v3267_v36, 2  ;;  %v6846_v21 = vadd.f32 %v5234_v22, %v3027_v20  ;;  %v3320_v6 = vsel %vm3299_vm0, %v3259_v57, %v3253_v3  ;;  %v4032_v34 = vld [vmem:[%s7225_s3 + $0x50] sm:$0xff] }
 0x255   :  { %5306 = vmatprep.subr.bf16.mxu0 %v5305_v48  ;;  %5334 = vmatprep.subr.bf16.mxu1 %v5305_v48  ;;  %v5313_v22 = vpack.c.bf16 %v4029_v28, %v4028_v61  ;;  %v5325_v41 = vpack.c.bf16 %v4035_v37, %v4034_v13  ;;  %v3360_v53 = vshrl.u32 %v3359_v40, 7 }
 0x256   :  { %v3269_v59 = vmax.f32 %v3267_v36, %v3268_v38  ;;  %v3264_v9 = vrot.slane %v3263_v44, 1  ;;  %v3272_v26 = vrot.slane %v6846_v21, 4  ;;  %5308 = vmatpush3.bf16.msra.mxu0 %v5305_v48  ;;  %5342 = vmatpush3.bf16.msra.mxu1 %v5305_v48  ;;  %v4033_v36 = vld [vmem:[%s7225_s3 + $0x58] sm:$0xff]  ;;  %v5552_v38 = vmov 1966171168   ;;  %s5553_s3 = smov 2  }
 0x257   :  { %5310 = vmatprep.subr.bf16.mxu0 %v5309_v63  ;;  %5335 = vmatprep.subr.bf16.mxu1 %v5309_v63  ;;  %v5321_v20 = vpack.c.bf16 %v4033_v36, %v4032_v34  ;;  %v3357_v56 = vunpack.c.l.s4 %v5552_v38 }
 0x258   :  { %v3273_v2 = vmax.f32 %v6846_v21, %v3272_v26  ;;  %v3270_v23 = vrot.slane %v3269_v59, 1  ;;  %v3265_v4 = vmax.f32 %v3263_v44, %v3264_v9  ;;  %v5329_v44 = vpack.c.bf16 %v4037_v43, %v4036_v25 }
 0x259   :  { %v3358_v48 = vunpack.c.0.s8 %v3357_v56 }
 0x25a   :  { %v3274_v1 = vrot.slane %v3273_v2, 2  ;;  %v3271_v5 = vmax.f32 %v3269_v59, %v3270_v23  ;;  %v3321_v62 = vsel %vm3301_vm1, %v3265_v4, %v3320_v6  ;;  %5312 = vmatpush3.bf16.msra.mxu0 %v5309_v63  ;;  %5343 = vmatpush3.bf16.msra.mxu1 %v5309_v63  ;;  %v6894_v63 = vsub.s32 0, %v3360_v53 }
 0x25b   :  { %5314 = vmatprep.subr.bf16.mxu0 %v5313_v22  ;;  %5336 = vmatprep.subr.bf16.mxu1 %v5313_v22  ;;  %v6890_v51 = vsub.s32 %v3358_v48, %v3360_v53 }
 0x25c   :  { %v3275_v0 = vmax.f32 %v3273_v2, %v3274_v1  ;;  %v3322_v10 = vsel %vm3303_vm2, %v3271_v5, %v3321_v62 }
 0x25e   :  { %v3276_v7 = vrot.slane %v3275_v0, 1  ;;  %5316 = vmatpush3.bf16.msra.mxu0 %v5313_v22  ;;  %5344 = vmatpush3.bf16.msra.mxu1 %v5313_v22 }
 0x25f   :  { %5318 = vmatprep.subr.bf16.mxu0 %v5317_v52  ;;  %5337 = vmatprep.subr.bf16.mxu1 %v5317_v52 }
 0x260   :  { %v3277_v8 = vmax.f32 %v3275_v0, %v3276_v7 }
 0x262   :  { %v3323_v42 = vsel %vm3305_vm3, %v3277_v8, %v3322_v10  ;;  %5320 = vmatpush3.bf16.msra.mxu0 %v5317_v52  ;;  %5345 = vmatpush3.bf16.msra.mxu1 %v5317_v52 }
 0x263   :  { %v3335_v11 = vsel %vm3334_vm9, %v3323_v42, -inf  ;;  %v3346_v47 = vsel %vm3345_vm10, %v3323_v42, -inf  ;;  %5322 = vmatprep.subr.bf16.mxu0 %v5321_v20  ;;  %5338 = vmatprep.subr.bf16.mxu1 %v5321_v20 }
 0x264   :  { %3336 = vmax.xlane.f32.xlu0 %v3335_v11  ;;  %3347 = vmax.xlane.f32.xlu1 %v3346_v47 }
 0x266   :  { %5324 = vmatpush3.bf16.msra.mxu0 %v5321_v20  ;;  %5346 = vmatpush3.bf16.msra.mxu1 %v5321_v20 }
 0x267   :  { %5326 = vmatprep.subr.bf16.mxu0 %v5325_v41  ;;  %5339 = vmatprep.subr.bf16.mxu1 %v5325_v41 }
 0x26a   :  { %5328 = vmatpush3.bf16.msra.mxu0 %v5325_v41  ;;  %5347 = vmatpush3.bf16.msra.mxu1 %v5325_v41 }
 0x26b   :  { %5330 = vmatprep.subr.bf16.mxu0 %v5329_v44  ;;  %5340 = vmatprep.subr.bf16.mxu1 %v5329_v44 }
 0x26e   :  { %5332 = vmatpush3.bf16.msra.mxu0 %v5329_v44  ;;  %5348 = vmatpush3.bf16.msra.mxu1 %v5329_v44 }
 0x2bb   :  { %v3341_v39 = vpop.xlane.xlu0 %3340  ;;  %v3330_v59 = vpop.xlane.xlu1 %3329 }
 0x2bc   :  { %v3349_v9 = vsel %vm3327_vm8, %v3330_v59, %v3341_v39 }
 0x2bd   :  { %v3355_v26 = vcombine.high %v3349_v9, %v3349_v9  ;;  %v3362_v15 = vrot.slane %v3349_v9, %v6890_v51 }
 0x2bf   :  { %v3369_v2 = vrot.slane %v3355_v26, %v6890_v51  ;;  %v3370_v57 = vcombine.high %v3362_v15, %v3362_v15  ;;  %v3378_v23 = vrot.slane %v3362_v15, %v6890_v51 }
 0x2c1   :  { %v3371_v1 = vcombine.high %v3369_v2, %v3369_v2  ;;  %v3385_v4 = vrot.slane %v3369_v2, %v6890_v51  ;;  %v3392_v3 = vrot.slane %v3370_v57, %v6890_v51  ;;  %v3400_v0 = vcombine.high %v3378_v23, %v3378_v23 }
 0x2c2   :  { %v3495_v5 = vrot.slane %v3378_v23, %v6894_v63 }
 0x2c3   :  { %v3399_v6 = vrot.slane %v3371_v1, %v6890_v51  ;;  %v3401_v7 = vcombine.high %v3385_v4, %v3385_v4  ;;  %v3402_v62 = vcombine.high %v3392_v3, %v3392_v3  ;;  %v3499_v8 = vrot.slane %v3392_v3, %v6894_v63 }
 0x2c4   :  { %v3503_v10 = vrot.slane %v3400_v0, %v6894_v63  ;;  %v3511_v42 = vrot.slane %v3385_v4, %v6894_v63  ;;  %v3597_v11 = vsub.f32 %v6716_v12, %v3495_v5 }
 0x2c5   :  { %v3403_v47 = vcombine.high %v3399_v6, %v3399_v6  ;;  %v3507_v61 = vrot.slane %v3402_v62, %v6894_v63  ;;  %v3515_v28 = vrot.slane %v3399_v6, %v6894_v63  ;;  %v3519_v22 = vrot.slane %v3401_v7, %v6894_v63 }
 0x2c6   :  { %v3598_v35 = vsub.f32 %v6719_v49, %v3499_v8  ;;  %v3599_v32 = vsub.f32 %v6725_v16, %v3503_v10  ;;  %v3601_v52 = vsub.f32 %v6737_v29, %v3511_v42  ;;  %v3618_v34 = vmul.f32 1.442695, %v3597_v11 }
 0x2c7   :  { %v3600_v36 = vsub.f32 %v6730_v60, %v3507_v61  ;;  %v3602_v13 = vsub.f32 %v6739_v14, %v3515_v28  ;;  %v3603_v12 = vsub.f32 %v6746_v58, %v3519_v22  ;;  %v3523_v43 = vrot.slane %v3403_v47, %v6894_v63 }
 0x2c8   :  { %5503 = vpow2.f32 %v3618_v34  ;;  %v3620_v20 = vmul.f32 1.442695, %v3598_v35  ;;  %v3622_v37 = vmul.f32 1.442695, %v3599_v32  ;;  %v3626_v25 = vmul.f32 1.442695, %v3601_v52 }
 0x2c9   :  { %v3624_v41 = vmul.f32 1.442695, %v3600_v36  ;;  %v3628_v49 = vmul.f32 1.442695, %v3602_v13  ;;  %v3630_v16 = vmul.f32 1.442695, %v3603_v12  ;;  %v3604_v29 = vsub.f32 %v6750_v55, %v3523_v43 }
 0x2ca   :  { %5505 = vpow2.f32 %v3620_v20  ;;  %v6917_v60 = vcvt.s32.f32 %v3360_v53 }
 0x2cb   :  { %5507 = vpow2.f32 %v3622_v37  ;;  %v3632_v58 = vmul.f32 1.442695, %v3604_v29 }
 0x2cc   :  { %5509 = vpow2.f32 %v3624_v41 }
 0x2cd   :  { %5511 = vpow2.f32 %v3626_v25 }
 0x2ce   :  { %5513 = vpow2.f32 %v3628_v49 }
 0x2cf   :  { %5515 = vpow2.f32 %v3630_v16 }
 0x2d0   :  { %5517 = vpow2.f32 %v3632_v58 }
 0x2d2   :  { %v5504_v14 = vpop.eup %5503 }
 0x2d3   :  { %v3663_v44 = vrot.slane %v5504_v14, 4  ;;  %v3789_v38 = vmul.f32 %v5504_v14, %v6917_v60 }
 0x2d4   :  { %v5506_v56 = vpop.eup %5505 }
 0x2d5   :  { %v5508_v40 = vpop.eup %5507  ;;  %v3664_v48 = vadd.f32 %v5504_v14, %v3663_v44  ;;  %v3669_v39 = vrot.slane %v5506_v56, 4  ;;  %v6921_v59 = vmul.f32 %v5506_v56, %v6917_v60  ;;  %v3810_v9 = vrot.slane %v3789_v38, 4 }
 0x2d6   :  { %v6923_v26 = vpop.eup %5509  ;;  %v3675_v55 = vrot.slane %v5508_v40, 4  ;;  %v6926_v53 = vmul.f32 %v5508_v40, %v6917_v60 }
 0x2d7   :  { %v6928_v15 = vpop.eup %5511  ;;  %v3665_v2 = vrot.slane %v3664_v48, 2  ;;  %v3670_v57 = vadd.f32 %v5506_v56, %v3669_v39  ;;  %v3681_v23 = vrot.slane %v6923_v26, 4  ;;  %v6931_v1 = vadd.f32 %v3810_v9, %v3789_v38 }
 0x2d8   :  { %v6933_v4 = vpop.eup %5513  ;;  %v3676_v3 = vadd.f32 %v5508_v40, %v3675_v55  ;;  %v3687_v0 = vrot.slane %v6928_v15, 4  ;;  %v3816_v5 = vrot.slane %v6921_v59, 4  ;;  %v3822_v6 = vrot.slane %v6926_v53, 4 }
 0x2d9   :  { %v6938_v7 = vpop.eup %5515  ;;  %v3666_v62 = vadd.f32 %v3665_v2, %v3664_v48  ;;  %v3671_v8 = vrot.slane %v3670_v57, 2  ;;  %v3682_v10 = vadd.f32 %v6923_v26, %v3681_v23  ;;  %v3693_v42 = vrot.slane %v6933_v4, 4 }
 0x2da   :  { %v3677_v11 = vrot.slane %v3676_v3, 2  ;;  %v3688_v47 = vadd.f32 %v6928_v15, %v3687_v0  ;;  %v3699_v61 = vrot.slane %v6938_v7, 4  ;;  %v3812_v28 = vrot.slane %v6931_v1, 2  ;;  %v6953_v48 = vpop.eup %5517 }
 0x2db   :  { %v3333_v22 = vpop.xlane.xlu0 %3332  ;;  %v3344_v35 = vpop.xlane.xlu1 %3343  ;;  %v3667_v32 = vrot.slane %v3666_v62, 1  ;;  %v3672_v52 = vadd.f32 %v3671_v8, %v3670_v57  ;;  %v3683_v34 = vrot.slane %v3682_v10, 2  ;;  %v3694_v36 = vadd.f32 %v6933_v4, %v3693_v42 }
 0x2dc   :  { %v3350_v13 = vsel %vm3327_vm8, %v3333_v22, %v3344_v35  ;;  %v3678_v12 = vadd.f32 %v3677_v11, %v3676_v3  ;;  %v3689_v20 = vrot.slane %v3688_v47, 2  ;;  %v6948_v37 = vadd.f32 %v6938_v7, %v3699_v61 }
 0x2dd   :  { %v3404_v41 = vcombine.high %v3350_v13, %v3350_v13  ;;  %v3411_v25 = vrot.slane %v3350_v13, %v6890_v51  ;;  %v3668_v43 = vadd.f32 %v3667_v32, %v3666_v62  ;;  %v3673_v49 = vrot.slane %v3672_v52, 1 }
 0x2de   :  { %v3679_v16 = vrot.slane %v3678_v12, 1  ;;  %v3684_v29 = vadd.f32 %v3683_v34, %v3682_v10  ;;  %v3690_v14 = vadd.f32 %v3689_v20, %v3688_v47  ;;  %v3695_v58 = vrot.slane %v3694_v36, 2 }
 0x2df   :  { %v3418_v44 = vrot.slane %v3404_v41, %v6890_v51  ;;  %v3419_v38 = vcombine.high %v3411_v25, %v3411_v25  ;;  %v3427_v56 = vrot.slane %v3411_v25, %v6890_v51  ;;  %v3674_v40 = vadd.f32 %v3673_v49, %v3672_v52 }
 0x2e0   :  { %v3680_v39 = vadd.f32 %v3679_v16, %v3678_v12  ;;  %v3685_v9 = vrot.slane %v3684_v29, 1  ;;  %v3691_v55 = vrot.slane %v3690_v14, 1  ;;  %v3696_v2 = vadd.f32 %v3695_v58, %v3694_v36 }
 0x2e1   :  { %v3420_v57 = vcombine.high %v3418_v44, %v3418_v44  ;;  %v3434_v23 = vrot.slane %v3418_v44, %v6890_v51  ;;  %v3441_v3 = vrot.slane %v3419_v38, %v6890_v51  ;;  %v3449_v0 = vcombine.high %v3427_v56, %v3427_v56 }
 0x2e2   :  { %v3527_v62 = vrot.slane %v3427_v56, %v6894_v63  ;;  %v3686_v8 = vadd.f32 %v3685_v9, %v3684_v29  ;;  %v3692_v10 = vadd.f32 %v3691_v55, %v3690_v14  ;;  %v3697_v42 = vrot.slane %v3696_v2, 1 }
 0x2e3   :  { %v3448_v11 = vrot.slane %v3420_v57, %v6890_v51  ;;  %v3450_v47 = vcombine.high %v3434_v23, %v3434_v23  ;;  %v3451_v61 = vcombine.high %v3441_v3, %v3441_v3  ;;  %v3531_v22 = vrot.slane %v3441_v3, %v6894_v63 }
 0x2e4   :  { %v3535_v35 = vrot.slane %v3449_v0, %v6894_v63  ;;  %v3543_v32 = vrot.slane %v3434_v23, %v6894_v63  ;;  %v3605_v52 = vsub.f32 %v6758_v18, %v3527_v62  ;;  %v3698_v34 = vadd.f32 %v3697_v42, %v3696_v2 }
 0x2e5   :  { %v3452_v36 = vcombine.high %v3448_v11, %v3448_v11  ;;  %v3539_v13 = vrot.slane %v3451_v61, %v6894_v63  ;;  %v3547_v12 = vrot.slane %v3448_v11, %v6894_v63  ;;  %v3551_v20 = vrot.slane %v3450_v47, %v6894_v63 }
 0x2e6   :  { %v3606_v41 = vsub.f32 %v6762_v46, %v3531_v22  ;;  %v3607_v25 = vsub.f32 %v6771_v24, %v3535_v35  ;;  %v3609_v49 = vsub.f32 %v6786_v50, %v3543_v32  ;;  %v3634_v16 = vmul.f32 1.442695, %v3605_v52 }
 0x2e7   :  { %v3555_v29 = vrot.slane %v3452_v36, %v6894_v63  ;;  %v3608_v14 = vsub.f32 %v6777_v31, %v3539_v13  ;;  %v3610_v18 = vsub.f32 %v6788_v30, %v3547_v12  ;;  %v3611_v58 = vsub.f32 %v6795_v33, %v3551_v20 }
 0x2e8   :  { %5519 = vpow2.f32 %v3634_v16  ;;  %v3636_v44 = vmul.f32 1.442695, %v3606_v41  ;;  %v3638_v38 = vmul.f32 1.442695, %v3607_v25  ;;  %v3642_v56 = vmul.f32 1.442695, %v3609_v49 }
 0x2e9   :  { %v3612_v9 = vsub.f32 %v6799_v54, %v3555_v29  ;;  %v3640_v46 = vmul.f32 1.442695, %v3608_v14  ;;  %v3644_v55 = vmul.f32 1.442695, %v3610_v18  ;;  %v3646_v24 = vmul.f32 1.442695, %v3611_v58 }
 0x2ea   :  { %5521 = vpow2.f32 %v3636_v44  ;;  %v3701_v50 = vrot.slane %v6948_v37, 2  ;;  %v3705_v2 = vrot.slane %v6953_v48, 4  ;;  %v3957_v31 = vsel %vm3299_vm0, %v3674_v40, %v3668_v43 }
 0x2eb   :  { %5523 = vpow2.f32 %v3638_v38  ;;  %v3648_v30 = vmul.f32 1.442695, %v3612_v9  ;;  %v3958_v33 = vsel %vm3301_vm1, %v3680_v39, %v3957_v31  ;;  %v3813_v57 = vadd.f32 %v3812_v28, %v6931_v1 }
 0x2ec   :  { %5525 = vpow2.f32 %v3640_v46  ;;  %v3702_v54 = vadd.f32 %v3701_v50, %v6948_v37  ;;  %v3706_v23 = vadd.f32 %v6953_v48, %v3705_v2  ;;  %v3959_v3 = vsel %vm3303_vm2, %v3686_v8, %v3958_v33 }
 0x2ed   :  { %5527 = vpow2.f32 %v3642_v56  ;;  %v3960_v0 = vsel %vm3305_vm3, %v3692_v10, %v3959_v3  ;;  %v3814_v62 = vrot.slane %v3813_v57, 1  ;;  %v3817_v43 = vadd.f32 %v3816_v5, %v6921_v59 }
 0x2ee   :  { %5529 = vpow2.f32 %v3644_v55  ;;  %v3703_v40 = vrot.slane %v3702_v54, 1  ;;  %v3707_v39 = vrot.slane %v3706_v23, 2  ;;  %v3961_v1 = vsel %vm3307_vm4, %v3698_v34, %v3960_v0 }
 0x2ef   :  { %5531 = vpow2.f32 %v3646_v24  ;;  %v6989_v28 = vadd.f32 %v3814_v62, %v3813_v57  ;;  %v3818_v37 = vrot.slane %v3817_v43, 2  ;;  %v3823_v8 = vadd.f32 %v3822_v6, %v6926_v53 }
 0x2f0   :  { %5533 = vpow2.f32 %v3648_v30  ;;  %v3704_v10 = vadd.f32 %v3703_v40, %v3702_v54  ;;  %v3708_v42 = vadd.f32 %v3707_v39, %v3706_v23  ;;  %v6996_v59 = vmul.f32 %v6923_v26, %v6917_v60 }
 0x2f1   :  { %v3337_v11 = vpop.xlane.xlu0 %3336  ;;  %v3348_v47 = vpop.xlane.xlu1 %3347  ;;  %v3819_v61 = vadd.f32 %v3818_v37, %v3817_v43  ;;  %v3824_v22 = vrot.slane %v3823_v8, 2  ;;  %v7001_v35 = vmul.f32 %v6928_v15, %v6917_v60  ;;  %v7012_v12 = vmul.f32 %v6933_v4, %v6917_v60 }
 0x2f2   :  { %v3351_v5 = vsel %vm3327_vm8, %v3337_v11, %v3348_v47  ;;  %v7003_v32 = vpop.eup %5519  ;;  %v3709_v53 = vrot.slane %v3708_v42, 1  ;;  %v3962_v6 = vsel %vm3309_vm5, %v3704_v10, %v3961_v1 }
 0x2f3   :  { %v3453_v52 = vcombine.high %v3351_v5, %v3351_v5  ;;  %v3460_v34 = vrot.slane %v3351_v5, %v6890_v51  ;;  %v3711_v36 = vrot.slane %v7003_v32, 4  ;;  %v3820_v26 = vrot.slane %v3819_v61, 1 }
 0x2f4   :  { %v7008_v13 = vadd.f32 %v3824_v22, %v3823_v8  ;;  %v7014_v20 = vpop.eup %5521  ;;  %v3710_v15 = vadd.f32 %v3709_v53, %v3708_v42 }
 0x2f5   :  { %v3467_v41 = vrot.slane %v3453_v52, %v6890_v51  ;;  %v3468_v25 = vcombine.high %v3460_v34, %v3460_v34  ;;  %v3475_v49 = vrot.slane %v3460_v34, %v6890_v51  ;;  %v7018_v16 = vpop.eup %5523  ;;  %v3712_v29 = vadd.f32 %v7003_v32, %v3711_v36 }
 0x2f6   :  { %v3717_v14 = vrot.slane %v7014_v20, 4  ;;  %v7022_v18 = vadd.f32 %v3820_v26, %v3819_v61  ;;  %v3826_v58 = vrot.slane %v7008_v13, 1  ;;  %v7025_v4 = vpop.eup %5525  ;;  %v3963_v44 = vsel %vm3311_vm6, %v3710_v15, %v3962_v6 }
 0x2f7   :  { %v3482_v38 = vrot.slane %v3467_v41, %v6890_v51  ;;  %v3489_v56 = vrot.slane %v3468_v25, %v6890_v51  ;;  %v3490_v9 = vcombine.high %v3475_v49, %v3475_v49  ;;  %v7030_v46 = vpop.eup %5527  ;;  %5292 = vmatprep.mubr.f32.mxu0 %v3963_v44  ;;  %v3559_v55 = vrot.slane %v3475_v49, %v6894_v63 }
 0x2f8   :  { %v3713_v24 = vrot.slane %v3712_v29, 2  ;;  %v3718_v50 = vadd.f32 %v7014_v20, %v3717_v14  ;;  %v3723_v2 = vrot.slane %v7018_v16, 4  ;;  %v7035_v31 = vpop.eup %5529 }
 0x2f9   :  { %v3491_v30 = vcombine.high %v3489_v56, %v3489_v56  ;;  %v3563_v33 = vrot.slane %v3489_v56, %v6894_v63  ;;  %v3567_v57 = vrot.slane %v3490_v9, %v6894_v63  ;;  %v3575_v51 = vrot.slane %v3482_v38, %v6894_v63  ;;  %v7040_v54 = vpop.eup %5531 }
 0x2fa   :  { %v3613_v23 = vsub.f32 %v6807_v19, %v3559_v55  ;;  %v3714_v3 = vadd.f32 %v3713_v24, %v3712_v29  ;;  %v3719_v0 = vrot.slane %v3718_v50, 2  ;;  %v3724_v62 = vadd.f32 %v7018_v16, %v3723_v2  ;;  %v7044_v43 = vpop.eup %5533 }
 0x2fb   :  { %v3571_v40 = vrot.slane %v3491_v30, %v6894_v63  ;;  %v3614_v39 = vsub.f32 %v6811_v27, %v3563_v33  ;;  %v3615_v1 = vsub.f32 %v6821_v17, %v3567_v57  ;;  %v3617_v37 = vsub.f32 %v6846_v21, %v3575_v51 }
 0x2fc   :  { %v3650_v8 = vmul.f32 1.442695, %v3613_v23  ;;  %v3715_v10 = vrot.slane %v3714_v3, 1  ;;  %v3720_v42 = vadd.f32 %v3719_v0, %v3718_v50  ;;  %v3725_v11 = vrot.slane %v3724_v62, 2 }
 0x2fd   :  { %v3616_v19 = vsub.f32 %v6826_v45, %v3571_v40  ;;  %v3652_v47 = vmul.f32 1.442695, %v3614_v39  ;;  %v3654_v5 = vmul.f32 1.442695, %v3615_v1  ;;  %v3658_v61 = vmul.f32 1.442695, %v3617_v37 }
 0x2fe   :  { %5535 = vpow2.f32 %v3650_v8  ;;  %v3716_v22 = vadd.f32 %v3715_v10, %v3714_v3  ;;  %v3721_v53 = vrot.slane %v3720_v42, 1  ;;  %v3726_v6 = vadd.f32 %v3725_v11, %v3724_v62 }
 0x2ff   :  { %5537 = vpow2.f32 %v3652_v47  ;;  %v3656_v63 = vmul.f32 1.442695, %v3616_v19  ;;  %v3729_v27 = vrot.slane %v7025_v4, 4  ;;  %v3735_v17 = vrot.slane %v7030_v46, 4 }
 0x300   :  { %5539 = vpow2.f32 %v3654_v5  ;;  %v3722_v21 = vadd.f32 %v3721_v53, %v3720_v42  ;;  %v3727_v52 = vrot.slane %v3726_v6, 1  ;;  %v3741_v34 = vrot.slane %v7035_v31, 4 }
 0x301   :  { %5541 = vpow2.f32 %v3656_v63  ;;  %v3730_v45 = vadd.f32 %v7025_v4, %v3729_v27  ;;  %v3736_v36 = vadd.f32 %v7030_v46, %v3735_v17  ;;  %v3747_v26 = vrot.slane %v7040_v54, 4 }
 0x302   :  { %5543 = vpow2.f32 %v3658_v61  ;;  %v3728_v15 = vadd.f32 %v3727_v52, %v3726_v6  ;;  %v3742_v41 = vadd.f32 %v7035_v31, %v3741_v34  ;;  %v3753_v25 = vrot.slane %v7044_v43, 4 }
 0x303   :  { %v3731_v49 = vrot.slane %v3730_v45, 2  ;;  %v3737_v29 = vrot.slane %v3736_v36, 2  ;;  %v3748_v14 = vadd.f32 %v7040_v54, %v3747_v26  ;;  %v3964_v44 = vsel %vm3299_vm0, %v3722_v21, %v3716_v22 }
 0x304   :  { %v3743_v38 = vrot.slane %v3742_v41, 2  ;;  %v3754_v56 = vadd.f32 %v7044_v43, %v3753_v25  ;;  %v3965_v9 = vsel %vm3301_vm1, %v3728_v15, %v3964_v44  ;;  %v3827_v55 = vadd.f32 %v3826_v58, %v7008_v13 }
 0x305   :  { %v3732_v24 = vadd.f32 %v3731_v49, %v3730_v45  ;;  %v3738_v50 = vadd.f32 %v3737_v29, %v3736_v36  ;;  %v3749_v2 = vrot.slane %v3748_v14, 2  ;;  %v3999_v30 = vsel %vm3309_vm5, %v7022_v18, %v6989_v28 }
 0x306   :  { %v3744_v33 = vadd.f32 %v3743_v38, %v3742_v41  ;;  %v3755_v57 = vrot.slane %v3754_v56, 2  ;;  %v7070_v51 = vsel %vm3311_vm6, %v3827_v55, %v3999_v30  ;;  %v7074_v23 = vmul.f32 %v6938_v7, %v6917_v60 }
 0x307   :  { %v3733_v3 = vrot.slane %v3732_v24, 1  ;;  %v3739_v0 = vrot.slane %v3738_v50, 1  ;;  %v3750_v62 = vadd.f32 %v3749_v2, %v3748_v14  ;;  %v7078_v13 = vmul.f32 %v6953_v48, %v6917_v60 }
 0x308   :  { %v7080_v58 = vpop.eup %5535  ;;  %v3745_v40 = vrot.slane %v3744_v33, 1  ;;  %v3756_v28 = vadd.f32 %v3755_v57, %v3754_v56  ;;  %v7084_v18 = vmul.f32 %v7003_v32, %v6917_v60  ;;  %v7088_v39 = vmul.f32 %v7014_v20, %v6917_v60 }
 0x309   :  { %v7090_v7 = vpop.eup %5537  ;;  %v3734_v1 = vadd.f32 %v3733_v3, %v3732_v24  ;;  %v3740_v37 = vadd.f32 %v3739_v0, %v3738_v50  ;;  %v3751_v8 = vrot.slane %v3750_v62, 1  ;;  %v3759_v48 = vrot.slane %v7080_v58, 4 }
 0x30a   :  { %v7093_v10 = vpop.eup %5539  ;;  %v3746_v42 = vadd.f32 %v3745_v40, %v3744_v33  ;;  %v3757_v11 = vrot.slane %v3756_v28, 1  ;;  %v3765_v19 = vrot.slane %v7090_v7, 4  ;;  %v7098_v32 = vmul.f32 %v7018_v16, %v6917_v60 }
 0x30b   :  { %v7100_v47 = vpop.eup %5541  ;;  %v3752_v20 = vadd.f32 %v3751_v8, %v3750_v62  ;;  %v3966_v5 = vsel %vm3303_vm2, %v3734_v1, %v3965_v9  ;;  %v3760_v61 = vadd.f32 %v7080_v58, %v3759_v48  ;;  %v3771_v22 = vrot.slane %v7093_v10, 4 }
 0x30c   :  { %v7105_v53 = vpop.eup %5543  ;;  %v3758_v6 = vadd.f32 %v3757_v11, %v3756_v28  ;;  %v3967_v63 = vsel %vm3305_vm3, %v3740_v37, %v3966_v5  ;;  %v3766_v27 = vadd.f32 %v7090_v7, %v3765_v19  ;;  %v3777_v17 = vrot.slane %v7100_v47, 4 }
 0x30d   :  { %v3968_v16 = vsel %vm3307_vm4, %v3746_v42, %v3967_v63  ;;  %v3761_v21 = vrot.slane %v3760_v61, 2  ;;  %v3772_v52 = vadd.f32 %v7093_v10, %v3771_v22  ;;  %v3783_v34 = vrot.slane %v7105_v53, 4 }
 0x30e   :  { %v3969_v45 = vsel %vm3309_vm5, %v3752_v20, %v3968_v16  ;;  %v3767_v36 = vrot.slane %v3766_v27, 2  ;;  %v3778_v26 = vadd.f32 %v7100_v47, %v3777_v17  ;;  %v3828_v15 = vrot.slane %v6996_v59, 4 }
 0x30f   :  { %v3970_v41 = vsel %vm3311_vm6, %v3758_v6, %v3969_v45  ;;  %v3762_v25 = vadd.f32 %v3761_v21, %v3760_v61  ;;  %v3773_v49 = vrot.slane %v3772_v52, 2  ;;  %v3784_v29 = vadd.f32 %v7105_v53, %v3783_v34 }
 0x310   :  { %5293 = vmatmul.mubr.f32.vlgmr.msra.gmra.mrb[176].mxu0 %v3970_v41  ;;  %v3768_v14 = vadd.f32 %v3767_v36, %v3766_v27  ;;  %v3779_v44 = vrot.slane %v3778_v26, 2  ;;  %v3829_v38 = vadd.f32 %v3828_v15, %v6996_v59  ;;  %v3834_v56 = vrot.slane %v7001_v35, 4 }
 0x311   :  { %v3763_v9 = vrot.slane %v3762_v25, 1  ;;  %v3774_v55 = vadd.f32 %v3773_v49, %v3772_v52  ;;  %v3785_v24 = vrot.slane %v3784_v29, 2  ;;  %v3840_v50 = vrot.slane %v7012_v12, 4 }
 0x312   :  { %v3769_v2 = vrot.slane %v3768_v14, 1  ;;  %v3780_v30 = vadd.f32 %v3779_v44, %v3778_v26  ;;  %v3830_v33 = vrot.slane %v3829_v38, 2  ;;  %v3835_v57 = vadd.f32 %v3834_v56, %v7001_v35 }
 0x313   :  { %v3764_v3 = vadd.f32 %v3763_v9, %v3762_v25  ;;  %v3775_v0 = vrot.slane %v3774_v55, 1  ;;  %v3786_v62 = vadd.f32 %v3785_v24, %v3784_v29  ;;  %v3841_v40 = vadd.f32 %v3840_v50, %v7012_v12 }
 0x314   :  { %v3770_v28 = vadd.f32 %v3769_v2, %v3768_v14  ;;  %v3781_v1 = vrot.slane %v3780_v30, 1  ;;  %v3831_v59 = vadd.f32 %v3830_v33, %v3829_v38  ;;  %v3836_v37 = vrot.slane %v3835_v57, 2 }
 0x315   :  { %v3776_v8 = vadd.f32 %v3775_v0, %v3774_v55  ;;  %v3787_v48 = vrot.slane %v3786_v62, 1  ;;  %v3842_v42 = vrot.slane %v3841_v40, 2  ;;  %v3846_v11 = vrot.slane %v7074_v23, 4 }
 0x316   :  { %v3782_v19 = vadd.f32 %v3781_v1, %v3780_v30  ;;  %v3971_v20 = vsel %vm3299_vm0, %v3770_v28, %v3764_v3  ;;  %v3832_v5 = vrot.slane %v3831_v59, 1  ;;  %v3837_v61 = vadd.f32 %v3836_v37, %v3835_v57 }
 0x317   :  { %v3788_v35 = vadd.f32 %v3787_v48, %v3786_v62  ;;  %v3972_v22 = vsel %vm3301_vm1, %v3776_v8, %v3971_v20  ;;  %v3843_v6 = vadd.f32 %v3842_v42, %v3841_v40  ;;  %v3847_v12 = vadd.f32 %v3846_v11, %v7074_v23 }
 0x318   :  { %v3973_v63 = vsel %vm3303_vm2, %v3782_v19, %v3972_v22  ;;  %v3833_v27 = vadd.f32 %v3832_v5, %v3831_v59  ;;  %v3838_v17 = vrot.slane %v3837_v61, 1  ;;  %v3852_v16 = vrot.slane %v7078_v13, 4 }
 0x319   :  { %v3974_v21 = vsel %vm3305_vm3, %v3788_v35, %v3973_v63  ;;  %v3844_v52 = vrot.slane %v3843_v6, 1  ;;  %v3848_v34 = vrot.slane %v3847_v12, 2  ;;  %v3858_v45 = vrot.slane %v7084_v18, 4 }
 0x31a   :  { %v4021_v36 = vsel %vm4020_vm11, %v3974_v21, %v7070_v51  ;;  %v3839_v26 = vadd.f32 %v3838_v17, %v3837_v61  ;;  %v3853_v15 = vadd.f32 %v3852_v16, %v7078_v13  ;;  %v3864_v23 = vrot.slane %v7088_v39, 4 }
 0x31b   :  { %5295 = vmatprep.mubr.f32.mxu1 %v4021_v36  ;;  %v3845_v41 = vadd.f32 %v3844_v52, %v3843_v6  ;;  %v3849_v25 = vadd.f32 %v3848_v34, %v3847_v12  ;;  %v3859_v49 = vadd.f32 %v3858_v45, %v7084_v18  ;;  %v3870_v29 = vrot.slane %v7098_v32, 4 }
 0x31c   :  { %v3854_v14 = vrot.slane %v3853_v15, 2  ;;  %v3865_v44 = vadd.f32 %v3864_v23, %v7088_v39  ;;  %v4001_v38 = vsel %vm3299_vm0, %v3839_v26, %v3833_v27  ;;  %v3800_v51 = vmul.f32 %v7025_v4, %v6917_v60 }
 0x31d   :  { %v3850_v56 = vrot.slane %v3849_v25, 1  ;;  %v3860_v9 = vrot.slane %v3859_v49, 2  ;;  %v3871_v13 = vadd.f32 %v3870_v29, %v7098_v32  ;;  %v4002_v55 = vsel %vm3301_vm1, %v3845_v41, %v4001_v38 }
 0x31e   :  { %v3855_v24 = vadd.f32 %v3854_v14, %v3853_v15  ;;  %v3866_v50 = vrot.slane %v3865_v44, 2  ;;  %v3801_v18 = vmul.f32 %v7030_v46, %v6917_v60  ;;  %v3802_v2 = vmul.f32 %v7035_v31, %v6917_v60 }
 0x31f   :  { %v3851_v39 = vadd.f32 %v3850_v56, %v3849_v25  ;;  %v3861_v30 = vadd.f32 %v3860_v9, %v3859_v49  ;;  %v3872_v33 = vrot.slane %v3871_v13, 2  ;;  %v3803_v4 = vmul.f32 %v7040_v54, %v6917_v60 }
 0x320   :  { %v3856_v57 = vrot.slane %v3855_v24, 1  ;;  %v3867_v3 = vadd.f32 %v3866_v50, %v3865_v44  ;;  %v3804_v32 = vmul.f32 %v7044_v43, %v6917_v60  ;;  %v3805_v0 = vmul.f32 %v7080_v58, %v6917_v60 }
 0x321   :  { %v3862_v62 = vrot.slane %v3861_v30, 1  ;;  %v3873_v40 = vadd.f32 %v3872_v33, %v3871_v13  ;;  %v4003_v46 = vsel %vm3303_vm2, %v3851_v39, %v4002_v55  ;;  %v3806_v31 = vmul.f32 %v7090_v7, %v6917_v60 }
 0x322   :  { %v3857_v28 = vadd.f32 %v3856_v57, %v3855_v24  ;;  %v3868_v1 = vrot.slane %v3867_v3, 1  ;;  %v3807_v54 = vmul.f32 %v7093_v10, %v6917_v60  ;;  %v3876_v59 = vrot.slane %v3800_v51, 4 }
 0x323   :  { %v3863_v37 = vadd.f32 %v3862_v62, %v3861_v30  ;;  %v3874_v8 = vrot.slane %v3873_v40, 1  ;;  %v3882_v48 = vrot.slane %v3801_v18, 4  ;;  %v3888_v43 = vrot.slane %v3802_v2, 4 }
 0x324   :  { %v3869_v42 = vadd.f32 %v3868_v1, %v3867_v3  ;;  %v4004_v58 = vsel %vm3305_vm3, %v3857_v28, %v4003_v46  ;;  %v3877_v11 = vadd.f32 %v3876_v59, %v3800_v51  ;;  %v3894_v19 = vrot.slane %v3803_v4, 4 }
 0x325   :  { %v3875_v20 = vadd.f32 %v3874_v8, %v3873_v40  ;;  %v4005_v5 = vsel %vm3307_vm4, %v3863_v37, %v4004_v58  ;;  %v3883_v61 = vadd.f32 %v3882_v48, %v3801_v18  ;;  %v3889_v7 = vadd.f32 %v3888_v43, %v3802_v2 }
 0x326   :  { %v4006_v35 = vsel %vm3309_vm5, %v3869_v42, %v4005_v5  ;;  %v3878_v22 = vrot.slane %v3877_v11, 2  ;;  %v3895_v6 = vadd.f32 %v3894_v19, %v3803_v4  ;;  %v3900_v10 = vrot.slane %v3804_v32, 4 }
 0x327   :  { %v4007_v12 = vsel %vm3311_vm6, %v3875_v20, %v4006_v35  ;;  %v3884_v63 = vrot.slane %v3883_v61, 2  ;;  %v3890_v27 = vrot.slane %v3889_v7, 2  ;;  %v3906_v17 = vrot.slane %v3805_v0, 4 }
 0x328   :  { %5296 = vmatmul.mubr.f32.vlgmr.msra.gmra.mrb[176].mxu1 %v4007_v12  ;;  %v3879_v16 = vadd.f32 %v3878_v22, %v3877_v11  ;;  %v3896_v21 = vrot.slane %v3895_v6, 2  ;;  %v3901_v52 = vadd.f32 %v3900_v10, %v3804_v32  ;;  %v3912_v34 = vrot.slane %v3806_v31, 4 }
 0x329   :  { %v3885_v45 = vadd.f32 %v3884_v63, %v3883_v61  ;;  %v3891_v36 = vadd.f32 %v3890_v27, %v3889_v7  ;;  %v3907_v26 = vadd.f32 %v3906_v17, %v3805_v0  ;;  %v3918_v15 = vrot.slane %v3807_v54, 4 }
 0x32a   :  { %v3880_v23 = vrot.slane %v3879_v16, 1  ;;  %v3897_v41 = vadd.f32 %v3896_v21, %v3895_v6  ;;  %v3902_v25 = vrot.slane %v3901_v52, 2  ;;  %v3913_v49 = vadd.f32 %v3912_v34, %v3806_v31 }
 0x32b   :  { %v3886_v29 = vrot.slane %v3885_v45, 1  ;;  %v3892_v14 = vrot.slane %v3891_v36, 1  ;;  %v3908_v44 = vrot.slane %v3907_v26, 2  ;;  %v3919_v38 = vadd.f32 %v3918_v15, %v3807_v54 }
 0x32c   :  { %v3881_v51 = vadd.f32 %v3880_v23, %v3879_v16  ;;  %v3898_v56 = vrot.slane %v3897_v41, 1  ;;  %v3903_v9 = vadd.f32 %v3902_v25, %v3901_v52  ;;  %v3914_v13 = vrot.slane %v3913_v49, 2 }
 0x32d   :  { %v3887_v55 = vadd.f32 %v3886_v29, %v3885_v45  ;;  %v3893_v24 = vadd.f32 %v3892_v14, %v3891_v36  ;;  %v3909_v50 = vadd.f32 %v3908_v44, %v3907_v26  ;;  %v3920_v18 = vrot.slane %v3919_v38, 2 }
 0x32e   :  { %v3899_v2 = vadd.f32 %v3898_v56, %v3897_v41  ;;  %v3904_v39 = vrot.slane %v3903_v9, 1  ;;  %v3915_v30 = vadd.f32 %v3914_v13, %v3913_v49  ;;  %v3808_v33 = vmul.f32 %v7100_v47, %v6917_v60 }
 0x32f   :  { %v3910_v4 = vrot.slane %v3909_v50, 1  ;;  %v3921_v57 = vadd.f32 %v3920_v18, %v3919_v38  ;;  %v4008_v3 = vsel %vm3299_vm0, %v3887_v55, %v3881_v51  ;;  %v3809_v32 = vmul.f32 %v7105_v53, %v6917_v60 }
 0x330   :  { %v3905_v0 = vadd.f32 %v3904_v39, %v3903_v9  ;;  %v3916_v62 = vrot.slane %v3915_v30, 1  ;;  %v4009_v40 = vsel %vm3301_vm1, %v3893_v24, %v4008_v3  ;;  %v3924_v46 = vrot.slane %v3808_v33, 4 }
 0x331   :  { %v3911_v31 = vadd.f32 %v3910_v4, %v3909_v50  ;;  %v3922_v28 = vrot.slane %v3921_v57, 1  ;;  %v4010_v1 = vsel %vm3303_vm2, %v3899_v2, %v4009_v40  ;;  %v3930_v54 = vrot.slane %v3809_v32, 4 }
 0x332   :  { %v3917_v59 = vadd.f32 %v3916_v62, %v3915_v30  ;;  %v4011_v47 = vsel %vm3305_vm3, %v3905_v0, %v4010_v1  ;;  %v3925_v37 = vadd.f32 %v3924_v46, %v3808_v33 }
 0x333   :  { %v3923_v8 = vadd.f32 %v3922_v28, %v3921_v57  ;;  %v4012_v48 = vsel %vm3307_vm4, %v3911_v31, %v4011_v47  ;;  %v3931_v43 = vadd.f32 %v3930_v54, %v3809_v32 }
 0x334   :  { %v4013_v60 = vsel %vm3309_vm5, %v3917_v59, %v4012_v48  ;;  %v3926_v53 = vrot.slane %v3925_v37, 2 }
 0x335   :  { %v4014_v42 = vsel %vm3311_vm6, %v3923_v8, %v4013_v60  ;;  %v3932_v58 = vrot.slane %v3931_v43, 2 }
 0x336   :  { %5298 = vmatprep.mubr.f32.mxu1 %v4014_v42  ;;  %v3927_v11 = vadd.f32 %v3926_v53, %v3925_v37 }
 0x337   :  { %v3933_v19 = vadd.f32 %v3932_v58, %v3931_v43 }
 0x338   :  { %v3928_v20 = vrot.slane %v3927_v11, 1 }
 0x339   :  { %v3934_v5 = vrot.slane %v3933_v19, 1 }
 0x33a   :  { %v3929_v61 = vadd.f32 %v3928_v20, %v3927_v11 }
 0x33b   :  { %v3935_v7 = vadd.f32 %v3934_v5, %v3933_v19 }
 0x33d   :  { %v4015_v35 = vsel %vm3299_vm0, %v3935_v7, %v3929_v61  ;;  %vm4232_vm0 = vcmask 20480  }
 0x33e   :  { %5299 = vmatmul.mubr.f32.gmra.mrb[178].mxu1 %v4015_v35 }
 0x3e3   :  { %v5294_v22 = vpop.f32.mrb[176].mxu0 }
 0x3e4   :  { %5545 = vrcp.f32 %v5294_v22  ;;  %v4104_v6 = vpop.f32.mrb[177].mxu0 }
 0x3e5   :  { %5547 = vrcp.f32 %v4104_v6 }
 0x3ee   :  { %v5546_v10 = vpop.eup %5545 }
 0x3ef   :  { %v5548_v12 = vpop.eup %5547  ;;  %4141 = vrot.lane.b32.xlu1 %v5546_v10, %s5553_s3  ;;  %v4164_v63 = vrot.slane %v5546_v10, 3 }
 0x3f0   :  { %4139 = vrot.lane.b32.xlu0 %v5548_v12, %s5553_s3  ;;  %v4163_v27 = vrot.slane %v5548_v12, 3 }
 0x3f2   :  { %v4165_v17 = vsel %vm4020_vm11, %v4163_v27, %v4164_v63 }
 0x3f4   :  { %4151 = vrot.lane.b32.xlu0 %v5548_v12, %s5554_s9 }
 0x3fb   :  { %v5297_v16 = vpop.f32.mrb[176].mxu1 }
 0x3fc   :  { %v4173_v21 = vmul.f32 %v5297_v16, %v4165_v17  ;;  %v4114_v52 = vpop.f32.mrb[177].mxu1 }
 0x3fd   :  { %5549 = vrcp.f32 %v4114_v52  ;;  %v4172_v34 = vmul.f32 %v4163_v27, %v4114_v52 }
 0x3fe   :  { %v4206_v45 = vrot.slane %v4173_v21, 5 }
 0x3ff   :  { %v4205_v36 = vrot.slane %v4172_v34, 5 }
 0x401   :  { %v4207_v26 = vsel %vm4204_vm12, %v4205_v36, %v4206_v45 }
 0x407   :  { %v5550_v15 = vpop.eup %5549 }
 0x408   :  { %v4166_v23 = vrot.slane %v5550_v15, 3  ;;  %4155 = vrot.lane.b32.xlu0 %v5550_v15, %s5554_s9  ;;  %4143 = vrot.lane.b32.xlu1 %v5550_v15, %s5553_s3 }
 0x40a   :  { %v4167_v41 = vsel %vm4020_vm11, %v4164_v63, %v4166_v23 }
 0x40c   :  { %4252 = vrot.lane.b32.xlu0 %v4207_v26, %s5555_s10  ;;  %4153 = vrot.lane.b32.xlu1 %v5546_v10, %s5554_s9 }
 0x410   :  { %4212 = vrot.lane.b32.xlu1 %v4207_v26, %s5553_s3 }
 0x411   :  { %v5300_v25 = vpop.f32.mrb[178].mxu1 }
 0x412   :  { %v4175_v49 = vmul.f32 %v5300_v25, %v4166_v23  ;;  %v4124_v29 = vpop.f32.mrb[179].mxu1 }
 0x413   :  { %v4174_v14 = vmul.f32 %v4167_v41, %v4124_v29 }
 0x414   :  { %v4210_v44 = vrot.slane %v4175_v49, 5 }
 0x415   :  { %v4208_v38 = vrot.slane %v4174_v14, 5 }
 0x417   :  { %v4209_v51 = vsel %vm4204_vm12, %v4206_v45, %v4208_v38  ;;  %v4211_v56 = vsel %vm4204_vm12, %v4208_v38, %v4210_v44 }
 0x418   :  { %4214 = vrot.lane.b32.xlu0 %v4209_v51, %s5553_s3  ;;  %4216 = vrot.lane.b32.xlu1 %v4211_v56, %s5553_s3 }
 0x461   :  { %v4142_v9 = vpop.permute.xlu1 %4141 }
 0x462   :  { %v4149_v13 = vmul.f32 %v5294_v22, %v4142_v9  ;;  %v4140_v55 = vpop.permute.xlu0 %4139 }
 0x463   :  { %v4148_v4 = vmul.f32 %v4140_v55, %v4104_v6 }
 0x464   :  { %4181 = vrot.lane.b32.xlu0 %v4149_v13, %s5556_s11 }
 0x466   :  { %v4152_v24 = vpop.permute.xlu0 %4151 }
 0x467   :  { %v4160_v50 = vmul.f32 %v4152_v24, %v4104_v6 }
 0x468   :  { %4236 = vrot.lane.b32.xlu0 %v4149_v13, %s5557_s12 }
 0x46c   :  { %4191 = vrot.lane.b32.xlu0 %v4160_v50, %s5557_s12 }
 0x470   :  { %4243 = vrot.lane.b32.xlu0 %v4160_v50, %s5558_s13 }
 0x47a   :  { %v4156_v18 = vpop.permute.xlu0 %4155  ;;  %v4144_v2 = vpop.permute.xlu1 %4143 }
 0x47b   :  { %v4162_v39 = vmul.f32 %v4156_v18, %v4114_v52  ;;  %v4150_v57 = vmul.f32 %v4144_v2, %v4114_v52 }
 0x47d   :  { %4195 = vrot.lane.b32.xlu0 %v4162_v39, %s5557_s12 }
 0x47e   :  { %v4154_v30 = vpop.permute.xlu1 %4153  ;;  %v4253_v3 = vpop.permute.xlu0 %4252 }
 0x47f   :  { %v4161_v33 = vmul.f32 %v5294_v22, %v4154_v30 }
 0x481   :  { %4247 = vrot.lane.b32.xlu0 %v4162_v39, %s5558_s13  ;;  %4193 = vrot.lane.b32.xlu1 %v4161_v33, %s5557_s12 }
 0x482   :  { %v4213_v62 = vpop.permute.xlu1 %4212 }
 0x485   :  { %4256 = vrot.lane.b32.xlu0 %v4211_v56, %s5555_s10  ;;  %4245 = vrot.lane.b32.xlu1 %v4161_v33, %s5558_s13 }
 0x489   :  { %4179 = vrot.lane.b32.xlu1 %v4148_v4, %s5556_s11 }
 0x48a   :  { %v4215_v32 = vpop.permute.xlu0 %4214  ;;  %v4217_v46 = vpop.permute.xlu1 %4216 }
 0x48d   :  { %4234 = vrot.lane.b32.xlu1 %v4148_v4, %s5557_s12 }
 0x491   :  { %4183 = vrot.lane.b32.xlu1 %v4150_v57, %s5556_s11 }
 0x495   :  { %4238 = vrot.lane.b32.xlu1 %v4150_v57, %s5557_s12 }
 0x499   :  { %4254 = vrot.lane.b32.xlu1 %v4209_v51, %s5555_s10 }
 0x4d6   :  { %v4182_v0 = vpop.permute.xlu0 %4181 }
 0x4da   :  { %v4237_v40 = vpop.permute.xlu0 %4236 }
 0x4de   :  { %v4192_v31 = vpop.permute.xlu0 %4191 }
 0x4e2   :  { %v4244_v47 = vpop.permute.xlu0 %4243 }
 0x4ef   :  { %v4196_v8 = vpop.permute.xlu0 %4195 }
 0x4f3   :  { %v4194_v28 = vpop.permute.xlu1 %4193  ;;  %v4248_v58 = vpop.permute.xlu0 %4247 }
 0x4f4   :  { %v4223_v1 = vsel %vm4221_vm13, %v4182_v0, %v4194_v28 }
 0x4f5   :  { %v4227_v54 = vsel %vm4225_vm14, %v4223_v1, %v4215_v32 }
 0x4f6   :  { %4231 = vst.msk [vmem:[%s7226_s4 + $0x8] sm:$0xff] %vm4229_vm15, %v4227_v54 }
 0x4f7   :  { %v4246_v59 = vpop.permute.xlu1 %4245  ;;  %v4257_v61 = vpop.permute.xlu0 %4256 }
 0x4f8   :  { %v4262_v22 = vsel %vm4221_vm13, %v4237_v40, %v4246_v59 }
 0x4fb   :  { %v4180_v37 = vpop.permute.xlu1 %4179 }
 0x4fc   :  { %v4222_v48 = vsel %vm4221_vm13, %v4180_v37, %v4192_v31 }
 0x4fd   :  { %v4226_v43 = vsel %vm4225_vm14, %v4222_v48, %v4213_v62 }
 0x4fe   :  { %4230 = vst.msk [vmem:[%s7226_s4] sm:$0xff] %vm4229_vm15, %v4226_v43 }
 0x4ff   :  { %v4235_v60 = vpop.permute.xlu1 %4234 }
 0x500   :  { %v4261_v53 = vsel %vm4221_vm13, %v4235_v60, %v4244_v47 }
 0x501   :  { %v4264_v42 = vsel %vm4225_vm14, %v4261_v53, %v4253_v3 }
 0x502   :  { %4579 = vst.msk [vmem:[%s7226_s4 + $0x18] sm:$0xff] %vm4229_vm15, %v4264_v42 }
 0x503   :  { %v4184_v11 = vpop.permute.xlu1 %4183 }
 0x504   :  { %v4224_v19 = vsel %vm4221_vm13, %v4184_v11, %v4196_v8 }
 0x505   :  { %v4228_v20 = vsel %vm4225_vm14, %v4224_v19, %v4217_v46 }
 0x506   :  { %4233 = vst.msk [vmem:[%s7226_s4 + $0x10] sm:$0x1f] %vm4232_vm0, %v4228_v20 }
 0x507   :  { %v4239_v5 = vpop.permute.xlu1 %4238 }
 0x508   :  { %v4263_v7 = vsel %vm4221_vm13, %v4239_v5, %v4248_v58 }
 0x509   :  { %v4266_v35 = vsel %vm4225_vm14, %v4263_v7, %v4257_v61 }
 0x50a   :  { %4581 = vst.msk [vmem:[%s7226_s4 + $0x28] sm:$0x1f] %vm4232_vm0, %v4266_v35 }
 0x50b   :  { %v4255_v6 = vpop.permute.xlu1 %4254 }
 0x50c   :  { %v4265_v10 = vsel %vm4225_vm14, %v4262_v22, %v4255_v6 }
 0x50d   :  { %4580 = vst.msk [vmem:[%s7226_s4 + $0x20] sm:$0xff] %vm4229_vm15, %v4265_v10 }

</bundles_post_ra>
